<compile_context>
chip_gen: v5e
topology: v5e:2x2
jax: 0.10.0
libtpu: 0.0.40
codegen_flags: <defaults>
</compile_context>

<pallas_src>
import jax
import jax.numpy as jnp
from jax.experimental import pallas as pl
from jax.experimental.pallas import tpu as pltpu

# ---------------- configuration ----------------
N = 2          # batch
C_IN = 4       # in_channels
C_OUT = 8      # out_channels
T = 16         # temporal frames
V = 128        # joints (128 so the lane dim is fully aligned)
K = 3          # graph subsets (A.shape[0])
RATIO = 0.25
MID = int(RATIO * C_OUT)   # 2
KM = K * MID               # 6
KS = 9                     # unit_tcn temporal kernel size
PAD = (KS - 1) // 2        # 4
EPS = 1e-5

CT_IN = C_IN * T           # 64   rows of the stacked input
CT_PRE = KM * T            # 96   rows of the stacked pre-activation
CT_OUT = C_OUT * T         # 128  rows of the stacked output

# Row layout of the single "everything that multiplies xs" stacked weight matrix.
ROW_PRE = 0                       # pre 1x1 conv (+BN), KM*T rows
ROW_DOWN = ROW_PRE + CT_PRE       # 96   gcn-internal down residual (+ folded post bias)
ROW_RES = ROW_DOWN + CT_OUT       # 224  block residual (+ folded tcn bias)
ROW_X2 = ROW_RES + CT_OUT         # 352  conv2 (temporal mean folded), KM rows
STACK_ROWS = ROW_X2 + 8           # 360  (x2's 6 rows padded to a multiple of 8)


# ---------------- fused Pallas kernel (one sample per grid step) ----------------
def _dgblock_kernel(xs_ref, xt_ref,
                    wstack_ref, bstack_ref,
                    w1t_ref, b1t_ref,
                    a_ref, ab_ref,
                    wpost_ref, wtcn_ref,
                    o_ref, y_scr):
    f32 = jnp.float32
    bf16 = jnp.bfloat16
    xs = xs_ref[0]                                   # (C_IN*T, V)  stacked input
    alpha = ab_ref[0]                                # SMEM scalar
    beta = ab_ref[1]                                 # SMEM scalar

    # --- one tall bf16 matmul for ALL consumers of the stacked input -----------------
    #     rows: pre(96) | down(128, post-bias folded) | res(128, tcn-bias folded) | x2(6)
    big = jnp.dot(wstack_ref[...], xs.astype(bf16),
                  preferred_element_type=f32) + bstack_ref[...]        # (360, V)
    pre = jnp.maximum(big[ROW_PRE:ROW_PRE + CT_PRE, :], 0.0)           # (KM*T, V)
    down = big[ROW_DOWN:ROW_DOWN + CT_OUT, :]                          # (C_OUT*T, V)
    res = big[ROW_RES:ROW_RES + CT_OUT, :]                             # (C_OUT*T, V)
    x2 = big[ROW_X2:ROW_X2 + KM, :]                                    # (KM, V)

    # --- x1 produced directly in column (V, KM) layout from the transposed input -----
    #     (temporal mean folded into w1t on the host; no in-kernel transposes)
    x1t = jnp.dot(xt_ref[0], w1t_ref[...], preferred_element_type=f32) + b1t_ref[...]

    # --- per-subset dynamic graph: fold ctr into the shared adjacency, one matmul per
    #     (k, m); results written straight into the VMEM scratch ------------------------
    pre_b = pre.astype(bf16)
    for k in range(K):
        x1k = x1t[:, k * MID:(k + 1) * MID]          # (V, MID)
        x2k = x2[k * MID:(k + 1) * MID, :]           # (MID, V)
        # 'ada' branch: softmax_w(sum_m outer(x1_m, x2_m)) * beta  (tiny K=2 f32 matmul)
        g = jnp.dot(x1k, x2k, preferred_element_type=f32)              # (V, V)
        g = g - jnp.max(g, axis=-1, keepdims=True)
        e = jnp.exp(g)
        inv = pl.reciprocal(jnp.sum(e, axis=-1, keepdims=True), approx=True)
        a_shared = e * (inv * beta) + a_ref[k]       # softmax*beta + static A   (V, V)
        for m in range(MID):
            km = k * MID + m
            # 'ctr' branch folded into the adjacency (VPU add), single MXU matmul
            ctr = jnp.tanh(x1t[:, km:km + 1] - x2[km:km + 1, :])       # (V, V)
            a_km = (a_shared + ctr * alpha).astype(bf16)
            y_scr[km * T:(km + 1) * T, :] = jnp.dot(
                pre_b[km * T:(km + 1) * T, :], a_km, preferred_element_type=f32)

    # --- gcn post 1x1 conv + BN (bias folded into `down`), + down residual, ReLU -----
    acc = jnp.dot(wpost_ref[...], y_scr[...].astype(bf16), preferred_element_type=f32)
    gcn = jnp.maximum(acc + down, 0.0)               # (C_OUT*T, V)

    # --- unit_tcn (9x1 conv + BN, bias folded into `res`) as one banded matmul,
    #     + block residual, final ReLU ------------------------------------------------
    tcn = jnp.dot(wtcn_ref[...], gcn.astype(bf16), preferred_element_type=f32)
    o_ref[0] = jnp.maximum(tcn + res, 0.0)           # (C_OUT*T, V)


# ---------------- pallas_call wrapper ----------------
def _full(a):
    nd = a.ndim
    return pl.BlockSpec(a.shape, lambda n: (0,) * nd)


@jax.jit
def dgblock_forward(x, p):
    xs = x.reshape(N, CT_IN, V)                                 # free view: (c,t) stacked rows
    xt = jnp.transpose(x, (0, 3, 1, 2)).reshape(N, V, CT_IN)    # xt[n, v, c*T+t] = x[n,c,t,v]
    weights = (p['wstack'], p['bstack'],
               p['w1t'], p['b1t'],
               p['A'], p['scal'],
               p['wpost_k'], p['wtcn_big'])
    in_specs = ([pl.BlockSpec((1, CT_IN, V), lambda n: (n, 0, 0)),
                 pl.BlockSpec((1, V, CT_IN), lambda n: (n, 0, 0)),
                 _full(p['wstack']), _full(p['bstack']),
                 _full(p['w1t']), _full(p['b1t']),
                 _full(p['A']),
                 pl.BlockSpec(memory_space=pltpu.MemorySpace.SMEM),   # alpha/beta scalars
                 _full(p['wpost_k']), _full(p['wtcn_big'])])
    out = pl.pallas_call(
        _dgblock_kernel,
        grid=(N,),
        in_specs=in_specs,
        out_specs=pl.BlockSpec((1, CT_OUT, V), lambda n: (n, 0, 0)),
        out_shape=jax.ShapeDtypeStruct((N, CT_OUT, V), jnp.float32),
        scratch_shapes=[pltpu.VMEM((CT_PRE, V), jnp.float32)],
        compiler_params=pltpu.CompilerParams(dimension_semantics=("parallel",)),
    )(xs, xt, *weights)
    return out.reshape(N, C_OUT, T, V)


# ---------------- deterministic parameters + BN folding + stacked-layout weight prep ----------------
def make_raw_params(key):
    keys = iter(jax.random.split(key, 40))

    def nrm(shape, scale=0.1):
        return (scale * jax.random.normal(next(keys), shape)).astype(jnp.float32)

    def bn_params(c):
        return dict(gamma=(1.0 + nrm((c,), 0.05)), beta=nrm((c,), 0.05),
                    mean=nrm((c,), 0.05), var=(1.0 + jnp.abs(nrm((c,), 0.05))))

    return dict(
        wpre=nrm((KM, C_IN)), bpre=nrm((KM,)), bn_pre=bn_params(KM),
        w1=nrm((KM, C_IN)), b1=nrm((KM,)),
        w2=nrm((KM, C_IN)), b2=nrm((KM,)),
        A=nrm((K, V, V)),
        alpha=jnp.full((K,), 0.1, jnp.float32),   # torch inits to zeros; nonzero to exercise the path
        beta=jnp.full((K,), 0.2, jnp.float32),
        wpost=nrm((C_OUT, KM)), bpost=nrm((C_OUT,)), bn_post=bn_params(C_OUT),
        wdown=nrm((C_OUT, C_IN)), bdown=nrm((C_OUT,)), bn_down=bn_params(C_OUT),
        wtcn=nrm((C_OUT, C_OUT, KS)), btcn=nrm((C_OUT,)), bn_tcn=bn_params(C_OUT),
        wres=nrm((C_OUT, C_IN)), bres=nrm((C_OUT,)), bn_res=bn_params(C_OUT),
    )


def fold_bn(w, b, bn):
    s = bn['gamma'] / jnp.sqrt(bn['var'] + EPS)
    shift = bn['beta'] - s * bn['mean']
    wf = w * s.reshape((-1,) + (1,) * (w.ndim - 1))
    return wf, s * b + shift


def fold_params(raw):
    eye_t = jnp.eye(T, dtype=jnp.float32)
    ones_t = jnp.ones((1, T), jnp.float32)

    def kron_conv(w):          # (Cout, Cin) 1x1 conv -> stacked (Cout*T, Cin*T)
        return jnp.kron(w, eye_t)

    def stack_bias(b):         # per-channel bias -> per stacked row (Cout*T, 1)
        return jnp.repeat(b, T)[:, None]

    p = {}
    # pieces of the stacked xs-consuming weight
    wpre_f, bpre = fold_bn(raw['wpre'], raw['bpre'], raw['bn_pre'])
    wpre_k, bpre_s = kron_conv(wpre_f), stack_bias(bpre)

    wpost_f, bpost = fold_bn(raw['wpost'], raw['bpost'], raw['bn_post'])
    p['wpost_k'] = kron_conv(wpost_f).astype(jnp.bfloat16)
    bpost_s = stack_bias(bpost)

    wdown_f, bdown = fold_bn(raw['wdown'], raw['bdown'], raw['bn_down'])
    wdown_k = kron_conv(wdown_f)
    bdown_s = stack_bias(bdown) + bpost_s            # fold post-conv bias into down bias

    wres_f, bres = fold_bn(raw['wres'], raw['bres'], raw['bn_res'])
    wres_k = kron_conv(wres_f)

    # 9x1 temporal conv (+BN) as a banded (C_OUT*T, C_OUT*T) matrix; out-of-range taps
    # (i.e. zero padding at the temporal borders) are simply absent from the band.
    wtcn_f, btcn = fold_bn(raw['wtcn'], raw['btcn'], raw['bn_tcn'])
    t_out = jnp.arange(T)[:, None]
    t_in = jnp.arange(T)[None, :]
    kidx = t_in - t_out + PAD                        # (T, T) kernel-tap index
    valid = (kidx >= 0) & (kidx < KS)
    band = wtcn_f[:, :, jnp.clip(kidx, 0, KS - 1)]   # (C_OUT, C_OUT, T, T)
    band = jnp.where(valid[None, None], band, 0.0)
    p['wtcn_big'] = jnp.transpose(band, (0, 2, 1, 3)).reshape(CT_OUT, CT_OUT).astype(jnp.bfloat16)
    bres_s = stack_bias(bres) + stack_bias(btcn)     # fold tcn bias into residual bias

    # temporal mean + 1x1 conv folded into one matrix acting on the stacked input
    w1m = jnp.kron(raw['w1'], ones_t) / T            # (KM, C_IN*T)
    w2m = jnp.kron(raw['w2'], ones_t) / T
    p['w1t'] = w1m.T                                 # (C_IN*T, KM): x1 comes out column-major
    p['b1t'] = raw['b1'][None, :]
    b2s = raw['b2'][:, None]

    # single stacked weight/bias for every xs consumer (pre | down | res | x2, + pad)
    pad_rows = STACK_ROWS - (CT_PRE + CT_OUT + CT_OUT + KM)
    wstack = jnp.concatenate(
        [wpre_k, wdown_k, wres_k, w2m, jnp.zeros((pad_rows, CT_IN), jnp.float32)], axis=0)
    bstack = jnp.concatenate(
        [bpre_s, bdown_s, bres_s, b2s, jnp.zeros((pad_rows, 1), jnp.float32)], axis=0)
    p['wstack'] = wstack.astype(jnp.bfloat16)        # (360, 64)
    p['bstack'] = bstack                             # (360, 1)  f32

    p['A'] = raw['A']
    # subset_wise=False -> shared alpha[0]/beta[0]; packed into one SMEM scalar pair
    p['scal'] = jnp.stack([raw['alpha'][0], raw['beta'][0]]).astype(jnp.float32)
    return p


# ---------------- pure-JAX reference (mirrors the PyTorch forward, BN eval mode) ----------------
def reference_forward(x, raw):
    def bn_apply(y, bn):
        s = bn['gamma'] / jnp.sqrt(bn['var'] + EPS)
        return y * s[None, :, None, None] + (bn['beta'] - s * bn['mean'])[None, :, None, None]

    def conv1x1(y, w, b):
        return jnp.einsum('oc,nctv->notv', w, y, precision='highest') + b[None, :, None, None]

    n = x.shape[0]
    # dggcn
    pre = jax.nn.relu(bn_apply(conv1x1(x, raw['wpre'], raw['bpre']), raw['bn_pre']))
    pre_x = pre.reshape(n, K, MID, T, V)
    tmp = x.mean(axis=2, keepdims=True)
    x1 = conv1x1(tmp, raw['w1'], raw['b1']).reshape(n, K, MID, 1, V)
    x2 = conv1x1(tmp, raw['w2'], raw['b2']).reshape(n, K, MID, 1, V)
    A = raw['A'][None, :, None, None]                                   # (1,K,1,1,V,V)
    ctr = jnp.tanh(x1[..., :, None] - x2[..., None, :]) * raw['alpha'][0]
    A = ctr + A                                                         # (n,K,MID,1,V,V)
    ada = jnp.einsum('nkctv,nkctw->nktvw', x1, x2, precision='highest')[:, :, None]
    ada = jax.nn.softmax(ada, axis=-1) * raw['beta'][0]
    A = ada + A
    A = A[:, :, :, 0]                                                   # squeeze T(=1)
    y = jnp.einsum('nkctv,nkcvw->nkctw', pre_x, A, precision='highest')
    y = y.reshape(n, KM, T, V)
    gcn = jax.nn.relu(bn_apply(conv1x1(y, raw['wpost'], raw['bpost']), raw['bn_post'])
                      + bn_apply(conv1x1(x, raw['wdown'], raw['bdown']), raw['bn_down']))
    # unit_tcn: (9,1) conv pad (4,0) stride 1 + BN
    gp = jnp.pad(gcn, ((0, 0), (0, 0), (PAD, PAD), (0, 0)))
    tcn = jnp.zeros((n, C_OUT, T, V), jnp.float32) + raw['btcn'][None, :, None, None]
    for k in range(KS):
        tcn = tcn + jnp.einsum('oc,nctv->notv', raw['wtcn'][:, :, k], gp[:, :, k:k + T, :],
                               precision='highest')
    tcn = bn_apply(tcn, raw['bn_tcn'])
    # block residual (unit_tcn kernel_size=1)
    res = bn_apply(conv1x1(x, raw['wres'], raw['bres']), raw['bn_res'])
    return jax.nn.relu(tcn + res)


if __name__ == "__main__":
    key = jax.random.PRNGKey(0)
    kx, kp = jax.random.split(key)
    x = jax.random.normal(kx, (N, C_IN, T, V), jnp.float32)
    raw = make_raw_params(kp)
    params = fold_params(raw)

    out = jax.block_until_ready(dgblock_forward(x, params))
    ref = jax.block_until_ready(reference_forward(x, raw))

    assert out.shape == (N, C_OUT, T, V), out.shape
    err = float(jnp.max(jnp.abs(out - ref)))
    if not bool(jnp.allclose(out, ref, atol=2e-2, rtol=2e-2)):
        raise AssertionError(f"Pallas output mismatch vs reference, max abs err = {err}")
    print("KERNEL_OK")
</pallas_src>

<mosaic_0001>
module attributes {stable_mosaic.version = 11 : i64} {
  func.func @_dgblock_kernel(%arg0: i32, %arg1: memref<1x64x128xf32, #tpu.memory_space<vmem>>, %arg2: memref<1x128x64xf32, #tpu.memory_space<vmem>>, %arg3: memref<360x64xbf16, #tpu.memory_space<vmem>>, %arg4: memref<360x1xf32, #tpu.memory_space<vmem>>, %arg5: memref<64x6xf32, #tpu.memory_space<vmem>>, %arg6: memref<1x6xf32, #tpu.memory_space<vmem>>, %arg7: memref<3x128x128xf32, #tpu.memory_space<vmem>>, %arg8: memref<2xf32, #tpu.memory_space<smem>>, %arg9: memref<128x96xbf16, #tpu.memory_space<vmem>>, %arg10: memref<128x128xbf16, #tpu.memory_space<vmem>>, %arg11: memref<1x128x128xf32, #tpu.memory_space<vmem>>, %arg12: memref<96x128xf32, #tpu.memory_space<vmem>>) attributes {dimension_semantics = [#tpu.dimension_semantics<parallel>], iteration_bounds = array<i64: 2>, scalar_prefetch = 0 : i64, scratch_operands = 1 : i64, tpu.core_type = #tpu.core_type<tc>, window_params = [{transform_indices = @transform_0, window_bounds = array<i64: 1, 64, 128>}, {transform_indices = @transform_1, window_bounds = array<i64: 1, 128, 64>}, {pipeline_mode = #tpu.pipeline_mode<synchronous>, transform_indices = @transform_2, window_bounds = array<i64: 360, 64>}, {pipeline_mode = #tpu.pipeline_mode<synchronous>, transform_indices = @transform_3, window_bounds = array<i64: 360, 1>}, {pipeline_mode = #tpu.pipeline_mode<synchronous>, transform_indices = @transform_4, window_bounds = array<i64: 64, 6>}, {pipeline_mode = #tpu.pipeline_mode<synchronous>, transform_indices = @transform_5, window_bounds = array<i64: 1, 6>}, {pipeline_mode = #tpu.pipeline_mode<synchronous>, transform_indices = @transform_6, window_bounds = array<i64: 3, 128, 128>}, {transform_indices = @transform_7, window_bounds = array<i64: 2>}, {pipeline_mode = #tpu.pipeline_mode<synchronous>, transform_indices = @transform_8, window_bounds = array<i64: 128, 96>}, {pipeline_mode = #tpu.pipeline_mode<synchronous>, transform_indices = @transform_9, window_bounds = array<i64: 128, 128>}, {transform_indices = @transform_10, window_bounds = array<i64: 1, 128, 128>}]} {
    %c0 = arith.constant 0 : index
    %c0_0 = arith.constant 0 : index
    %c0_1 = arith.constant 0 : index
    %0 = vector.load %arg1[%c0, %c0_0, %c0_1] : memref<1x64x128xf32, #tpu.memory_space<vmem>>, vector<1x64x128xf32>
    %1 = vector.shape_cast %0 : vector<1x64x128xf32> to vector<64x128xf32>
    %c0_2 = arith.constant 0 : index
    %2 = memref.load %arg8[%c0_2] : memref<2xf32, #tpu.memory_space<smem>>
    %c1 = arith.constant 1 : index
    %3 = memref.load %arg8[%c1] : memref<2xf32, #tpu.memory_space<smem>>
    %c0_3 = arith.constant 0 : index
    %c0_4 = arith.constant 0 : index
    %4 = vector.load %arg3[%c0_3, %c0_4] : memref<360x64xbf16, #tpu.memory_space<vmem>>, vector<360x64xbf16>
    %5 = arith.truncf %1 : vector<64x128xf32> to vector<64x128xbf16>
    %cst = arith.constant dense<0.000000e+00> : vector<360x128xf32>
    %6 = tpu.matmul %4, %5, %cst {dimension_numbers = #tpu.dot_dimension_numbers<[1], [0], [0], [1], [0, 0, 1, 1], [], []>} : vector<360x64xbf16>, vector<64x128xbf16>, vector<360x128xf32> -> vector<360x128xf32>
    %c0_5 = arith.constant 0 : index
    %c0_6 = arith.constant 0 : index
    %7 = vector.load %arg4[%c0_5, %c0_6] : memref<360x1xf32, #tpu.memory_space<vmem>>, vector<360x1xf32>
    %8 = vector.broadcast %7 : vector<360x1xf32> to vector<360x128xf32>
    %9 = arith.addf %6, %8 : vector<360x128xf32>
    %10 = vector.extract_strided_slice %9 {offsets = [0, 0], sizes = [96, 128], strides = [1, 1]} : vector<360x128xf32> to vector<96x128xf32>
    %cst_7 = arith.constant 0.000000e+00 : f32
    %11 = vector.broadcast %cst_7 : f32 to vector<96x128xf32>
    %12 = arith.maximumf %10, %11 : vector<96x128xf32>
    %13 = vector.extract_strided_slice %9 {offsets = [96, 0], sizes = [128, 128], strides = [1, 1]} : vector<360x128xf32> to vector<128x128xf32>
    %14 = vector.extract_strided_slice %9 {offsets = [224, 0], sizes = [128, 128], strides = [1, 1]} : vector<360x128xf32> to vector<128x128xf32>
    %15 = vector.extract_strided_slice %9 {offsets = [352, 0], sizes = [6, 128], strides = [1, 1]} : vector<360x128xf32> to vector<6x128xf32>
    %c0_8 = arith.constant 0 : index
    %c0_9 = arith.constant 0 : index
    %c0_10 = arith.constant 0 : index
    %16 = vector.load %arg2[%c0_8, %c0_9, %c0_10] : memref<1x128x64xf32, #tpu.memory_space<vmem>>, vector<1x128x64xf32>
    %17 = vector.shape_cast %16 : vector<1x128x64xf32> to vector<128x64xf32>
    %c0_11 = arith.constant 0 : index
    %c0_12 = arith.constant 0 : index
    %18 = vector.load %arg5[%c0_11, %c0_12] : memref<64x6xf32, #tpu.memory_space<vmem>>, vector<64x6xf32>
    %cst_13 = arith.constant dense<0.000000e+00> : vector<128x6xf32>
    %19 = tpu.matmul %17, %18, %cst_13 {dimension_numbers = #tpu.dot_dimension_numbers<[1], [0], [0], [1], [0, 0, 1, 1], [], []>} : vector<128x64xf32>, vector<64x6xf32>, vector<128x6xf32> -> vector<128x6xf32>
    %c0_14 = arith.constant 0 : index
    %c0_15 = arith.constant 0 : index
    %20 = vector.load %arg6[%c0_14, %c0_15] : memref<1x6xf32, #tpu.memory_space<vmem>>, vector<1x6xf32>
    %21 = vector.broadcast %20 : vector<1x6xf32> to vector<128x6xf32>
    %22 = arith.addf %19, %21 : vector<128x6xf32>
    %23 = arith.truncf %12 : vector<96x128xf32> to vector<96x128xbf16>
    %24 = vector.extract_strided_slice %22 {offsets = [0, 0], sizes = [128, 2], strides = [1, 1]} : vector<128x6xf32> to vector<128x2xf32>
    %25 = vector.extract_strided_slice %15 {offsets = [0, 0], sizes = [2, 128], strides = [1, 1]} : vector<6x128xf32> to vector<2x128xf32>
    %cst_16 = arith.constant dense<0.000000e+00> : vector<128x128xf32>
    %26 = tpu.matmul %24, %25, %cst_16 {dimension_numbers = #tpu.dot_dimension_numbers<[1], [0], [0], [1], [0, 0, 1, 1], [], []>} : vector<128x2xf32>, vector<2x128xf32>, vector<128x128xf32> -> vector<128x128xf32>
    %cst_17 = arith.constant dense<0xFF800000> : vector<128xf32>
    %27 = vector.multi_reduction <maximumf>, %26, %cst_17 [1] : vector<128x128xf32> to vector<128xf32>
    %28 = vector.shape_cast %27 : vector<128xf32> to vector<128x1xf32>
    %29 = vector.broadcast %28 : vector<128x1xf32> to vector<128x128xf32>
    %30 = arith.subf %26, %29 : vector<128x128xf32>
    %31 = math.exp %30 : vector<128x128xf32>
    %cst_18 = arith.constant dense<0.000000e+00> : vector<128xf32>
    %32 = vector.multi_reduction <add>, %31, %cst_18 [1] : vector<128x128xf32> to vector<128xf32>
    %33 = vector.shape_cast %32 : vector<128xf32> to vector<128x1xf32>
    %34 = tpu.reciprocal %33 {approx = true} : vector<128x1xf32> -> vector<128x1xf32>
    %35 = vector.broadcast %3 : f32 to vector<128x1xf32>
    %36 = arith.mulf %34, %35 : vector<128x1xf32>
    %37 = vector.broadcast %36 : vector<128x1xf32> to vector<128x128xf32>
    %38 = arith.mulf %31, %37 : vector<128x128xf32>
    %c0_19 = arith.constant 0 : index
    %c0_20 = arith.constant 0 : index
    %c0_21 = arith.constant 0 : index
    %39 = vector.load %arg7[%c0_19, %c0_20, %c0_21] : memref<3x128x128xf32, #tpu.memory_space<vmem>>, vector<1x128x128xf32>
    %40 = vector.shape_cast %39 : vector<1x128x128xf32> to vector<128x128xf32>
    %41 = arith.addf %38, %40 : vector<128x128xf32>
    %42 = vector.extract_strided_slice %22 {offsets = [0, 0], sizes = [128, 1], strides = [1, 1]} : vector<128x6xf32> to vector<128x1xf32>
    %43 = vector.extract_strided_slice %15 {offsets = [0, 0], sizes = [1, 128], strides = [1, 1]} : vector<6x128xf32> to vector<1x128xf32>
    %44 = vector.broadcast %42 : vector<128x1xf32> to vector<128x128xf32>
    %45 = vector.broadcast %43 : vector<1x128xf32> to vector<128x128xf32>
    %46 = arith.subf %44, %45 : vector<128x128xf32>
    %47 = math.tanh %46 : vector<128x128xf32>
    %48 = vector.broadcast %2 : f32 to vector<128x128xf32>
    %49 = arith.mulf %47, %48 : vector<128x128xf32>
    %50 = arith.addf %41, %49 : vector<128x128xf32>
    %51 = arith.truncf %50 : vector<128x128xf32> to vector<128x128xbf16>
    %52 = vector.extract_strided_slice %23 {offsets = [0, 0], sizes = [16, 128], strides = [1, 1]} : vector<96x128xbf16> to vector<16x128xbf16>
    %cst_22 = arith.constant dense<0.000000e+00> : vector<16x128xf32>
    %53 = tpu.matmul %52, %51, %cst_22 {dimension_numbers = #tpu.dot_dimension_numbers<[1], [0], [0], [1], [0, 0, 1, 1], [], []>} : vector<16x128xbf16>, vector<128x128xbf16>, vector<16x128xf32> -> vector<16x128xf32>
    %c0_23 = arith.constant 0 : index
    %c0_24 = arith.constant 0 : index
    %54 = vector.load %arg12[%c0_23, %c0_24] : memref<96x128xf32, #tpu.memory_space<vmem>>, vector<16x128xf32>
    tpu.vector_store %arg12[%c0_23, %c0_24], %53 {strides = array<i32>} : memref<96x128xf32, #tpu.memory_space<vmem>>, vector<16x128xf32>,
    %55 = vector.extract_strided_slice %22 {offsets = [0, 1], sizes = [128, 1], strides = [1, 1]} : vector<128x6xf32> to vector<128x1xf32>
    %56 = vector.extract_strided_slice %15 {offsets = [1, 0], sizes = [1, 128], strides = [1, 1]} : vector<6x128xf32> to vector<1x128xf32>
    %57 = vector.broadcast %55 : vector<128x1xf32> to vector<128x128xf32>
    %58 = vector.broadcast %56 : vector<1x128xf32> to vector<128x128xf32>
    %59 = arith.subf %57, %58 : vector<128x128xf32>
    %60 = math.tanh %59 : vector<128x128xf32>
    %61 = vector.broadcast %2 : f32 to vector<128x128xf32>
    %62 = arith.mulf %60, %61 : vector<128x128xf32>
    %63 = arith.addf %41, %62 : vector<128x128xf32>
    %64 = arith.truncf %63 : vector<128x128xf32> to vector<128x128xbf16>
    %65 = vector.extract_strided_slice %23 {offsets = [16, 0], sizes = [16, 128], strides = [1, 1]} : vector<96x128xbf16> to vector<16x128xbf16>
    %cst_25 = arith.constant dense<0.000000e+00> : vector<16x128xf32>
    %66 = tpu.matmul %65, %64, %cst_25 {dimension_numbers = #tpu.dot_dimension_numbers<[1], [0], [0], [1], [0, 0, 1, 1], [], []>} : vector<16x128xbf16>, vector<128x128xbf16>, vector<16x128xf32> -> vector<16x128xf32>
    %c16 = arith.constant 16 : index
    %c0_26 = arith.constant 0 : index
    %67 = vector.load %arg12[%c16, %c0_26] : memref<96x128xf32, #tpu.memory_space<vmem>>, vector<16x128xf32>
    tpu.vector_store %arg12[%c16, %c0_26], %66 {strides = array<i32>} : memref<96x128xf32, #tpu.memory_space<vmem>>, vector<16x128xf32>,
    %68 = vector.extract_strided_slice %22 {offsets = [0, 2], sizes = [128, 2], strides = [1, 1]} : vector<128x6xf32> to vector<128x2xf32>
    %69 = vector.extract_strided_slice %15 {offsets = [2, 0], sizes = [2, 128], strides = [1, 1]} : vector<6x128xf32> to vector<2x128xf32>
    %cst_27 = arith.constant dense<0.000000e+00> : vector<128x128xf32>
    %70 = tpu.matmul %68, %69, %cst_27 {dimension_numbers = #tpu.dot_dimension_numbers<[1], [0], [0], [1], [0, 0, 1, 1], [], []>} : vector<128x2xf32>, vector<2x128xf32>, vector<128x128xf32> -> vector<128x128xf32>
    %cst_28 = arith.constant dense<0xFF800000> : vector<128xf32>
    %71 = vector.multi_reduction <maximumf>, %70, %cst_28 [1] : vector<128x128xf32> to vector<128xf32>
    %72 = vector.shape_cast %71 : vector<128xf32> to vector<128x1xf32>
    %73 = vector.broadcast %72 : vector<128x1xf32> to vector<128x128xf32>
    %74 = arith.subf %70, %73 : vector<128x128xf32>
    %75 = math.exp %74 : vector<128x128xf32>
    %cst_29 = arith.constant dense<0.000000e+00> : vector<128xf32>
    %76 = vector.multi_reduction <add>, %75, %cst_29 [1] : vector<128x128xf32> to vector<128xf32>
    %77 = vector.shape_cast %76 : vector<128xf32> to vector<128x1xf32>
    %78 = tpu.reciprocal %77 {approx = true} : vector<128x1xf32> -> vector<128x1xf32>
    %79 = vector.broadcast %3 : f32 to vector<128x1xf32>
    %80 = arith.mulf %78, %79 : vector<128x1xf32>
    %81 = vector.broadcast %80 : vector<128x1xf32> to vector<128x128xf32>
    %82 = arith.mulf %75, %81 : vector<128x128xf32>
    %c1_30 = arith.constant 1 : index
    %c0_31 = arith.constant 0 : index
    %c0_32 = arith.constant 0 : index
    %83 = vector.load %arg7[%c1_30, %c0_31, %c0_32] : memref<3x128x128xf32, #tpu.memory_space<vmem>>, vector<1x128x128xf32>
    %84 = vector.shape_cast %83 : vector<1x128x128xf32> to vector<128x128xf32>
    %85 = arith.addf %82, %84 : vector<128x128xf32>
    %86 = vector.extract_strided_slice %22 {offsets = [0, 2], sizes = [128, 1], strides = [1, 1]} : vector<128x6xf32> to vector<128x1xf32>
    %87 = vector.extract_strided_slice %15 {offsets = [2, 0], sizes = [1, 128], strides = [1, 1]} : vector<6x128xf32> to vector<1x128xf32>
    %88 = vector.broadcast %86 : vector<128x1xf32> to vector<128x128xf32>
    %89 = vector.broadcast %87 : vector<1x128xf32> to vector<128x128xf32>
    %90 = arith.subf %88, %89 : vector<128x128xf32>
    %91 = math.tanh %90 : vector<128x128xf32>
    %92 = vector.broadcast %2 : f32 to vector<128x128xf32>
    %93 = arith.mulf %91, %92 : vector<128x128xf32>
    %94 = arith.addf %85, %93 : vector<128x128xf32>
    %95 = arith.truncf %94 : vector<128x128xf32> to vector<128x128xbf16>
    %96 = vector.extract_strided_slice %23 {offsets = [32, 0], sizes = [16, 128], strides = [1, 1]} : vector<96x128xbf16> to vector<16x128xbf16>
    %cst_33 = arith.constant dense<0.000000e+00> : vector<16x128xf32>
    %97 = tpu.matmul %96, %95, %cst_33 {dimension_numbers = #tpu.dot_dimension_numbers<[1], [0], [0], [1], [0, 0, 1, 1], [], []>} : vector<16x128xbf16>, vector<128x128xbf16>, vector<16x128xf32> -> vector<16x128xf32>
    %c32 = arith.constant 32 : index
    %c0_34 = arith.constant 0 : index
    %98 = vector.load %arg12[%c32, %c0_34] : memref<96x128xf32, #tpu.memory_space<vmem>>, vector<16x128xf32>
    tpu.vector_store %arg12[%c32, %c0_34], %97 {strides = array<i32>} : memref<96x128xf32, #tpu.memory_space<vmem>>, vector<16x128xf32>,
    %99 = vector.extract_strided_slice %22 {offsets = [0, 3], sizes = [128, 1], strides = [1, 1]} : vector<128x6xf32> to vector<128x1xf32>
    %100 = vector.extract_strided_slice %15 {offsets = [3, 0], sizes = [1, 128], strides = [1, 1]} : vector<6x128xf32> to vector<1x128xf32>
    %101 = vector.broadcast %99 : vector<128x1xf32> to vector<128x128xf32>
    %102 = vector.broadcast %100 : vector<1x128xf32> to vector<128x128xf32>
    %103 = arith.subf %101, %102 : vector<128x128xf32>
    %104 = math.tanh %103 : vector<128x128xf32>
    %105 = vector.broadcast %2 : f32 to vector<128x128xf32>
    %106 = arith.mulf %104, %105 : vector<128x128xf32>
    %107 = arith.addf %85, %106 : vector<128x128xf32>
    %108 = arith.truncf %107 : vector<128x128xf32> to vector<128x128xbf16>
    %109 = vector.extract_strided_slice %23 {offsets = [48, 0], sizes = [16, 128], strides = [1, 1]} : vector<96x128xbf16> to vector<16x128xbf16>
    %cst_35 = arith.constant dense<0.000000e+00> : vector<16x128xf32>
    %110 = tpu.matmul %109, %108, %cst_35 {dimension_numbers = #tpu.dot_dimension_numbers<[1], [0], [0], [1], [0, 0, 1, 1], [], []>} : vector<16x128xbf16>, vector<128x128xbf16>, vector<16x128xf32> -> vector<16x128xf32>
    %c48 = arith.constant 48 : index
    %c0_36 = arith.constant 0 : index
    %111 = vector.load %arg12[%c48, %c0_36] : memref<96x128xf32, #tpu.memory_space<vmem>>, vector<16x128xf32>
    tpu.vector_store %arg12[%c48, %c0_36], %110 {strides = array<i32>} : memref<96x128xf32, #tpu.memory_space<vmem>>, vector<16x128xf32>,
    %112 = vector.extract_strided_slice %22 {offsets = [0, 4], sizes = [128, 2], strides = [1, 1]} : vector<128x6xf32> to vector<128x2xf32>
    %113 = vector.extract_strided_slice %15 {offsets = [4, 0], sizes = [2, 128], strides = [1, 1]} : vector<6x128xf32> to vector<2x128xf32>
    %cst_37 = arith.constant dense<0.000000e+00> : vector<128x128xf32>
    %114 = tpu.matmul %112, %113, %cst_37 {dimension_numbers = #tpu.dot_dimension_numbers<[1], [0], [0], [1], [0, 0, 1, 1], [], []>} : vector<128x2xf32>, vector<2x128xf32>, vector<128x128xf32> -> vector<128x128xf32>
    %cst_38 = arith.constant dense<0xFF800000> : vector<128xf32>
    %115 = vector.multi_reduction <maximumf>, %114, %cst_38 [1] : vector<128x128xf32> to vector<128xf32>
    %116 = vector.shape_cast %115 : vector<128xf32> to vector<128x1xf32>
    %117 = vector.broadcast %116 : vector<128x1xf32> to vector<128x128xf32>
    %118 = arith.subf %114, %117 : vector<128x128xf32>
    %119 = math.exp %118 : vector<128x128xf32>
    %cst_39 = arith.constant dense<0.000000e+00> : vector<128xf32>
    %120 = vector.multi_reduction <add>, %119, %cst_39 [1] : vector<128x128xf32> to vector<128xf32>
    %121 = vector.shape_cast %120 : vector<128xf32> to vector<128x1xf32>
    %122 = tpu.reciprocal %121 {approx = true} : vector<128x1xf32> -> vector<128x1xf32>
    %123 = vector.broadcast %3 : f32 to vector<128x1xf32>
    %124 = arith.mulf %122, %123 : vector<128x1xf32>
    %125 = vector.broadcast %124 : vector<128x1xf32> to vector<128x128xf32>
    %126 = arith.mulf %119, %125 : vector<128x128xf32>
    %c2 = arith.constant 2 : index
    %c0_40 = arith.constant 0 : index
    %c0_41 = arith.constant 0 : index
    %127 = vector.load %arg7[%c2, %c0_40, %c0_41] : memref<3x128x128xf32, #tpu.memory_space<vmem>>, vector<1x128x128xf32>
    %128 = vector.shape_cast %127 : vector<1x128x128xf32> to vector<128x128xf32>
    %129 = arith.addf %126, %128 : vector<128x128xf32>
    %130 = vector.extract_strided_slice %22 {offsets = [0, 4], sizes = [128, 1], strides = [1, 1]} : vector<128x6xf32> to vector<128x1xf32>
    %131 = vector.extract_strided_slice %15 {offsets = [4, 0], sizes = [1, 128], strides = [1, 1]} : vector<6x128xf32> to vector<1x128xf32>
    %132 = vector.broadcast %130 : vector<128x1xf32> to vector<128x128xf32>
    %133 = vector.broadcast %131 : vector<1x128xf32> to vector<128x128xf32>
    %134 = arith.subf %132, %133 : vector<128x128xf32>
    %135 = math.tanh %134 : vector<128x128xf32>
    %136 = vector.broadcast %2 : f32 to vector<128x128xf32>
    %137 = arith.mulf %135, %136 : vector<128x128xf32>
    %138 = arith.addf %129, %137 : vector<128x128xf32>
    %139 = arith.truncf %138 : vector<128x128xf32> to vector<128x128xbf16>
    %140 = vector.extract_strided_slice %23 {offsets = [64, 0], sizes = [16, 128], strides = [1, 1]} : vector<96x128xbf16> to vector<16x128xbf16>
    %cst_42 = arith.constant dense<0.000000e+00> : vector<16x128xf32>
    %141 = tpu.matmul %140, %139, %cst_42 {dimension_numbers = #tpu.dot_dimension_numbers<[1], [0], [0], [1], [0, 0, 1, 1], [], []>} : vector<16x128xbf16>, vector<128x128xbf16>, vector<16x128xf32> -> vector<16x128xf32>
    %c64 = arith.constant 64 : index
    %c0_43 = arith.constant 0 : index
    %142 = vector.load %arg12[%c64, %c0_43] : memref<96x128xf32, #tpu.memory_space<vmem>>, vector<16x128xf32>
    tpu.vector_store %arg12[%c64, %c0_43], %141 {strides = array<i32>} : memref<96x128xf32, #tpu.memory_space<vmem>>, vector<16x128xf32>,
    %143 = vector.extract_strided_slice %22 {offsets = [0, 5], sizes = [128, 1], strides = [1, 1]} : vector<128x6xf32> to vector<128x1xf32>
    %144 = vector.extract_strided_slice %15 {offsets = [5, 0], sizes = [1, 128], strides = [1, 1]} : vector<6x128xf32> to vector<1x128xf32>
    %145 = vector.broadcast %143 : vector<128x1xf32> to vector<128x128xf32>
    %146 = vector.broadcast %144 : vector<1x128xf32> to vector<128x128xf32>
    %147 = arith.subf %145, %146 : vector<128x128xf32>
    %148 = math.tanh %147 : vector<128x128xf32>
    %149 = vector.broadcast %2 : f32 to vector<128x128xf32>
    %150 = arith.mulf %148, %149 : vector<128x128xf32>
    %151 = arith.addf %129, %150 : vector<128x128xf32>
    %152 = arith.truncf %151 : vector<128x128xf32> to vector<128x128xbf16>
    %153 = vector.extract_strided_slice %23 {offsets = [80, 0], sizes = [16, 128], strides = [1, 1]} : vector<96x128xbf16> to vector<16x128xbf16>
    %cst_44 = arith.constant dense<0.000000e+00> : vector<16x128xf32>
    %154 = tpu.matmul %153, %152, %cst_44 {dimension_numbers = #tpu.dot_dimension_numbers<[1], [0], [0], [1], [0, 0, 1, 1], [], []>} : vector<16x128xbf16>, vector<128x128xbf16>, vector<16x128xf32> -> vector<16x128xf32>
    %c80 = arith.constant 80 : index
    %c0_45 = arith.constant 0 : index
    %155 = vector.load %arg12[%c80, %c0_45] : memref<96x128xf32, #tpu.memory_space<vmem>>, vector<16x128xf32>
    tpu.vector_store %arg12[%c80, %c0_45], %154 {strides = array<i32>} : memref<96x128xf32, #tpu.memory_space<vmem>>, vector<16x128xf32>,
    %c0_46 = arith.constant 0 : index
    %c0_47 = arith.constant 0 : index
    %156 = vector.load %arg9[%c0_46, %c0_47] : memref<128x96xbf16, #tpu.memory_space<vmem>>, vector<128x96xbf16>
    %c0_48 = arith.constant 0 : index
    %c0_49 = arith.constant 0 : index
    %157 = vector.load %arg12[%c0_48, %c0_49] : memref<96x128xf32, #tpu.memory_space<vmem>>, vector<96x128xf32>
    %158 = arith.truncf %157 : vector<96x128xf32> to vector<96x128xbf16>
    %cst_50 = arith.constant dense<0.000000e+00> : vector<128x128xf32>
    %159 = tpu.matmul %156, %158, %cst_50 {dimension_numbers = #tpu.dot_dimension_numbers<[1], [0], [0], [1], [0, 0, 1, 1], [], []>} : vector<128x96xbf16>, vector<96x128xbf16>, vector<128x128xf32> -> vector<128x128xf32>
    %160 = arith.addf %159, %13 : vector<128x128xf32>
    %cst_51 = arith.constant 0.000000e+00 : f32
    %161 = vector.broadcast %cst_51 : f32 to vector<128x128xf32>
    %162 = arith.maximumf %160, %161 : vector<128x128xf32>
    %c0_52 = arith.constant 0 : index
    %c0_53 = arith.constant 0 : index
    %163 = vector.load %arg10[%c0_52, %c0_53] : memref<128x128xbf16, #tpu.memory_space<vmem>>, vector<128x128xbf16>
    %164 = arith.truncf %162 : vector<128x128xf32> to vector<128x128xbf16>
    %cst_54 = arith.constant dense<0.000000e+00> : vector<128x128xf32>
    %165 = tpu.matmul %163, %164, %cst_54 {dimension_numbers = #tpu.dot_dimension_numbers<[1], [0], [0], [1], [0, 0, 1, 1], [], []>} : vector<128x128xbf16>, vector<128x128xbf16>, vector<128x128xf32> -> vector<128x128xf32>
    %166 = arith.addf %165, %14 : vector<128x128xf32>
    %cst_55 = arith.constant 0.000000e+00 : f32
    %167 = vector.broadcast %cst_55 : f32 to vector<128x128xf32>
    %168 = arith.maximumf %166, %167 : vector<128x128xf32>
    %c0_56 = arith.constant 0 : index
    %c0_57 = arith.constant 0 : index
    %c0_58 = arith.constant 0 : index
    %169 = vector.load %arg11[%c0_56, %c0_57, %c0_58] : memref<1x128x128xf32, #tpu.memory_space<vmem>>, vector<1x128x128xf32>
    %170 = vector.shape_cast %169 : vector<1x128x128xf32> to vector<128x128xf32>
    %171 = vector.shape_cast %168 : vector<128x128xf32> to vector<1x128x128xf32>
    tpu.vector_store %arg11[%c0_56, %c0_57, %c0_58], %171 {strides = array<i32>} : memref<1x128x128xf32, #tpu.memory_space<vmem>>, vector<1x128x128xf32>,
    return
  }
  func.func @transform_0(%arg0: i32) -> (i32, i32, i32) {
    %c0_i32 = arith.constant 0 : i32
    %c0_i32_0 = arith.constant 0 : i32
    %c0_i32_1 = arith.constant 0 : i32
    return %arg0, %c0_i32, %c0_i32_0 : i32, i32, i32
  }
  func.func @transform_1(%arg0: i32) -> (i32, i32, i32) {
    %c0_i32 = arith.constant 0 : i32
    %c0_i32_0 = arith.constant 0 : i32
    %c0_i32_1 = arith.constant 0 : i32
    return %arg0, %c0_i32, %c0_i32_0 : i32, i32, i32
  }
  func.func @transform_2(%arg0: i32) -> (i32, i32) {
    %c0_i32 = arith.constant 0 : i32
    %c0_i32_0 = arith.constant 0 : i32
    %c0_i32_1 = arith.constant 0 : i32
    return %c0_i32, %c0_i32_0 : i32, i32
  }
  func.func @transform_3(%arg0: i32) -> (i32, i32) {
    %c0_i32 = arith.constant 0 : i32
    %c0_i32_0 = arith.constant 0 : i32
    %c0_i32_1 = arith.constant 0 : i32
    return %c0_i32, %c0_i32_0 : i32, i32
  }
  func.func @transform_4(%arg0: i32) -> (i32, i32) {
    %c0_i32 = arith.constant 0 : i32
    %c0_i32_0 = arith.constant 0 : i32
    %c0_i32_1 = arith.constant 0 : i32
    return %c0_i32, %c0_i32_0 : i32, i32
  }
  func.func @transform_5(%arg0: i32) -> (i32, i32) {
    %c0_i32 = arith.constant 0 : i32
    %c0_i32_0 = arith.constant 0 : i32
    %c0_i32_1 = arith.constant 0 : i32
    return %c0_i32, %c0_i32_0 : i32, i32
  }
  func.func @transform_6(%arg0: i32) -> (i32, i32, i32) {
    %c0_i32 = arith.constant 0 : i32
    %c0_i32_0 = arith.constant 0 : i32
    %c0_i32_1 = arith.constant 0 : i32
    %c0_i32_2 = arith.constant 0 : i32
    return %c0_i32, %c0_i32_0, %c0_i32_1 : i32, i32, i32
  }
  func.func @transform_7(%arg0: i32) -> i32 {
    %c0_i32 = arith.constant 0 : i32
    %c0_i32_0 = arith.constant 0 : i32
    return %c0_i32 : i32
  }
  func.func @transform_8(%arg0: i32) -> (i32, i32) {
    %c0_i32 = arith.constant 0 : i32
    %c0_i32_0 = arith.constant 0 : i32
    %c0_i32_1 = arith.constant 0 : i32
    return %c0_i32, %c0_i32_0 : i32, i32
  }
  func.func @transform_9(%arg0: i32) -> (i32, i32) {
    %c0_i32 = arith.constant 0 : i32
    %c0_i32_0 = arith.constant 0 : i32
    %c0_i32_1 = arith.constant 0 : i32
    return %c0_i32, %c0_i32_0 : i32, i32
  }
  func.func @transform_10(%arg0: i32) -> (i32, i32, i32) {
    %c0_i32 = arith.constant 0 : i32
    %c0_i32_0 = arith.constant 0 : i32
    %c0_i32_1 = arith.constant 0 : i32
    return %arg0, %c0_i32, %c0_i32_0 : i32, i32, i32
  }
}

</mosaic_0001>

<bundles_post_ra>
// kernel: dgblock_forward.1
= control target key start
LH: loop header
LB: loop body
LE: loop exit
PB: predicated region body
PF: predicated region fallthrough
CT: control target
= control target key end

     0   :  { %15 = vsyncpa [#allocation5], 0  ;;  %s6841_s0 = inlined_call_operand.vmem [shape: f32[2,64,128], index: 0, kind: input, shape index: {}]   ;;  %s6842_s1 = inlined_call_operand.vmem [shape: f32[2,128,64], index: 1, kind: input, shape index: {}]   ;;  %s6843_s2 = inlined_call_operand.vmem [shape: bf16[360,64], index: 2, kind: input, shape index: {}]   ;;  %s6844_s3 = inlined_call_operand.vmem [shape: f32[360,1], index: 3, kind: input, shape index: {}]   ;;  %s6845_s4 = inlined_call_operand.vmem [shape: f32[64,6], index: 4, kind: input, shape index: {}]   ;;  %s6846_s5 = inlined_call_operand.vmem [shape: f32[1,6], index: 5, kind: input, shape index: {}]   ;;  %s6847_s6 = inlined_call_operand.vmem [shape: f32[3,128,128], index: 6, kind: input, shape index: {}]   ;;  %s6848_s7 = inlined_call_operand.vmem [shape: f32[2], index: 7, kind: input, shape index: {}]   ;;  %s6849_s8 = inlined_call_operand.vmem [shape: bf16[128,96], index: 8, kind: input, shape index: {}]   ;;  %s6850_s9 = inlined_call_operand.vmem [shape: bf16[128,128], index: 9, kind: input, shape index: {}]   ;;  %s6851_s10 = inlined_call_operand.hbm [shape: f32[2,128,128], index: 10, kind: output, shape index: {}]  }
   0x1   :  { %16 = vsyncpa [#allocation4], 0 }
   0x2   :  { %18 = vsyncpa [#allocation4 + $0x1], 0  ;;  %s4513_s13 = smov 0   ;;  %s4515_s14 = smov 0  }
   0x3   :  { %s4517_s15 = smov 0   ;;  %s4519_s16 = smov 0  }
   0x4 LB: > { %s4534_s17 = sadd.s32 4294967295, %s4445_s16   ;;  %s3528_s18 = sadd.s32 4294967294, %s4445_s16   ;;  %s4445_s16 = sphi %s4519_s16, %s7041_s16   ;;  %s4441_s15 = sphi %s4517_s15, %s7040_s15   ;;  %s4437_s14 = sphi %s4515_s14, %s7039_s14   ;;  %s4433_s13 = sphi %s4513_s13, %s7038_s13  }
   0x5   : > { %s4538_s19 = sadd.s32 1, %s4445_s16   ;;  %s251_s20 = sadd.s32 1, %s4441_s15 }
   0x6   : > { %s248_s21 = ssub.s32 %s4445_s16, %s4538_s19  ;;  %p261_p0 = scmp.ne.s32.totalorder %s4441_s15, %s4437_s14 }
   0x7   : > { %p249_p1 = scmp.eq.s32.totalorder %s248_s21, 0  ;;  %p262_p2 = scmp.eq.s32.totalorder %s4534_s17, 1 }
   0x8   : > { %p267_p3 = scmp.ne.s32.totalorder %s4437_s14, %s4433_s13  ;;  %p268_p4 = scmp.eq.s32.totalorder %s3528_s18, 1 }
   0x9   : > { %s4549_s22 = scalar_select %p249_p1, %s4441_s15, %s251_s20  }
   0xa   : > { %p4551_p5 = por %p262_p2, %p261_p0  ;;  %p4555_p6 = por %p268_p4, %p267_p3 }
   0xb   : > { %p3529_p7 = scmp.ge.s32.totalorder %s4445_s16, 1  ;;  %p275_p8 = scmp.lt.s32.totalorder %s4445_s16, 3 }
   0xc   : > { %p3886_p9 = scmp.eq.s32.totalorder %s4534_s17, 0  ;;  %s302_s27 = sshll.u32 %s6848_s7, 4  ;;  %s303_s27 = int_to_ptr.vmem [resolvable:$true] %s302_s27 }
   0xd   : > { %p276_p10 = pnand %p3529_p7, %p275_p8  ;;  %s4447_s28 = smov [#allocation3]  }
   0xf   : > { %p3878_p11 = pneg %p276_p10  ;;  %337 = sbr.rel (%p276_p10) target bundleno = 2629 (0xa45), region = 60 }
  0x11   : > { %p3879_p12 = pnand %p3886_p9, %p3878_p11 }
  0x13   : > { %3881 = dma.vmem_to_smem (!%p3879_p12), %s303_s27, 16, %s4447_s28, [#allocation5]  }
  0x14   : > { %4424 = dma.done.wait (%p3886_p9), [#allocation5], 16  }
  0x15   : > { %4426 = vsyncadd (%p3886_p9), [#allocation5], 4294967280 }
  0x16   : > { %344 = sfence }
  0x17   : > { %v1063_v0 = vld [vmem:[%s6845_s4 + $0x38] sm:$0xff]  ;;  %v1062_v1 = vld [vmem:[%s6845_s4 + $0x30] sm:$0xff]  ;;  %p382_p13 = scmp.lt.s32.totalorder %s4534_s17, 1  ;;  %v1061_v2 = vld [vmem:[%s6845_s4 + $0x28] sm:$0xff]  ;;  %v6852_v15 = vmov 0   ;;  %vm835_vm0 = vcmask 523264  }
  0x18   : > { %1124 = vmatpush.msra.mxu1 %v1063_v0  ;;  %v1060_v3 = vld [vmem:[%s6845_s4 + $0x20] sm:$0xff]  ;;  %v1059_v4 = vld [vmem:[%s6845_s4 + $0x18] sm:$0xff]  ;;  %v1058_v10 = vld [vmem:[%s6845_s4 + $0x10] sm:$0xff]  ;;  %3932 = vset.pattern.permute.xlu0 %v6852_v15  ;;  %vm1242_vm1 = vcmask 1041408   ;;  %vm1193_vm2 = vcmask 15360   ;;  %s4450_s26 = smov 126  }
  0x19   : > { %s383_s21 = scalar_select %p382_p13, %s4534_s17, 1  ;;  %v1057_v12 = vld [vmem:[%s6845_s4 + $0x8] sm:$0xff]  ;;  %3933 = vset.pattern.permute.xlu1 %v6852_v15  ;;  %v1056_v16 = vld [vmem:[%s6845_s4] sm:$0xff]  ;;  %3934 = vset.pattern.permute.xlu2 %v6852_v15  ;;  %v447_v28 = vld [vmem:[%s6843_s2 + $0xb0] sm:$0xf]  ;;  %vm3183_vm3 = vcmask 785408  }
  0x1a   : > { %1125 = vmatpush.msra.mxu1 %v1062_v1  ;;  %v496_v21 = vld [vmem:[%s6844_s3 + $0x160] sm:$0xff]  ;;  %v3850_v23 = vld [vmem:[%s6843_s2 + $0xa8] sm:$0xff]  ;;  %v811_v29 = vunpack.c.l.b16 %v447_v28  ;;  %v6854_v1 = vmov 1   ;;  %s401_s20 = sld [smem:[#allocation3]]  ;;  %s4452_s25 = smov 124  }
  0x1b   : > { %s3827_s27 = sshll.u32 %s383_s21, 6  ;;  %s3828_s18 = sshll.u32 %s383_s21, 7  ;;  %719 = vperm.xlu0 %3932, %v496_v21   ;;  %v3829_v25 = vld [vmem:[%s6843_s2] sm:$0xff] }
  0x1c   : > { %1126 = vmatpush.msra.mxu1 %v1061_v2  ;;  %s386_s30 = scalar_lea.vmem %s6841_s0, %s3827_s27  ;;  %s4591_s28 = scalar_lea.vmem %s6842_s1, %s3828_s18  ;;  %v452_v26 = vld [vmem:[%s6844_s3] sm:$0xff]  ;;  %v834_v30 = vpack.c.b16 %v811_v29, %v811_v29 }
  0x1d   : > { %v399_v5 = vld [vmem:[%s386_s30 + $0x30] sm:$0xff]  ;;  %v400_v6 = vld [vmem:[%s386_s30 + $0x38] sm:$0xff]  ;;  %v397_v7 = vld [vmem:[%s386_s30 + $0x20] sm:$0xff]  ;;  %s3539_s18 = sld [smem:[#allocation3 + $0x1]]  ;;  %s379_s29 = sand.u32 1, %s4437_s14  }
  0x1e   : > { %1127 = vmatpush.msra.mxu1 %v1060_v3  ;;  %v451_v8 = vpack.c.bf16 %v400_v6, %v399_v5  ;;  %v398_v9 = vld [vmem:[%s386_s30 + $0x28] sm:$0xff]  ;;  %v395_v13 = vld [vmem:[%s386_s30 + $0x10] sm:$0xff]  ;;  %v396_v14 = vld [vmem:[%s386_s30 + $0x18] sm:$0xff]  ;;  %s3534_s11 = sshll.u32 %s379_s29, 7  ;;  %s3867_s12 = sshll.u32 %s4534_s17, 7 }
  0x1f   : > { %v450_v11 = vpack.c.bf16 %v398_v9, %v397_v7  ;;  %v1040_v17 = vld [vmem:[%s4591_s28] sm:$0xff]  ;;  %v449_v18 = vpack.c.bf16 %v396_v14, %v395_v13  ;;  %v394_v20 = vld [vmem:[%s386_s30 + $0x8] sm:$0xff]  ;;  %v1042_v27 = vld [vmem:[%s4591_s28 + $0x10] sm:$0xff]  ;;  %s6787_s21 = scalar_lea.vmem [#allocation6], %s3534_s11  ;;  %s3427_s17 = scalar_lea.sflag [#allocation4], %s379_s29 }
  0x20   : > { %3868 = vmatpush.bf16.msra.mxu2 %v451_v8  ;;  %1128 = vmatpush.msra.mxu1 %v1059_v4  ;;  %v393_v19 = vld [vmem:[%s386_s30] sm:$0xff]  ;;  %v1041_v24 = vld [vmem:[%s4591_s28 + $0x8] sm:$0xff]  ;;  %v1043_v31 = vld [vmem:[%s4591_s28 + $0x18] sm:$0xff] }
  0x21   : > { %909 = vmatpush.bf16.msra.mxu0 %v451_v8  ;;  %v448_v22 = vpack.c.bf16 %v394_v20, %v393_v19  ;;  %v1044_v32 = vld [vmem:[%s4591_s28 + $0x20] sm:$0xff]  ;;  %v1045_v33 = vld [vmem:[%s4591_s28 + $0x28] sm:$0xff]  ;;  %v1046_v34 = vld [vmem:[%s4591_s28 + $0x30] sm:$0xff] }
  0x22   : > { %1129 = vmatpush.msra.mxu1 %v1058_v10  ;;  %v1047_v35 = vld [vmem:[%s4591_s28 + $0x38] sm:$0xff]  ;;  %v1048_v36 = vld [vmem:[%s4591_s28 + $0x40] sm:$0xff]  ;;  %v1049_v37 = vld [vmem:[%s4591_s28 + $0x48] sm:$0xff] }
  0x23   : > { %499 = vperm.xlu0 %3932, %v452_v26   ;;  %v1050_v38 = vld [vmem:[%s4591_s28 + $0x50] sm:$0xff]  ;;  %v1051_v39 = vld [vmem:[%s4591_s28 + $0x58] sm:$0xff]  ;;  %v1052_v40 = vld [vmem:[%s4591_s28 + $0x60] sm:$0xff] }
  0x24   : > { %3869 = vmatpush.bf16.msra.mxu2 %v450_v11  ;;  %1130 = vmatpush.msra.mxu1 %v1057_v12  ;;  %v1053_v41 = vld [vmem:[%s4591_s28 + $0x68] sm:$0xff]  ;;  %v1054_v42 = vld [vmem:[%s4591_s28 + $0x70] sm:$0xff]  ;;  %v1055_v43 = vld [vmem:[%s4591_s28 + $0x78] sm:$0xff]  ;;  %s3438_s28 = scalar_lea.hbm %s6851_s10, %s3867_s12 }
  0x25   : > { %910 = vmatpush.bf16.msra.mxu0 %v450_v11  ;;  %v4655_v44 = vld [vmem:[%s6846_s5] ss:$0 sm:$0xff] }
  0x26   : > { %1131 = vmatpush.msra.mxu1 %v1056_v16 }
  0x27   : > { %3651 = vmatmul.msk.f32.vlgmr.msra.gmra.mxu1 %vm835_vm0, %v1040_v17 }
  0x28   : > { %3870 = vmatpush.bf16.msra.mxu2 %v449_v18 }
  0x29   : > { %911 = vmatpush.bf16.msra.mxu0 %v449_v18 }
  0x2c   : > { %3871 = vmatpush.bf16.msra.mxu2 %v448_v22 }
  0x2d   : > { %912 = vmatpush.bf16.msra.mxu0 %v448_v22 }
  0x2f   : > { %3649 = vmatmul.msk.bf16.vlgmr.msra.gmra.mxu2 %vm835_vm0, %v3850_v23  ;;  %3652 = vmatmul.msk.f32.gmra.mxu1 %vm835_vm0, %v1041_v24 }
  0x30   : > { %3628 = vmatmul.msk.bf16.vlgmr.msra.gmra.mxu0 %vm835_vm0, %v3829_v25 }
  0x37   : > { %3653 = vmatmul.msk.f32.gmra.mxu1 %vm835_vm0, %v1042_v27 }
  0x3f   : > { %3650 = vmatmul.msk.bf16.gmra.mxu2 %vm835_vm0, %v834_v30  ;;  %3654 = vmatmul.msk.f32.gmra.mxu1 %vm835_vm0, %v1043_v31 }
  0x47   : > { %3655 = vmatmul.msk.f32.gmra.mxu1 %vm835_vm0, %v1044_v32 }
  0x4f   : > { %3656 = vmatmul.msk.f32.gmra.mxu1 %vm835_vm0, %v1045_v33 }
  0x57   : > { %3657 = vmatmul.msk.f32.gmra.mxu1 %vm835_vm0, %v1046_v34 }
  0x5f   : > { %3658 = vmatmul.msk.f32.gmra.mxu1 %vm835_vm0, %v1047_v35 }
  0x67   : > { %3659 = vmatmul.msk.f32.gmra.mxu1 %vm835_vm0, %v1048_v36 }
  0x6f   : > { %3660 = vmatmul.msk.f32.gmra.mxu1 %vm835_vm0, %v1049_v37 }
  0x77   : > { %3661 = vmatmul.msk.f32.gmra.mxu1 %vm835_vm0, %v1050_v38 }
  0x7f   : > { %3662 = vmatmul.msk.f32.gmra.mxu1 %vm835_vm0, %v1051_v39 }
  0x87   : > { %3663 = vmatmul.msk.f32.gmra.mxu1 %vm835_vm0, %v1052_v40 }
  0x8d   : > { %v720_v55 = vpop.permute.xlu0 %719 }
  0x8f   : > { %3664 = vmatmul.msk.f32.gmra.mxu1 %vm835_vm0, %v1053_v41 }
  0x95   : > { %v4830_v40 = vpop.permute.xlu0 %499 }
  0x96   : > { %6917 = vst [vmem:[#allocation27_spill] sm:$0xff] %v4830_v40 }
  0x97   : > { %3665 = vmatmul.msk.f32.gmra.mxu1 %vm835_vm0, %v1054_v42 }
  0x9f   : > { %3666 = vmatmul.msk.f32.gmra.mxu1 %vm835_vm0, %v1055_v43 }
  0xa4   : > { %v1133_v45 = vpop.f32.mrf.mxu1 }
  0xa5   : > { %v4658_v46 = vadd.f32 %v4655_v44, %v1133_v45 }
  0xa7   : > { %6899 = vst [vmem:[#allocation9_spill] sm:$0xff] %v4658_v46  ;;  %1505 = vperm.xlu0 %3932, %v4658_v46  }
  0xac   : > { %v1136_v47 = vpop.f32.mrf.mxu1 }
  0xad   : > { %v4662_v48 = vadd.f32 %v4655_v44, %v1136_v47 }
  0xaf   : > { %6900 = vst [vmem:[#allocation10_spill] sm:$0xff] %v4662_v48  ;;  %1509 = vperm.xlu1 %3933, %v4662_v48  }
  0xb2   : > { %v4665_v49 = vpop.f32.mrf.mxu2 }
  0xb3   : > { %6901 = vst [vmem:[#allocation11_spill] sm:$0xff] %v4665_v49  ;;  %v6926_v49 = vmov 1  }
  0xb4   : > { %v1139_v50 = vpop.f32.mrf.mxu1 }
  0xb5   : > { %v4668_v51 = vadd.f32 %v4655_v44, %v1139_v50 }
  0xb7   : > { %1513 = vperm.xlu1 %3933, %v4668_v51  }
  0xba   : > { %v4671_v52 = vpop.f32.mrf.mxu2 }
  0xbb   : > { %6902 = vst [vmem:[#allocation12_spill] sm:$0xff] %v4671_v52 }
  0xbc   : > { %v1142_v53 = vpop.f32.mrf.mxu1 }
  0xbd   : > { %v4674_v54 = vadd.f32 %v4655_v44, %v1142_v53 }
  0xbf   : > { %6903 = vst [vmem:[#allocation13_spill] sm:$0xff] %v4674_v54  ;;  %1517 = vperm.xlu2 %3934, %v4674_v54  }
  0xc2   : > { %v1024_v56 = vpop.f32.mrf.mxu2 }
  0xc3   : > { %v4677_v57 = vadd.f32 %v1024_v56, %v720_v55 }
  0xc4   : > { %v1145_v58 = vpop.f32.mrf.mxu1 }
  0xc5   : > { %3667 = vmatpush.msk.msrb.mxu2 %vm1242_vm1, %v4677_v57  ;;  %v4682_v59 = vadd.f32 %v4655_v44, %v1145_v58 }
  0xc6   : > { %3668 = vmatmul.msk.f32.vlgmr.msrb.gmra.mxu2 %vm1193_vm2, %v4658_v46 }
  0xc7   : > { %6904 = vst [vmem:[#allocation14_spill] sm:$0xff] %v4682_v59  ;;  %1521 = vperm.xlu1 %3933, %v4682_v59  }
  0xca   : > { %v1026_v60 = vpop.f32.mrf.mxu2 }
  0xcc   : > { %v1148_v61 = vpop.f32.mrf.mxu1 }
  0xcd   : > { %v4688_v62 = vadd.f32 %v4655_v44, %v1148_v61 }
  0xce   : > { %3669 = vmatmul.msk.f32.gmra.mxu2 %vm1193_vm2, %v4662_v48 }
  0xcf   : > { %1525 = vperm.xlu1 %3933, %v4688_v62  }
  0xd4   : > { %v1151_v63 = vpop.f32.mrf.mxu1 }
  0xd5   : > { %v4694_v0 = vadd.f32 %v4655_v44, %v1151_v63 }
  0xd6   : > { %3670 = vmatmul.msk.f32.gmra.mxu2 %vm1193_vm2, %v4668_v51 }
  0xd7   : > { %6905 = vst [vmem:[#allocation15_spill] sm:$0xff] %v4694_v0  ;;  %1529 = vperm.xlu2 %3934, %v4694_v0   ;;  %3935 = vset.pattern.permute.xlu1 %v6854_v1 }
  0xd8   : > { %1689 = vperm.xlu1 %3935, %v4694_v0  }
  0xdc   : > { %v1154_v2 = vpop.f32.mrf.mxu1 }
  0xdd   : > { %v4702_v3 = vadd.f32 %v4655_v44, %v1154_v2 }
  0xde   : > { %3671 = vmatmul.msk.f32.gmra.mxu2 %vm1193_vm2, %v4674_v54 }
  0xdf   : > { %6906 = vst [vmem:[#allocation16_spill] sm:$0xff] %v4702_v3  ;;  %1533 = vperm.xlu2 %3934, %v4702_v3  }
  0xe0   : > { %3937 = vset.pattern.permute.xlu1 %v6852_v15 }
  0xe4   : > { %v1157_v4 = vpop.f32.mrf.mxu1 }
  0xe5   : > { %v4709_v5 = vadd.f32 %v4655_v44, %v1157_v4 }
  0xe6   : > { %3672 = vmatmul.msk.f32.gmra.mxu2 %vm1193_vm2, %v4682_v59 }
  0xe7   : > { %6907 = vst [vmem:[#allocation17_spill] sm:$0xff] %v4709_v5  ;;  %3936 = vset.pattern.permute.xlu2 %v6854_v1  ;;  %1537 = vperm.xlu1 %3937, %v4709_v5  }
  0xe8   : > { %1693 = vperm.xlu2 %3936, %v4702_v3  }
  0xec   : > { %v1160_v6 = vpop.f32.mrf.mxu1 }
  0xed   : > { %v4717_v7 = vadd.f32 %v4655_v44, %v1160_v6 }
  0xee   : > { %3673 = vmatmul.msk.f32.gmra.mxu2 %vm1193_vm2, %v4688_v62 }
  0xef   : > { %6908 = vst [vmem:[#allocation18_spill] sm:$0xff] %v4717_v7  ;;  %1541 = vperm.xlu0 %3932, %v4717_v7   ;;  %3939 = vset.pattern.permute.xlu1 %v6854_v1 }
  0xf0   : > { %1697 = vperm.xlu2 %3936, %v4709_v5  }
  0xf4   : > { %v1163_v8 = vpop.f32.mrf.mxu1 }
  0xf5   : > { %v4725_v9 = vadd.f32 %v4655_v44, %v1163_v8 }
  0xf6   : > { %3674 = vmatmul.msk.f32.gmra.mxu2 %vm1193_vm2, %v4694_v0 }
  0xf7   : > { %6909 = vst [vmem:[#allocation19_spill] sm:$0xff] %v4725_v9  ;;  %1705 = vperm.xlu1 %3939, %v4725_v9  }
  0xf8   : > { %3938 = vset.pattern.permute.xlu2 %v6852_v15 }
  0xf9   : > { %1545 = vperm.xlu2 %3938, %v4725_v9  }
  0xfc   : > { %v1166_v10 = vpop.f32.mrf.mxu1 }
  0xfd   : > { %v4733_v11 = vadd.f32 %v4655_v44, %v1166_v10 }
  0xfe   : > { %3675 = vmatmul.msk.f32.gmra.mxu2 %vm1193_vm2, %v4702_v3 }
  0xff   : > { %6910 = vst [vmem:[#allocation20_spill] sm:$0xff] %v4733_v11  ;;  %1709 = vperm.xlu1 %3939, %v4733_v11  }
 0x101   : > { %1549 = vperm.xlu2 %3938, %v4733_v11  }
 0x104   : > { %v1169_v12 = vpop.f32.mrf.mxu1 }
 0x105   : > { %v4740_v13 = vadd.f32 %v4655_v44, %v1169_v12 }
 0x106   : > { %3676 = vmatmul.msk.f32.gmra.mxu2 %vm1193_vm2, %v4709_v5 }
 0x107   : > { %6911 = vst [vmem:[#allocation21_spill] sm:$0xff] %v4740_v13  ;;  %1553 = vperm.xlu0 %3932, %v4740_v13  }
 0x10c   : > { %v1172_v14 = vpop.f32.mrf.mxu1 }
 0x10d   : > { %v4746_v16 = vadd.f32 %v4655_v44, %v1172_v14 }
 0x10e   : > { %3677 = vmatmul.msk.f32.gmra.mxu2 %vm1193_vm2, %v4717_v7 }
 0x10f   : > { %6912 = vst [vmem:[#allocation22_spill] sm:$0xff] %v4746_v16  ;;  %1557 = vperm.xlu2 %3938, %v4746_v16   ;;  %1717 = vperm.xlu1 %3939, %v4746_v16  }
 0x110   : > { %3940 = vset.pattern.permute.xlu0 %v6854_v1 }
 0x111   : > { %1713 = vperm.xlu0 %3940, %v4740_v13  }
 0x114   : > { %v1175_v17 = vpop.f32.mrf.mxu1 }
 0x115   : > { %v4755_v18 = vadd.f32 %v4655_v44, %v1175_v17  ;;  %v453_v17 = vld [vmem:[%s6844_s3 + $0x8] sm:$0xff] }
 0x116   : > { %3678 = vmatmul.msk.f32.gmra.mxu2 %vm1193_vm2, %v4725_v9 }
 0x117   : > { %6913 = vst [vmem:[#allocation23_spill] sm:$0xff] %v4755_v18  ;;  %3942 = vset.pattern.permute.xlu2 %v6854_v1  ;;  %3943 = vset.pattern.permute.xlu1 %v6852_v15 }
 0x118   : > { %1721 = vperm.xlu2 %3942, %v4755_v18  }
 0x119   : > { %3941 = vset.pattern.permute.xlu0 %v6852_v15  ;;  %v4803_v29 = vpop.permute.xlu2 %1517 }
 0x11a   : > { %1561 = vperm.xlu0 %3941, %v4755_v18  }
 0x11c   : > { %v1178_v19 = vpop.f32.mrf.mxu1 }
 0x11d   : > { %v4765_v20 = vadd.f32 %v4655_v44, %v1178_v19  ;;  %v4839_v44 = vpop.permute.xlu0 %1505 }
 0x11e   : > { %3679 = vmatmul.msk.f32.gmra.mxu2 %vm1193_vm2, %v4733_v11 }
 0x11f   : > { %6914 = vst [vmem:[#allocation24_spill] sm:$0xff] %v4765_v20  ;;  %1565 = vperm.xlu1 %3943, %v4765_v20  }
 0x121   : > { %v4811_v32 = vpop.permute.xlu1 %1509 }
 0x122   : > { %3944 = vset.pattern.permute.xlu0 %v6854_v1  ;;  %6915 = vst [vmem:[#allocation25_spill] sm:$0xff] %v4811_v32 }
 0x123   : > { %1725 = vperm.xlu0 %3944, %v4765_v20  }
 0x126   : > { %3680 = vmatmul.msk.f32.gmra.mxu2 %vm1193_vm2, %v4740_v13 }
 0x129   : > { %v4818_v35 = vpop.permute.xlu1 %1513 }
 0x12e   : > { %3681 = vmatmul.msk.f32.gmra.mxu2 %vm1193_vm2, %v4746_v16 }
 0x131   : > { %v4808_v31 = vpop.permute.xlu2 %1529 }
 0x136   : > { %3682 = vmatmul.msk.f32.gmra.mxu2 %vm1193_vm2, %v4755_v18 }
 0x139   : > { %v4816_v34 = vpop.permute.xlu2 %1533  ;;  %v4825_v38 = vpop.permute.xlu1 %1521 }
 0x13e   : > { %3683 = vmatmul.msk.f32.gmra.mxu2 %vm1193_vm2, %v4765_v20 }
 0x141   : > { %v4836_v43 = vpop.permute.xlu1 %1525 }
 0x142   : > { %v4823_v37 = vpop.permute.xlu2 %1693 }
 0x143   : > { %6916 = vst [vmem:[#allocation26_spill] sm:$0xff] %v4823_v37 }
 0x149   : > { %v4780_v21 = vpop.f32.mrf.mxu2 }
 0x14a   : > { %1311 = vmax.xlane.f32.xlu2 %v4780_v21  ;;  %v4832_v41 = vpop.permute.xlu2 %1697  ;;  %v4848_v53 = vpop.permute.xlu1 %1689 }
 0x14b   : > { %6918 = vst [vmem:[#allocation28_spill] sm:$0xff] %v4832_v41 }
 0x14c   : > { %6919 = vst [vmem:[#allocation29_spill] sm:$0xff] %v4848_v53 }
 0x151   : > { %v4783_v22 = vpop.f32.mrf.mxu2 }
 0x152   : > { %1313 = vmax.xlane.f32.xlu0 %v4783_v22 }
 0x153   : > { %v4843_v47 = vpop.permute.xlu2 %1545 }
 0x159   : > { %v4786_v23 = vpop.f32.mrf.mxu2  ;;  %v4855_v58 = vpop.permute.xlu1 %1537 }
 0x15a   : > { %1315 = vmax.xlane.f32.xlu2 %v4786_v23 }
 0x15b   : > { %v4857_v60 = vpop.permute.xlu2 %1549 }
 0x161   : > { %v4789_v24 = vpop.f32.mrf.mxu2  ;;  %v4846_v50 = vpop.permute.xlu0 %1541 }
 0x162   : > { %1317 = vmax.xlane.f32.xlu1 %v4789_v24 }
 0x169   : > { %v4792_v25 = vpop.f32.mrf.mxu2  ;;  %v4862_v63 = vpop.permute.xlu2 %1557 }
 0x16a   : > { %1319 = vmax.xlane.f32.xlu2 %v4792_v25  ;;  %v4864_v2 = vpop.permute.xlu1 %1705 }
 0x16b   : > { %6920 = vst [vmem:[#allocation30_spill] sm:$0xff] %v4864_v2 }
 0x171   : > { %v4795_v26 = vpop.f32.mrf.mxu2 }
 0x172   : > { %1321 = vmax.xlane.f32.xlu1 %v4795_v26  ;;  %v4869_v6 = vpop.permute.xlu1 %1709  ;;  %v4871_v8 = vpop.permute.xlu2 %1721 }
 0x173   : > { %6922 = vst [vmem:[#allocation32_spill] sm:$0xff] %v4869_v6 }
 0x174   : > { %6923 = vst [vmem:[#allocation33_spill] sm:$0xff] %v4871_v8 }
 0x179   : > { %v4798_v27 = vpop.f32.mrf.mxu2  ;;  %v4853_v56 = vpop.permute.xlu0 %1553 }
 0x17a   : > { %1323 = vmax.xlane.f32.xlu2 %v4798_v27 }
 0x181   : > { %v4801_v28 = vpop.f32.mrf.mxu2  ;;  %v4876_v12 = vpop.permute.xlu1 %1717 }
 0x182   : > { %1325 = vmax.xlane.f32.xlu1 %v4801_v28  ;;  %6924 = vst [vmem:[#allocation34_spill] sm:$0xff] %v4876_v12 }
 0x183   : > { %v4866_v4 = vpop.permute.xlu0 %1713 }
 0x184   : > { %6921 = vst [vmem:[#allocation31_spill] sm:$0xff] %v4866_v4 }
 0x189   : > { %v4806_v30 = vpop.f32.mrf.mxu2 }
 0x18a   : > { %1327 = vmax.xlane.f32.xlu2 %v4806_v30 }
 0x18c   : > { %v4874_v10 = vpop.permute.xlu0 %1561 }
 0x191   : > { %v4813_v33 = vpop.f32.mrf.mxu2  ;;  %v4883_v15 = vpop.permute.xlu1 %1565 }
 0x192   : > { %1329 = vmax.xlane.f32.xlu1 %v4813_v33 }
 0x195   : > { %v4881_v19 = vpop.permute.xlu0 %1725 }
 0x196   : > { %6925 = vst [vmem:[#allocation35_spill] sm:$0xff] %v4881_v19 }
 0x199   : > { %v4820_v36 = vpop.f32.mrf.mxu2 }
 0x19a   : > { %1331 = vmax.xlane.f32.xlu2 %v4820_v36 }
 0x1a1   : > { %v4827_v39 = vpop.f32.mrf.mxu2 }
 0x1a2   : > { %1333 = vmax.xlane.f32.xlu1 %v4827_v39 }
 0x1a9   : > { %v4834_v42 = vpop.f32.mrf.mxu2 }
 0x1aa   : > { %1335 = vmax.xlane.f32.xlu1 %v4834_v42 }
 0x1b1   : > { %v4841_v45 = vpop.f32.mrf.mxu2 }
 0x1b2   : > { %1337 = vmax.xlane.f32.xlu2 %v4841_v45 }
 0x1b9   : > { %v4850_v55 = vpop.f32.mrf.mxu2 }
 0x1ba   : > { %1339 = vmax.xlane.f32.xlu0 %v4850_v55 }
 0x1bd   : > { %v1312_v14 = vpop.xlane.xlu2 %1311 }
 0x1c1   : > { %v4859_v61 = vpop.f32.mrf.mxu2 }
 0x1c2   : > { %1341 = vmax.xlane.f32.xlu1 %v4859_v61 }
 0x1c5   : > { %v1314_v52 = vpop.xlane.xlu0 %1313 }
 0x1c6   : > { %v1344_v53 = vsub.f32 %v4783_v22, %v1314_v52  ;;  %v1343_v22 = vsub.f32 %v4780_v21, %v1312_v14 }
 0x1c8   : > { %v1361_v2 = vmul.f32 1.442695, %v1344_v53 }
 0x1ca   : > { %1681 = vperm.xlu2 %3942, %v4682_v59   ;;  %3980 = vpow2.f32 %v1361_v2 }
 0x1cd   : > { %v1316_v1 = vpop.xlane.xlu2 %1315 }
 0x1ce   : > { %1701 = vperm.xlu0 %3944, %v4717_v7   ;;  %v1345_v4 = vsub.f32 %v4786_v23, %v1316_v1 }
 0x1d0   : > { %v1363_v8 = vmul.f32 1.442695, %v1345_v4  ;;  %v4890_v32 = vpop.eup %3980 }
 0x1d5   : > { %v1318_v37 = vpop.xlane.xlu1 %1317 }
 0x1d6   : > { %v1346_v6 = vsub.f32 %v4789_v24, %v1318_v37  ;;  %v1359_v37 = vmul.f32 1.442695, %v1343_v22 }
 0x1d8   : > { %v1365_v12 = vmul.f32 1.442695, %v1346_v6 }
 0x1da   : > { %3982 = vpow2.f32 %v1365_v12 }
 0x1db   : > { %504 = vperm.xlu1 %3943, %v453_v17   ;;  %3984 = vpow2.f32 %v1363_v8 }
 0x1dd   : > { %v1320_v41 = vpop.xlane.xlu2 %1319 }
 0x1e0   : > { %v4895_v24 = vpop.eup %3982 }
 0x1e1   : > { %v4898_v23 = vpop.eup %3984 }
 0x1e3   : > { %3945 = vset.pattern.permute.xlu1 %v6926_v49 }
 0x1e5   : > { %v1322_v17 = vpop.xlane.xlu1 %1321 }
 0x1e6   : > { %v1348_v49 = vsub.f32 %v4795_v26, %v1322_v17  ;;  %v1347_v26 = vsub.f32 %v4792_v25, %v1320_v41 }
 0x1e8   : > { %v1369_v1 = vmul.f32 1.442695, %v1348_v49  ;;  %v1367_v6 = vmul.f32 1.442695, %v1347_v26 }
 0x1ed   : > { %v1324_v40 = vpop.xlane.xlu2 %1323 }
 0x1ee   : > { %v1349_v19 = vsub.f32 %v4798_v27, %v1324_v40 }
 0x1f0   : > { %v1371_v52 = vmul.f32 1.442695, %v1349_v19 }
 0x1f2   : > { %3986 = vpow2.f32 %v1371_v52 }
 0x1f3   : > { %1393 = vadd.xlane.f32.xlu2 %v4890_v32  ;;  %3988 = vpow2.f32 %v1369_v1 }
 0x1f4   : > { %3990 = vpow2.f32 %v1359_v37 }
 0x1f5   : > { %v1326_v27 = vpop.xlane.xlu1 %1325 }
 0x1f6   : > { %v1350_v25 = vsub.f32 %v4801_v28, %v1326_v27 }
 0x1f8   : > { %1397 = vadd.xlane.f32.xlu0 %v4895_v24  ;;  %v4903_v21 = vpop.eup %3986  ;;  %v1373_v19 = vmul.f32 1.442695, %v1350_v25 }
 0x1f9   : > { %v4906_v4 = vpop.eup %3988 }
 0x1fa   : > { %v4909_v8 = vpop.eup %3990 }
 0x1fb   : > { %1395 = vadd.xlane.f32.xlu2 %v4898_v23 }
 0x1fd   : > { %v1328_v40 = vpop.xlane.xlu2 %1327 }
 0x1fe   : > { %v1351_v53 = vsub.f32 %v4806_v30, %v1328_v40 }
 0x200   : > { %v1375_v2 = vmul.f32 1.442695, %v1351_v53  ;;  %1403 = vadd.xlane.f32.xlu0 %v4903_v21 }
 0x202   : > { %3992 = vpow2.f32 %v1375_v2 }
 0x203   : > { %1401 = vadd.xlane.f32.xlu2 %v4906_v4  ;;  %3994 = vpow2.f32 %v1367_v6 }
 0x205   : > { %v1330_v12 = vpop.xlane.xlu1 %1329  ;;  %1391 = vadd.xlane.f32.xlu1 %v4909_v8 }
 0x206   : > { %v1352_v30 = vsub.f32 %v4813_v33, %v1330_v12 }
 0x208   : > { %v1377_v41 = vmul.f32 1.442695, %v1352_v30  ;;  %v4914_v14 = vpop.eup %3992 }
 0x209   : > { %v4917_v17 = vpop.eup %3994 }
 0x20a   : > { %3996 = vpow2.f32 %v1377_v41 }
 0x20b   : > { %1407 = vadd.xlane.f32.xlu2 %v4914_v14  ;;  %3998 = vpow2.f32 %v1373_v19 }
 0x20d   : > { %v1332_v49 = vpop.xlane.xlu2 %1331  ;;  %1399 = vadd.xlane.f32.xlu1 %v4917_v17 }
 0x20e   : > { %v1353_v52 = vsub.f32 %v4820_v36, %v1332_v49 }
 0x210   : > { %v4921_v22 = vpop.eup %3996  ;;  %v1379_v28 = vmul.f32 1.442695, %v1353_v52 }
 0x211   : > { %1409 = vadd.xlane.f32.xlu0 %v4921_v22  ;;  %v4924_v33 = vpop.eup %3998 }
 0x212   : > { %4000 = vpow2.f32 %v1379_v28 }
 0x215   : > { %v1334_v1 = vpop.xlane.xlu1 %1333  ;;  %1405 = vadd.xlane.f32.xlu1 %v4924_v33 }
 0x216   : > { %v1354_v37 = vsub.f32 %v4827_v39, %v1334_v1  ;;  %v4451_v1 = vmov 2  }
 0x218   : > { %v4928_v27 = vpop.eup %4000  ;;  %v1381_v40 = vmul.f32 1.442695, %v1354_v37  ;;  %v454_v37 = vld [vmem:[%s6844_s3 + $0x10] sm:$0xff] }
 0x219   : > { %1411 = vadd.xlane.f32.xlu0 %v4928_v27 }
 0x21a   : > { %4002 = vpow2.f32 %v1381_v40  ;;  %v6927_v40 = vmov 0  }
 0x21d   : > { %v1336_v36 = vpop.xlane.xlu1 %1335 }
 0x21e   : > { %v1355_v26 = vsub.f32 %v4834_v42, %v1336_v36  ;;  %v455_v36 = vld [vmem:[%s6844_s3 + $0x18] sm:$0xff] }
 0x220   : > { %v4932_v53 = vpop.eup %4002  ;;  %v1383_v2 = vmul.f32 1.442695, %v1355_v26 }
 0x221   : > { %1413 = vadd.xlane.f32.xlu1 %v4932_v53 }
 0x222   : > { %4004 = vpow2.f32 %v1383_v2 }
 0x225   : > { %v1338_v6 = vpop.xlane.xlu2 %1337 }
 0x226   : > { %v1356_v12 = vsub.f32 %v4841_v45, %v1338_v6 }
 0x228   : > { %v4936_v25 = vpop.eup %4004  ;;  %v1385_v39 = vmul.f32 1.442695, %v1356_v12 }
 0x229   : > { %1415 = vadd.xlane.f32.xlu2 %v4936_v25 }
 0x22a   : > { %4006 = vpow2.f32 %v1385_v39 }
 0x22d   : > { %1677 = vperm.xlu0 %3944, %v4674_v54   ;;  %v1340_v30 = vpop.xlane.xlu0 %1339  ;;  %v4987_v26 = vpop.permute.xlu2 %1681 }
 0x22e   : > { %v1357_v42 = vsub.f32 %v4850_v55, %v1340_v30 }
 0x230   : > { %v4941_v41 = vpop.eup %4006  ;;  %v1387_v19 = vmul.f32 1.442695, %v1357_v42 }
 0x231   : > { %1417 = vadd.xlane.f32.xlu2 %v4941_v41 }
 0x232   : > { %4008 = vpow2.f32 %v1387_v19 }
 0x235   : > { %1823 = vrot.lane.b32.xlu0 %v4658_v46, %s4450_s26  ;;  %v1342_v45 = vpop.xlane.xlu1 %1341 }
 0x236   : > { %v1358_v49 = vsub.f32 %v4859_v61, %v1342_v45  ;;  %3949 = vset.pattern.permute.xlu0 %v4451_v1  ;;  %v3830_v61 = vld [vmem:[%s6843_s2 + $0x8] sm:$0xff] }
 0x237   : > { %3629 = vmatmul.msk.bf16.gmra.mxu0 %vm835_vm0, %v3830_v61  ;;  %v5028_v61 = vperm.slane %v4677_v57, 0 }
 0x238   : > { %v4947_v52 = vpop.eup %4008  ;;  %v1389_v28 = vmul.f32 1.442695, %v1358_v49 }
 0x239   : > { %1419 = vadd.xlane.f32.xlu1 %v4947_v52 }
 0x23a   : > { %4010 = vpow2.f32 %v1389_v28 }
 0x23d   : > { %1829 = vrot.lane.b32.xlu0 %v4674_v54, %s4450_s26 }
 0x240   : > { %v4952_v55 = vpop.eup %4010  ;;  %v5011_v30 = vpop.permute.xlu0 %1701 }
 0x241   : > { %1421 = vadd.xlane.f32.xlu2 %v4952_v55 }
 0x245   : > { %1835 = vrot.lane.b32.xlu0 %v4694_v0, %s4450_s26 }
 0x24d   : > { %1841 = vrot.lane.b32.xlu0 %v4717_v7, %s4450_s26  ;;  %v4997_v6 = vpop.permute.xlu1 %504 }
 0x252   : > { %1685 = vperm.xlu1 %3945, %v4688_v62  }
 0x255   : > { %1847 = vrot.lane.b32.xlu0 %v4740_v13, %s4450_s26 }
 0x259   : > { %1673 = vperm.xlu2 %3942, %v4668_v51  }
 0x25a   : > { %1665 = vperm.xlu1 %3945, %v4658_v46  }
 0x25d   : > { %1853 = vrot.lane.b32.xlu0 %v4765_v20, %s4450_s26  ;;  %v1484_v20 = vld [vmem:[%s6847_s6 + $0x60] sm:$0xff] }
 0x261   : > { %1669 = vperm.xlu2 %3942, %v4662_v48  }
 0x262   : > { %3946 = vset.pattern.permute.xlu1 %v6927_v40 }
 0x263   : > { %509 = vperm.xlu1 %3946, %v454_v37  }
 0x265   : > { %2197 = vperm.xlu0 %3949, %v4740_v13  }
 0x266   : > { %v4994_v2 = vpop.xlane.xlu2 %1393 }
 0x269   : > { %3947 = vset.pattern.permute.xlu2 %v6927_v40 }
 0x26a   : > { %514 = vperm.xlu2 %3947, %v455_v36   ;;  %v1572_v36 = vsub.f32 %v4803_v29, %v5028_v61  ;;  %v1577_v29 = vsub.f32 %v4855_v58, %v5028_v61 }
 0x26b   : > { %1825 = vrot.lane.b32.xlu1 %v4662_v48, %s4450_s26  ;;  %v5020_v45 = vpop.xlane.xlu0 %1397 }
 0x26c   : > { %3948 = vset.pattern.permute.xlu1 %v4451_v1  ;;  %4012 = vtanh.f32 %v1572_v36  ;;  %v1582_v36 = vsub.f32 %v4862_v63, %v5028_v61 }
 0x26d   : > { %2189 = vperm.xlu0 %3949, %v4725_v9  }
 0x26e   : > { %v5003_v12 = vpop.xlane.xlu2 %1395 }
 0x272   : > { %1827 = vrot.lane.b32.xlu2 %v4668_v51, %s4450_s26 }
 0x273   : > { %1831 = vrot.lane.b32.xlu1 %v4682_v59, %s4450_s26  ;;  %3950 = vset.pattern.permute.xlu2 %v4451_v1  ;;  %v5025_v1 = vpop.xlane.xlu0 %1403  ;;  %v1579_v59 = vsub.f32 %v4843_v47, %v5028_v61  ;;  %v1584_v47 = vsub.f32 %v4883_v15, %v5028_v61 }
 0x275   : > { %2173 = vperm.xlu0 %3949, %v4694_v0   ;;  %v1575_v0 = vsub.f32 %v4808_v31, %v5028_v61  ;;  %v1583_v31 = vsub.f32 %v4874_v10, %v5028_v61 }
 0x276   : > { %v5013_v42 = vpop.xlane.xlu2 %1401 }
 0x277   : > { %4014 = vtanh.f32 %v1575_v0 }
 0x278   : > { %v5005_v39 = vpop.xlane.xlu1 %1391 }
 0x27a   : > { %1833 = vrot.lane.b32.xlu2 %v4688_v62, %s4450_s26 }
 0x27b   : > { %1837 = vrot.lane.b32.xlu1 %v4702_v3, %s4450_s26 }
 0x27d   : > { %2177 = vperm.xlu0 %3949, %v4702_v3   ;;  %v1576_v3 = vsub.f32 %v4816_v34, %v5028_v61 }
 0x27e   : > { %v1408_v49 = vpop.xlane.xlu2 %1407 }
 0x27f   : > { %4016 = vtanh.f32 %v1576_v3 }
 0x280   : > { %v5015_v19 = vpop.xlane.xlu1 %1399 }
 0x282   : > { %1839 = vrot.lane.b32.xlu2 %v4709_v5, %s4450_s26 }
 0x283   : > { %1843 = vrot.lane.b32.xlu1 %v4725_v9, %s4450_s26  ;;  %v1573_v9 = vsub.f32 %v4825_v38, %v5028_v61  ;;  %v5045_v38 = vpop.eup %4012 }
 0x284   : > { %v1410_v48 = vpop.xlane.xlu0 %1409  ;;  %v5049_v0 = vpop.eup %4014 }
 0x285   : > { %4018 = vtanh.f32 %v1573_v9  ;;  %v5051_v3 = vpop.eup %4016 }
 0x286   : > { %4020 = vtanh.f32 %v1579_v59 }
 0x288   : > { %v5023_v28 = vpop.xlane.xlu1 %1405 }
 0x28a   : > { %1845 = vrot.lane.b32.xlu2 %v4733_v11, %s4450_s26 }
 0x28b   : > { %1849 = vrot.lane.b32.xlu1 %v4746_v16, %s4450_s26  ;;  %v5053_v59 = vpop.eup %4018 }
 0x28c   : > { %v1412_v9 = vpop.xlane.xlu0 %1411  ;;  %v5055_v58 = vpop.eup %4020 }
 0x292   : > { %1851 = vrot.lane.b32.xlu2 %v4755_v18, %s4450_s26  ;;  %s3441_s26 = sshll.u32 %s3438_s28, 4  ;;  %s3442_s26 = int_to_ptr.hbm [resolvable:$true] %s3441_s26 }
 0x293   : > { %2205 = vperm.xlu1 %3948, %v4755_v18   ;;  %s4393_s30 = sshra.s32 %s3442_s26, 4  ;;  %s4394_s30 = int_to_ptr.hbm [resolvable:$true] %s4393_s30 }
 0x294   : > { %v1414_v13 = vpop.xlane.xlu1 %1413  ;;  %s4395_s27 = scalar_lea.hbm %s4394_s30, 128  ;;  %p4400_p3 = scmp.lt.s32.totalorder %s4394_s30, %s6851_s10 }
 0x295   : > { %p4396_p0 = scmp.ne.s32.totalorder %s4394_s30, %s4395_s27 }
 0x297   : > { %p4397_p1 = pnand %p4396_p0, %p4551_p5 }
 0x299   : > { %p4398_p2 = pneg %p4397_p1 }
 0x29b   : > { %2193 = vperm.xlu1 %3948, %v4733_v11  }
 0x29c   : > { %v1416_v37 = vpop.xlane.xlu2 %1415 }
 0x2a3   : > { %2185 = vperm.xlu1 %3948, %v4717_v7  }
 0x2a4   : > { %v1418_v7 = vpop.xlane.xlu2 %1417 }
 0x2ac   : > { %v1420_v34 = vpop.xlane.xlu1 %1419 }
 0x2ad   : > { %4022 = vrcp.f32 %v1420_v34  ;;  %v5063_v34 = vstv %s3539_s18  ;;  %s4399_s18 = scalar_lea.hbm %s6851_s10, 256 }
 0x2ae   : > { %4024 = vtanh.f32 %v1577_v29  ;;  %p4401_p4 = scmp.lt.s32.totalorder %s4399_s18, %s4395_s27 }
 0x2af   : > { %4026 = vrcp.f32 %v1418_v7 }
 0x2b0   : > { %4028 = vtanh.f32 %v1583_v31  ;;  %v1580_v31 = vsub.f32 %v4857_v60, %v5028_v61  ;;  %p4402_p7 = por %p4401_p4, %p4400_p3 }
 0x2b1   : > { %4030 = vrcp.f32 %v1416_v37 }
 0x2b2   : > { %4032 = vtanh.f32 %v1584_v47  ;;  %v1581_v47 = vsub.f32 %v4853_v56, %v5028_v61  ;;  %v1486_v56 = vld [vmem:[%s6847_s6 + $0x70] sm:$0xff]  ;;  %p4403_p8 = pnand %p4402_p7, %p4398_p2 }
 0x2b3   : > { %v4023_v10 = vpop.eup %4022  ;;  %4034 = vrcp.f32 %v1414_v13 }
 0x2b4   : > { %v5059_v29 = vpop.eup %4024  ;;  %4036 = vrcp.f32 %v1412_v9  ;;  %v1422_v15 = vpop.xlane.xlu2 %1421  ;;  %v1454_v63 = vmul.f32 %v4023_v10, %v5063_v34 }
 0x2b5   : > { %v4027_v7 = vpop.eup %4026  ;;  %4038 = vrcp.f32 %v1422_v15 }
 0x2b6   : > { %v4029_v37 = vpop.eup %4028  ;;  %4040 = vrcp.f32 %v1410_v48  ;;  %v1453_v9 = vmul.f32 %v4027_v7, %v5063_v34  ;;  %v1470_v16 = vmul.f32 %v4947_v52, %v1454_v63  ;;  %v1578_v48 = vsub.f32 %v4846_v50, %v5028_v61  ;;  %v1487_v50 = vld [vmem:[%s6847_s6 + $0x78] sm:$0xff] }
 0x2b7   : > { %v4031_v13 = vpop.eup %4030  ;;  %4042 = vtanh.f32 %v1582_v36 }
 0x2b8   : > { %v4033_v18 = vpop.eup %4032  ;;  %4044 = vrcp.f32 %v1408_v49  ;;  %v1452_v15 = vmul.f32 %v4031_v13, %v5063_v34  ;;  %v1469_v7 = vmul.f32 %v4941_v41, %v1453_v9 }
 0x2b9   : > { %v4035_v11 = vpop.eup %4034  ;;  %4046 = vtanh.f32 %v1580_v31  ;;  %v1574_v31 = vsub.f32 %v4836_v43, %v5028_v61 }
 0x2ba   : > { %v4037_v60 = vpop.eup %4036  ;;  %4048 = vtanh.f32 %v1581_v47  ;;  %v1451_v10 = vmul.f32 %v4035_v11, %v5063_v34  ;;  %v1485_v11 = vld [vmem:[%s6847_s6 + $0x68] sm:$0xff]  ;;  %v5094_v47 = vadd.f32 %v1486_v56, %v1470_v16  ;;  %v1468_v43 = vmul.f32 %v4936_v25, %v1452_v15  ;;  %v1483_v15 = vld [vmem:[%s6847_s6 + $0x58] sm:$0xff] }
 0x2bb   : > { %v4039_v5 = vpop.eup %4038  ;;  %4050 = vrcp.f32 %v5023_v28  ;;  %v5087_v28 = vstv %s401_s20  ;;  %v5106_v16 = vadd.f32 %v1485_v11, %v1469_v7 }
 0x2bc   : > { %v4041_v49 = vpop.eup %4040  ;;  %4052 = vrcp.f32 %v5025_v1  ;;  %v1455_v36 = vmul.f32 %v4039_v5, %v5063_v34  ;;  %v1450_v5 = vmul.f32 %v4037_v60, %v5063_v34  ;;  %v1616_v13 = vmul.f32 %v4029_v37, %v5087_v28 }
 0x2bd   : > { %v4043_v52 = vpop.eup %4042  ;;  %4054 = vrcp.f32 %v5015_v19  ;;  %v1449_v63 = vmul.f32 %v4041_v49, %v5063_v34  ;;  %v1617_v9 = vmul.f32 %v4033_v18, %v5087_v28  ;;  %v1467_v25 = vmul.f32 %v4932_v53, %v1451_v10 }
 0x2be   : > { %v4045_v1 = vpop.eup %4044  ;;  %v1471_v41 = vmul.f32 %v4952_v55, %v1455_v36  ;;  %4056 = vtanh.f32 %v1578_v48  ;;  %v1615_v18 = vmul.f32 %v4043_v52, %v5087_v28  ;;  %v5117_v49 = vadd.f32 %v1484_v20, %v1468_v43  ;;  %v1482_v36 = vld [vmem:[%s6847_s6 + $0x50] sm:$0xff] }
 0x2bf   : > { %v4047_v19 = vpop.eup %4046  ;;  %4058 = vrcp.f32 %v5003_v12  ;;  %v1448_v37 = vmul.f32 %v4045_v1, %v5063_v34  ;;  %v1632_v12 = vadd.f32 %v1616_v13, %v5094_v47  ;;  %v1466_v53 = vmul.f32 %v4928_v27, %v1450_v5 }
 0x2c0   : > { %v4049_v54 = vpop.eup %4048  ;;  %v5104_v55 = vadd.f32 %v1487_v50, %v1471_v41  ;;  %4060 = vrcp.f32 %v5013_v42  ;;  %v1465_v7 = vmul.f32 %v4921_v22, %v1449_v63  ;;  %v1631_v11 = vadd.f32 %v1615_v18, %v5106_v16 }
 0x2c1   : > { %v4051_v60 = vpop.eup %4050  ;;  %4062 = vtanh.f32 %v1574_v31  ;;  %v1614_v42 = vmul.f32 %v4049_v54, %v5087_v28  ;;  %v5127_v1 = vadd.f32 %v1483_v15, %v1467_v25  ;;  %v1613_v27 = vmul.f32 %v4047_v19, %v5087_v28  ;;  %v1481_v54 = vld [vmem:[%s6847_s6 + $0x48] sm:$0xff]  ;;  %v914_v25 = vpop.f32.mrf.mxu0 }
 0x2c2   : > { %v4053_v48 = vpop.eup %4052  ;;  %v1633_v56 = vadd.f32 %v1617_v9, %v5104_v55  ;;  %v1447_v52 = vmul.f32 %v4051_v60, %v5063_v34  ;;  %4064 = vrcp.f32 %v5020_v45  ;;  %v5136_v41 = vadd.f32 %v1482_v36, %v1466_v53  ;;  %v1480_v9 = vld [vmem:[%s6847_s6 + $0x40] sm:$0xff] }
 0x2c3   : > { %v4055_v10 = vpop.eup %4054  ;;  %v1446_v5 = vmul.f32 %v4053_v48, %v5063_v34  ;;  %v1630_v22 = vadd.f32 %v1614_v42, %v5117_v49  ;;  %v1464_v43 = vmul.f32 %v4914_v14, %v1448_v37  ;;  %v1571_v45 = vsub.f32 %v4818_v35, %v5028_v61  ;;  %v1479_v48 = vld [vmem:[%s6847_s6 + $0x38] sm:$0xff] }
 0x2c4   : > { %v1641_v50 = vpack.c.bf16 %v1633_v56, %v1632_v12  ;;  %v4057_v20 = vpop.eup %4056  ;;  %4066 = vrcp.f32 %v5005_v39  ;;  %v1444_v19 = vmul.f32 %v4055_v10, %v5063_v34  ;;  %v1612_v13 = vmul.f32 %v5055_v58, %v5087_v28 }
 0x2c5   : > { %v4059_v31 = vpop.eup %4058  ;;  %v1640_v60 = vpack.c.bf16 %v1631_v11, %v1630_v22  ;;  %v1629_v18 = vadd.f32 %v1613_v27, %v5127_v1  ;;  %v5149_v14 = vadd.f32 %v1481_v54, %v1465_v7  ;;  %v1463_v37 = vmul.f32 %v4924_v33, %v1447_v52  ;;  %v1478_v7 = vld [vmem:[%s6847_s6 + $0x30] sm:$0xff] }
 0x2c6   : > { %1648 = vmatpush.bf16.msra.mxu3 %v1641_v50  ;;  %v4061_v63 = vpop.eup %4060  ;;  %v5153_v39 = vperm.slane %v4677_v57, 1  ;;  %v1569_v15 = vsub.f32 %v4839_v44, %v5028_v61  ;;  %4068 = vrcp.f32 %v4994_v2  ;;  %v1611_v58 = vmul.f32 %v4057_v20, %v5087_v28  ;;  %v6928_v44 = vld [vmem:[#allocation25_spill] sm:$0xff] }
 0x2c7   : > { %v4063_v35 = vpop.eup %4062  ;;  %v1445_v12 = vmul.f32 %v4061_v63, %v5063_v34  ;;  %v1628_v33 = vadd.f32 %v1612_v13, %v5136_v41  ;;  %v5164_v56 = vadd.f32 %v1480_v9, %v1464_v43  ;;  %v1462_v53 = vmul.f32 %v4903_v21, %v1446_v5  ;;  %v6930_v63 = vld [vmem:[#allocation33_spill] sm:$0xff] }
 0x2c8   : > { %v4065_v10 = vpop.eup %4064  ;;  %v1570_v42 = vsub.f32 %v6928_v44, %v5028_v61  ;;  %4070 = vtanh.f32 %v1571_v45  ;;  %v1442_v2 = vmul.f32 %v4059_v31, %v5063_v34  ;;  %v1610_v36 = vmul.f32 %v5059_v29, %v5087_v28  ;;  %v6929_v61 = vld [vmem:[#allocation35_spill] sm:$0xff]  ;;  %v1476_v29 = vld [vmem:[%s6847_s6 + $0x20] sm:$0xff] }
 0x2c9   : > { %v1639_v52 = vpack.c.bf16 %v1629_v18, %v1628_v33  ;;  %v1627_v50 = vadd.f32 %v1611_v58, %v5149_v14  ;;  %v5176_v11 = vadd.f32 %v1479_v48, %v1463_v37  ;;  %v1460_v21 = vmul.f32 %v4917_v17, %v1444_v19  ;;  %v1477_v19 = vld [vmem:[%s6847_s6 + $0x28] sm:$0xff]  ;;  %v916_v9 = vpop.f32.mrf.mxu0  ;;  %v6931_v58 = vld [vmem:[#allocation27_spill] sm:$0xff] }
 0x2ca   : > { %1649 = vmatpush.bf16.msra.mxu3 %v1640_v60  ;;  %v4067_v20 = vpop.eup %4066  ;;  %4072 = vtanh.f32 %v1569_v15  ;;  %v1744_v27 = vsub.f32 %v6929_v61, %v5153_v39  ;;  %v1609_v54 = vmul.f32 %v5051_v3, %v5087_v28  ;;  %v1443_v31 = vmul.f32 %v4065_v10, %v5063_v34 }
 0x2cb   : > { %v1626_v5 = vadd.f32 %v1610_v36, %v5164_v56  ;;  %v5188_v22 = vadd.f32 %v1478_v7, %v1462_v53  ;;  %v1461_v17 = vmul.f32 %v4906_v4, %v1445_v12  ;;  %4074 = vtanh.f32 %v1570_v42  ;;  %v6932_v12 = vld [vmem:[#allocation34_spill] sm:$0xff] }
 0x2cc   : > { %v4069_v43 = vpop.eup %4068  ;;  %v1743_v45 = vsub.f32 %v6930_v63, %v5153_v39  ;;  %v1608_v3 = vmul.f32 %v5049_v0, %v5087_v28  ;;  %v1458_v13 = vmul.f32 %v4898_v23, %v1442_v2  ;;  %v1440_v60 = vmul.f32 %v4067_v20, %v5063_v34  ;;  %v1474_v23 = vld [vmem:[%s6847_s6 + $0x10] sm:$0xff] }
 0x2cd   : > { %v1638_v18 = vpack.c.bf16 %v1627_v50, %v1626_v5  ;;  %v1625_v4 = vadd.f32 %v1609_v54, %v5176_v11  ;;  %v5201_v37 = vadd.f32 %v1476_v29, %v1460_v21  ;;  %v915_v48 = vadd.f32 %v914_v25, %v6931_v58  ;;  %v6933_v2 = vld [vmem:[#allocation31_spill] sm:$0xff] }
 0x2ce   : > { %1650 = vmatpush.bf16.msra.mxu3 %v1639_v52  ;;  %v4071_v15 = vpop.eup %4070  ;;  %v1742_v0 = vsub.f32 %v6932_v12, %v5153_v39  ;;  %4076 = vtanh.f32 %v1744_v27  ;;  %v1606_v33 = vmul.f32 %v5053_v59, %v5087_v28  ;;  %v1441_v53 = vmul.f32 %v4069_v43, %v5063_v34  ;;  %v1475_v52 = vld [vmem:[%s6847_s6 + $0x18] sm:$0xff]  ;;  %v6935_v43 = vld [vmem:[#allocation30_spill] sm:$0xff]  ;;  %v1674_v12 = vpop.permute.xlu2 %1673 }
 0x2cf   : > { %v1624_v10 = vadd.f32 %v1608_v3, %v5188_v22  ;;  %v5213_v44 = vadd.f32 %v1477_v19, %v1461_v17  ;;  %v1459_v25 = vmul.f32 %v4895_v24, %v1443_v31  ;;  %4078 = vtanh.f32 %v1743_v45  ;;  %v6934_v27 = vld [vmem:[#allocation32_spill] sm:$0xff]  ;;  %v1473_v19 = vld [vmem:[%s6847_s6 + $0x8] sm:$0xff] }
 0x2d0   : > { %v4073_v42 = vpop.eup %4072  ;;  %v1741_v36 = vsub.f32 %v6933_v2, %v5153_v39  ;;  %v917_v59 = vadd.f32 %v916_v9, %v4997_v6  ;;  %v1607_v7 = vmul.f32 %v4063_v35, %v5087_v28  ;;  %v1622_v21 = vadd.f32 %v1606_v33, %v5201_v37  ;;  %v1472_v6 = vld [vmem:[%s6847_s6] sm:$0xff]  ;;  %v6937_v2 = vld [vmem:[#allocation26_spill] sm:$0xff] }
 0x2d1   : > { %v1637_v50 = vpack.c.bf16 %v1625_v4, %v1624_v10  ;;  %v5224_v20 = vadd.f32 %v1474_v23, %v1458_v13  ;;  %v1456_v24 = vmul.f32 %v4909_v8, %v1440_v60  ;;  %v4075_v61 = vpop.eup %4074  ;;  %v1740_v54 = vsub.f32 %v6934_v27, %v5153_v39  ;;  %v6936_v10 = vld [vmem:[#allocation28_spill] sm:$0xff] }
 0x2d2   : > { %1651 = vmatpush.bf16.msra.mxu3 %v1638_v18  ;;  %v1604_v29 = vmul.f32 %v4071_v15, %v5087_v28  ;;  %4080 = vtanh.f32 %v1742_v0  ;;  %v1623_v35 = vadd.f32 %v1607_v7, %v5213_v44  ;;  %v5234_v31 = vadd.f32 %v1475_v52, %v1459_v25  ;;  %v1686_v0 = vpop.permute.xlu1 %1685 }
 0x2d3   : > { %v1457_v5 = vmul.f32 %v4890_v32, %v1441_v53  ;;  %v1028_v8 = vmax.f32 %v915_v48, 0.0  ;;  %v1739_v63 = vsub.f32 %v6935_v43, %v5153_v39  ;;  %v1029_v45 = vmax.f32 %v917_v59, 0.0 }
 0x2d4   : > { %v4077_v17 = vpop.eup %4076  ;;  %v1605_v3 = vmul.f32 %v5045_v38, %v5087_v28  ;;  %4082 = vtanh.f32 %v1741_v36  ;;  %v1636_v13 = vpack.c.bf16 %v1623_v35, %v1622_v21  ;;  %v1620_v9 = vadd.f32 %v1604_v29, %v5224_v20 }
 0x2d5   : > { %v5245_v60 = vadd.f32 %v1472_v6, %v1456_v24  ;;  %v4079_v32 = vpop.eup %4078  ;;  %v1602_v18 = vmul.f32 %v4073_v42, %v5087_v28  ;;  %4084 = vtanh.f32 %v1740_v54  ;;  %v1738_v4 = vsub.f32 %v5011_v30, %v5153_v39 }
 0x2d6   : > { %1652 = vmatpush.bf16.msra.mxu3 %v1637_v50  ;;  %v1621_v38 = vadd.f32 %v1605_v3, %v5234_v31  ;;  %v5251_v15 = vadd.f32 %v1473_v19, %v1457_v5  ;;  %v1181_v58 = vpack.c.bf16 %v1028_v8, %v1028_v8  ;;  %v1182_v48 = vpack.c.bf16 %v1029_v45, %v1029_v45  ;;  %v6938_v50 = vld [vmem:[#allocation29_spill] sm:$0xff]  ;;  %v919_v3 = vpop.f32.mrf.mxu0 }
 0x2d7   : > { %v1603_v33 = vmul.f32 %v4075_v61, %v5087_v28  ;;  %v1776_v23 = vmul.f32 %v4077_v17, %v5087_v28  ;;  %v1737_v25 = vsub.f32 %v6936_v10, %v5153_v39  ;;  %4086 = vtanh.f32 %v1739_v63  ;;  %v1678_v63 = vpop.permute.xlu0 %1677 }
 0x2d8   : > { %v4081_v53 = vpop.eup %4080  ;;  %v1635_v42 = vpack.c.bf16 %v1621_v38, %v1620_v9  ;;  %v1618_v30 = vadd.f32 %v1602_v18, %v5245_v60  ;;  %v1736_v36 = vsub.f32 %v6937_v2, %v5153_v39  ;;  %v1775_v59 = vmul.f32 %v4079_v32, %v5087_v28  ;;  %v1670_v18 = vpop.permute.xlu2 %1669 }
 0x2d9   : > { %v1792_v7 = vadd.f32 %v1776_v23, %v5104_v55  ;;  %v1735_v21 = vsub.f32 %v6938_v50, %v5153_v39  ;;  %4088 = vtanh.f32 %v1738_v4  ;;  %v1619_v24 = vadd.f32 %v1603_v33, %v5251_v15 }
 0x2da   : > { %1653 = vmatpush.bf16.msra.mxu3 %v1636_v13  ;;  %v4083_v52 = vpop.eup %4082  ;;  %v1645_v61 = vunpack.c.l.b16 %v1182_v48  ;;  %v1791_v27 = vadd.f32 %v1775_v59, %v5094_v47  ;;  %v1774_v54 = vmul.f32 %v4081_v53, %v5087_v28  ;;  %v1644_v6 = vunpack.c.l.b16 %v1181_v58 }
 0x2db   : > { %v4085_v29 = vpop.eup %4084  ;;  %4090 = vtanh.f32 %v1737_v25  ;;  %v1734_v35 = vsub.f32 %v1686_v0, %v5153_v39  ;;  %v1634_v5 = vpack.c.bf16 %v1619_v24, %v1618_v30  ;;  %v1773_v17 = vmul.f32 %v4083_v52, %v5087_v28 }
 0x2dc   : > { %4092 = vtanh.f32 %v1736_v36  ;;  %v1800_v55 = vpack.c.bf16 %v1792_v7, %v1791_v27  ;;  %v1790_v8 = vadd.f32 %v1774_v54, %v5106_v16  ;;  %v1733_v47 = vsub.f32 %v4987_v26, %v5153_v39  ;;  %v1666_v16 = vpop.permute.xlu1 %1665 }
 0x2dd   : > { %v4087_v43 = vpop.eup %4086  ;;  %4094 = vtanh.f32 %v1735_v21  ;;  %v1646_v45 = vpack.c.b16 %v1645_v61, %v1644_v6  ;;  %v1789_v19 = vadd.f32 %v1773_v17, %v5117_v49  ;;  %v1772_v13 = vmul.f32 %v4085_v29, %v5087_v28 }
 0x2de   : > { %1654 = vmatpush.bf16.msra.mxu3 %v1635_v42  ;;  %v1731_v32 = vsub.f32 %v1674_v12, %v5153_v39  ;;  %4096 = vtanh.f32 %v1734_v35  ;;  %v1771_v38 = vmul.f32 %v4087_v43, %v5087_v28  ;;  %v1732_v48 = vsub.f32 %v1678_v63, %v5153_v39  ;;  %v921_v36 = vpop.f32.mrf.mxu0 }
 0x2df   : > { %v4089_v9 = vpop.eup %4088  ;;  %v1799_v4 = vpack.c.bf16 %v1790_v8, %v1789_v19  ;;  %v1788_v26 = vadd.f32 %v1772_v13, %v5127_v1  ;;  %4098 = vtanh.f32 %v1733_v47  ;;  %v1729_v23 = vsub.f32 %v1666_v16, %v5153_v39 }
 0x2e0   : > { %v1787_v49 = vadd.f32 %v1771_v38, %v5136_v41  ;;  %v1770_v33 = vmul.f32 %v4089_v9, %v5087_v28  ;;  %4100 = vtanh.f32 %v1731_v32  ;;  %v1730_v42 = vsub.f32 %v1670_v18, %v5153_v39  ;;  %v515_v21 = vpop.permute.xlu2 %514 }
 0x2e1   : > { %v4091_v58 = vpop.eup %4090  ;;  %4102 = vtanh.f32 %v1732_v48  ;;  %v922_v27 = vadd.f32 %v921_v36, %v515_v21 }
 0x2e2   : > { %1655 = vmatpush.bf16.msra.mxu3 %v1634_v5  ;;  %v4093_v0 = vpop.eup %4092  ;;  %v1798_v53 = vpack.c.bf16 %v1788_v26, %v1787_v49  ;;  %v1769_v10 = vmul.f32 %v4091_v58, %v5087_v28  ;;  %v1786_v25 = vadd.f32 %v1770_v33, %v5149_v14  ;;  %4104 = vtanh.f32 %v1729_v23 }
 0x2e3   : > { %v4095_v12 = vpop.eup %4094  ;;  %v1768_v41 = vmul.f32 %v4093_v0, %v5087_v28  ;;  %4106 = vtanh.f32 %v1730_v42  ;;  %v1031_v43 = vmax.f32 %v922_v27, 0.0 }
 0x2e4   : > { %v4097_v1 = vpop.eup %4096  ;;  %v1785_v30 = vadd.f32 %v1769_v10, %v5164_v56  ;;  %v1767_v7 = vmul.f32 %v4095_v12, %v5087_v28  ;;  %v510_v24 = vpop.permute.xlu1 %509 }
 0x2e5   : > { %1656 = vmatmul.bf16.vlgmr.msra.gmra.mxu3 %v1646_v45  ;;  %v4099_v2 = vpop.eup %4098  ;;  %v1784_v52 = vadd.f32 %v1768_v41, %v5176_v11  ;;  %v1766_v50 = vmul.f32 %v4097_v1, %v5087_v28  ;;  %v920_v61 = vadd.f32 %v919_v3, %v510_v24  ;;  %v1184_v19 = vpack.c.bf16 %v1031_v43, %v1031_v43 }
 0x2e6   : > { %1807 = vmatpush.bf16.msrb.mxu3 %v1800_v55  ;;  %v1797_v59 = vpack.c.bf16 %v1786_v25, %v1785_v30  ;;  %v4101_v14 = vpop.eup %4100  ;;  %v1783_v39 = vadd.f32 %v1767_v7, %v5188_v22  ;;  %v1765_v29 = vmul.f32 %v4099_v2, %v5087_v28 }
 0x2e7   : > { %v4103_v56 = vpop.eup %4102  ;;  %v1782_v6 = vadd.f32 %v1766_v50, %v5213_v44  ;;  %v1763_v35 = vmul.f32 %v4101_v14, %v5087_v28  ;;  %v1030_v8 = vmax.f32 %v920_v61, 0.0  ;;  %v1804_v18 = vunpack.c.l.b16 %v1184_v19 }
 0x2e8   : > { %v1796_v54 = vpack.c.bf16 %v1784_v52, %v1783_v39  ;;  %v4105_v11 = vpop.eup %4104  ;;  %v1781_v5 = vadd.f32 %v1765_v29, %v5201_v37  ;;  %v1764_v55 = vmul.f32 %v4103_v56, %v5087_v28 }
 0x2e9   : > { %v4107_v17 = vpop.eup %4106  ;;  %v1779_v47 = vadd.f32 %v1763_v35, %v5224_v20  ;;  %v1761_v63 = vmul.f32 %v4105_v11, %v5087_v28  ;;  %v1183_v3 = vpack.c.bf16 %v1030_v8, %v1030_v8  ;;  %v1855_v20 = vrot.slane %v4677_v57, 2 }
 0x2ea   : > { %1808 = vmatpush.bf16.msrb.mxu3 %v1799_v4  ;;  %v1795_v22 = vpack.c.bf16 %v1782_v6, %v1781_v5  ;;  %v1780_v45 = vadd.f32 %v1764_v55, %v5234_v31  ;;  %v1762_v44 = vmul.f32 %v4107_v17, %v5087_v28  ;;  %v1824_v31 = vpop.permute.xlu0 %1823 }
 0x2eb   : > { %v1777_v37 = vadd.f32 %v1761_v63, %v5245_v60  ;;  %v1803_v32 = vunpack.c.l.b16 %v1183_v3  ;;  %v1828_v60 = vpop.permute.xlu2 %1827 }
 0x2ec   : > { %v1794_v13 = vpack.c.bf16 %v1780_v45, %v1779_v47  ;;  %v1778_v9 = vadd.f32 %v1762_v44, %v5251_v15  ;;  %v1826_v38 = vpop.permute.xlu1 %1825 }
 0x2ed   : > { %v1805_v4 = vpack.c.b16 %v1804_v18, %v1803_v32 }
 0x2ee   : > { %1809 = vmatpush.bf16.msrb.mxu3 %v1798_v53  ;;  %v1793_v16 = vpack.c.bf16 %v1778_v9, %v1777_v37 }
 0x2f2   : > { %1810 = vmatpush.bf16.msrb.mxu3 %v1797_v59  ;;  %v1830_v15 = vpop.permute.xlu0 %1829 }
 0x2f3   : > { %v1834_v58 = vpop.permute.xlu2 %1833 }
 0x2f4   : > { %v1832_v26 = vpop.permute.xlu1 %1831 }
 0x2f6   : > { %1811 = vmatpush.bf16.msrb.mxu3 %v1796_v54 }
 0x2fa   : > { %1812 = vmatpush.bf16.msrb.mxu3 %v1795_v22  ;;  %v1836_v48 = vpop.permute.xlu0 %1835 }
 0x2fb   : > { %v1840_v49 = vpop.permute.xlu2 %1839 }
 0x2fc   : > { %v1838_v0 = vpop.permute.xlu1 %1837 }
 0x2fe   : > { %1813 = vmatpush.bf16.msrb.mxu3 %v1794_v13 }
 0x302   : > { %1814 = vmatpush.bf16.msrb.mxu3 %v1793_v16  ;;  %v1842_v33 = vpop.permute.xlu0 %1841 }
 0x303   : > { %v1846_v23 = vpop.permute.xlu2 %1845 }
 0x304   : > { %v1844_v12 = vpop.permute.xlu1 %1843 }
 0x305   : > { %1815 = vmatmul.bf16.vlgmr.msrb.gmra.mxu3 %v1805_v4 }
 0x306   : > { %3684 = vmatpush.msk.msra.mxu3 %vm1242_vm1, %v1855_v20 }
 0x30a   : > { %v1848_v53 = vpop.permute.xlu0 %1847 }
 0x30b   : > { %v1852_v42 = vpop.permute.xlu2 %1851 }
 0x30c   : > { %v1850_v25 = vpop.permute.xlu1 %1849 }
 0x312   : > { %v1854_v41 = vpop.permute.xlu0 %1853 }
 0x314   : > { %v5345_v54 = vpop.permute.xlu1 %2205 }
 0x315   : > { %3685 = vmatmul.msk.f32.vlgmr.msra.gmra.mxu3 %vm1193_vm2, %v1824_v31 }
 0x31a   : > { %v5364_v17 = vpop.permute.xlu0 %2197 }
 0x31c   : > { %v5353_v35 = vpop.permute.xlu1 %2193 }
 0x31d   : > { %3686 = vmatmul.msk.f32.gmra.mxu3 %vm1193_vm2, %v1826_v38 }
 0x322   : > { %v5368_v43 = vpop.permute.xlu0 %2189 }
 0x324   : > { %v5358_v5 = vpop.permute.xlu1 %2185 }
 0x325   : > { %3687 = vmatmul.msk.f32.gmra.mxu3 %vm1193_vm2, %v1828_v60 }
 0x32a   : > { %v5371_v44 = vpop.permute.xlu0 %2173 }
 0x32d   : > { %3688 = vmatmul.msk.f32.gmra.mxu3 %vm1193_vm2, %v1830_v15 }
 0x332   : > { %v5376_v9 = vpop.permute.xlu0 %2177 }
 0x335   : > { %3689 = vmatmul.msk.f32.gmra.mxu3 %vm1193_vm2, %v1832_v26 }
 0x33d   : > { %3690 = vmatmul.msk.f32.gmra.mxu3 %vm1193_vm2, %v1834_v58 }
 0x345   : > { %3691 = vmatmul.msk.f32.gmra.mxu3 %vm1193_vm2, %v1836_v48 }
 0x34d   : > { %3692 = vmatmul.msk.f32.gmra.mxu3 %vm1193_vm2, %v1838_v0 }
 0x355   : > { %3693 = vmatmul.msk.f32.gmra.mxu3 %vm1193_vm2, %v1840_v49 }
 0x35d   : > { %3694 = vmatmul.msk.f32.gmra.mxu3 %vm1193_vm2, %v1842_v33 }
 0x365   : > { %3695 = vmatmul.msk.f32.gmra.mxu3 %vm1193_vm2, %v1844_v12 }
 0x368   : > { %v5316_v10 = vpop.f32.mrf.mxu3 }
 0x369   : > { %6939 = vst [vmem:[#allocation25_spill] sm:$0xff] %v5316_v10 }
 0x36d   : > { %3696 = vmatmul.msk.f32.gmra.mxu3 %vm1193_vm2, %v1846_v23 }
 0x370   : > { %v5319_v1 = vpop.f32.mrf.mxu3 }
 0x371   : > { %6940 = vst [vmem:[#allocation35_spill] sm:$0xff] %v5319_v1  ;;  %v5526_v1 = vperm.slane %v4677_v57, 2 }
 0x373   : > { %v2225_v10 = vsub.f32 %v5364_v17, %v5526_v1  ;;  %v6960_v17 = vmov 3  }
 0x375   : > { %3697 = vmatmul.msk.f32.gmra.mxu3 %vm1193_vm2, %v1848_v53 }
 0x37d   : > { %3698 = vmatmul.msk.f32.gmra.mxu3 %vm1193_vm2, %v1850_v25 }
 0x385   : > { %3699 = vmatmul.msk.f32.gmra.mxu3 %vm1193_vm2, %v1852_v42 }
 0x388   : > { %v5322_v30 = vpop.f32.mrf.mxu3 }
 0x389   : > { %6941 = vst [vmem:[#allocation33_spill] sm:$0xff] %v5322_v30 }
 0x38d   : > { %3700 = vmatmul.msk.f32.gmra.mxu3 %vm1193_vm2, %v1854_v41 }
 0x390   : > { %v5325_v2 = vpop.f32.mrf.mxu3 }
 0x391   : > { %6942 = vst [vmem:[#allocation27_spill] sm:$0xff] %v5325_v2  ;;  %v2223_v2 = vsub.f32 %v5368_v43, %v5526_v1 }
 0x398   : > { %v5327_v36 = vpop.f32.mrf.mxu3 }
 0x399   : > { %1955 = vmax.xlane.f32.xlu0 %v5327_v36 }
 0x3a0   : > { %v5330_v59 = vpop.f32.mrf.mxu3 }
 0x3a1   : > { %1957 = vmax.xlane.f32.xlu1 %v5330_v59 }
 0x3a8   : > { %v1913_v7 = vpop.f32.mrf.mxu3 }
 0x3a9   : > { %1959 = vmax.xlane.f32.xlu1 %v1913_v7 }
 0x3b0   : > { %v1916_v52 = vpop.f32.mrf.mxu3 }
 0x3b1   : > { %1961 = vmax.xlane.f32.xlu2 %v1916_v52 }
 0x3b8   : > { %v1919_v50 = vpop.f32.mrf.mxu3 }
 0x3b9   : > { %1963 = vmax.xlane.f32.xlu2 %v1919_v50 }
 0x3c0   : > { %v1922_v14 = vpop.f32.mrf.mxu3 }
 0x3c1   : > { %1965 = vmax.xlane.f32.xlu0 %v1922_v14 }
 0x3c8   : > { %v5333_v21 = vpop.f32.mrf.mxu3 }
 0x3c9   : > { %1967 = vmax.xlane.f32.xlu0 %v5333_v21 }
 0x3d0   : > { %v1928_v24 = vpop.f32.mrf.mxu3 }
 0x3d1   : > { %1969 = vmax.xlane.f32.xlu1 %v1928_v24 }
 0x3d8   : > { %v1931_v39 = vpop.f32.mrf.mxu3 }
 0x3d9   : > { %1971 = vmax.xlane.f32.xlu1 %v1931_v39 }
 0x3e0   : > { %v5336_v56 = vpop.f32.mrf.mxu3 }
 0x3e1   : > { %1973 = vmax.xlane.f32.xlu2 %v5336_v56 }
 0x3e8   : > { %v5339_v61 = vpop.f32.mrf.mxu3 }
 0x3e9   : > { %1975 = vmax.xlane.f32.xlu2 %v5339_v61 }
 0x3f0   : > { %v5342_v27 = vpop.f32.mrf.mxu3 }
 0x3f1   : > { %1977 = vmax.xlane.f32.xlu0 %v5342_v27 }
 0x3f8   : > { %v5347_v29 = vpop.f32.mrf.mxu3 }
 0x3f9   : > { %1979 = vmax.xlane.f32.xlu0 %v5347_v29 }
 0x400   : > { %v5350_v6 = vpop.f32.mrf.mxu3 }
 0x401   : > { %1981 = vmax.xlane.f32.xlu1 %v5350_v6 }
 0x408   : > { %v5355_v11 = vpop.f32.mrf.mxu3 }
 0x409   : > { %1983 = vmax.xlane.f32.xlu1 %v5355_v11 }
 0x40c   : > { %v5380_v18 = vpop.xlane.xlu0 %1955 }
 0x40d   : > { %2157 = vperm.xlu0 %3949, %v4668_v51  }
 0x410   : > { %v5361_v55 = vpop.f32.mrf.mxu3 }
 0x411   : > { %1985 = vmax.xlane.f32.xlu2 %v5361_v55 }
 0x414   : > { %v5366_v8 = vpop.xlane.xlu1 %1957 }
 0x41c   : > { %v1960_v22 = vpop.xlane.xlu1 %1959 }
 0x41d   : > { %v1989_v47 = vsub.f32 %v1913_v7, %v1960_v22 }
 0x41f   : > { %v2007_v63 = vmul.f32 1.442695, %v1989_v47 }
 0x421   : > { %4108 = vpow2.f32 %v2007_v63 }
 0x422   : > { %2169 = vperm.xlu1 %3948, %v4688_v62  }
 0x424   : > { %v1962_v45 = vpop.xlane.xlu2 %1961 }
 0x425   : > { %v1990_v16 = vsub.f32 %v1916_v52, %v1962_v45 }
 0x427   : > { %v5373_v3 = vpop.eup %4108  ;;  %v2009_v4 = vmul.f32 1.442695, %v1990_v16 }
 0x428   : > { %2039 = vadd.xlane.f32.xlu2 %v5373_v3 }
 0x42c   : > { %v1964_v19 = vpop.xlane.xlu2 %1963 }
 0x42d   : > { %v1991_v13 = vsub.f32 %v1919_v50, %v1964_v19 }
 0x42f   : > { %v2011_v37 = vmul.f32 1.442695, %v1991_v13 }
 0x431   : > { %4110 = vpow2.f32 %v2011_v37 }
 0x432   : > { %4112 = vpow2.f32 %v2009_v4 }
 0x434   : > { %v1966_v20 = vpop.xlane.xlu0 %1965 }
 0x435   : > { %v1992_v38 = vsub.f32 %v1922_v14, %v1966_v20 }
 0x437   : > { %v5378_v32 = vpop.eup %4110  ;;  %v2013_v26 = vmul.f32 1.442695, %v1992_v38 }
 0x438   : > { %2043 = vadd.xlane.f32.xlu0 %v5378_v32  ;;  %v5383_v48 = vpop.eup %4112 }
 0x43c   : > { %v1968_v58 = vpop.xlane.xlu0 %1967 }
 0x43d   : > { %v1993_v49 = vsub.f32 %v5333_v21, %v1968_v58 }
 0x43f   : > { %v2015_v53 = vmul.f32 1.442695, %v1993_v49  ;;  %v3831_v49 = vld [vmem:[%s6843_s2 + $0x10] sm:$0xff] }
 0x440   : > { %3630 = vmatmul.msk.bf16.gmra.mxu0 %vm835_vm0, %v3831_v49 }
 0x444   : > { %v1970_v31 = vpop.xlane.xlu1 %1969 }
 0x445   : > { %v1994_v60 = vsub.f32 %v1928_v24, %v1970_v31 }
 0x447   : > { %v2017_v15 = vmul.f32 1.442695, %v1994_v60  ;;  %v1988_v60 = vsub.f32 %v5330_v59, %v5366_v8 }
 0x449   : > { %4114 = vpow2.f32 %v2017_v15 }
 0x44a   : > { %4116 = vpow2.f32 %v2013_v26 }
 0x44c   : > { %v1972_v0 = vpop.xlane.xlu1 %1971  ;;  %2041 = vadd.xlane.f32.xlu1 %v5383_v48 }
 0x44d   : > { %v1995_v33 = vsub.f32 %v1931_v39, %v1972_v0 }
 0x44f   : > { %v5387_v12 = vpop.eup %4114  ;;  %v2019_v23 = vmul.f32 1.442695, %v1995_v33  ;;  %v6885_v33 = vmov 3  }
 0x450   : > { %2049 = vadd.xlane.f32.xlu2 %v5387_v12  ;;  %v5390_v25 = vpop.eup %4116 }
 0x451   : > { %4118 = vpow2.f32 %v2019_v23  ;;  %v6945_v23 = vld [vmem:[#allocation24_spill] sm:$0xff] }
 0x452   : > { %4120 = vpow2.f32 %v2015_v53  ;;  %v6946_v53 = vld [vmem:[#allocation17_spill] sm:$0xff] }
 0x454   : > { %v1974_v42 = vpop.xlane.xlu2 %1973  ;;  %2045 = vadd.xlane.f32.xlu1 %v5390_v25 }
 0x455   : > { %v1996_v41 = vsub.f32 %v5336_v56, %v1974_v42  ;;  %v6947_v42 = vld [vmem:[#allocation22_spill] sm:$0xff] }
 0x457   : > { %v5394_v7 = vpop.eup %4118  ;;  %v2021_v52 = vmul.f32 1.442695, %v1996_v41  ;;  %v6948_v41 = vld [vmem:[#allocation20_spill] sm:$0xff] }
 0x458   : > { %2051 = vadd.xlane.f32.xlu0 %v5394_v7  ;;  %v5397_v50 = vpop.eup %4120 }
 0x459   : > { %4122 = vpow2.f32 %v2021_v52  ;;  %v6949_v52 = vld [vmem:[#allocation23_spill] sm:$0xff] }
 0x45c   : > { %v1976_v14 = vpop.xlane.xlu2 %1975  ;;  %2047 = vadd.xlane.f32.xlu1 %v5397_v50 }
 0x45d   : > { %v1997_v21 = vsub.f32 %v5339_v61, %v1976_v14  ;;  %v1987_v14 = vsub.f32 %v5327_v36, %v5380_v18  ;;  %v457_v36 = vld [vmem:[%s6844_s3 + $0x28] sm:$0xff] }
 0x45f   : > { %v5401_v24 = vpop.eup %4122  ;;  %v2023_v39 = vmul.f32 1.442695, %v1997_v21  ;;  %v6950_v21 = vld [vmem:[#allocation14_spill] sm:$0xff] }
 0x460   : > { %2053 = vadd.xlane.f32.xlu2 %v5401_v24 }
 0x461   : > { %4124 = vpow2.f32 %v2023_v39  ;;  %v2003_v39 = vmul.f32 1.442695, %v1987_v14  ;;  %v6957_v14 = vld [vmem:[#allocation18_spill] sm:$0xff] }
 0x464   : > { %v1978_v56 = vpop.xlane.xlu0 %1977 }
 0x465   : > { %v1998_v22 = vsub.f32 %v5342_v27, %v1978_v56 }
 0x467   : > { %v5405_v47 = vpop.eup %4124  ;;  %v2025_v63 = vmul.f32 1.442695, %v1998_v22  ;;  %v6951_v22 = vld [vmem:[#allocation10_spill] sm:$0xff] }
 0x468   : > { %2055 = vadd.xlane.f32.xlu1 %v5405_v47 }
 0x469   : > { %4126 = vpow2.f32 %v2025_v63  ;;  %v6952_v63 = vld [vmem:[#allocation19_spill] sm:$0xff] }
 0x46c   : > { %v1980_v45 = vpop.xlane.xlu0 %1979 }
 0x46d   : > { %v1999_v19 = vsub.f32 %v5347_v29, %v1980_v45 }
 0x46f   : > { %v5409_v13 = vpop.eup %4126  ;;  %v2027_v61 = vmul.f32 1.442695, %v1999_v19  ;;  %v6881_v19 = vmov 4  }
 0x470   : > { %2057 = vadd.xlane.f32.xlu2 %v5409_v13 }
 0x471   : > { %4128 = vpow2.f32 %v2027_v61 }
 0x474   : > { %v1982_v37 = vpop.xlane.xlu1 %1981 }
 0x475   : > { %v2000_v16 = vsub.f32 %v5350_v6, %v1982_v37  ;;  %v2005_v6 = vmul.f32 1.442695, %v1988_v60  ;;  %v6883_v60 = vmov 5  }
 0x477   : > { %v5413_v20 = vpop.eup %4128  ;;  %v2029_v27 = vmul.f32 1.442695, %v2000_v16 }
 0x478   : > { %2059 = vadd.xlane.f32.xlu0 %v5413_v20 }
 0x479   : > { %4130 = vpow2.f32 %v2029_v27  ;;  %v6954_v27 = vld [vmem:[#allocation16_spill] sm:$0xff] }
 0x47c   : > { %v1984_v4 = vpop.xlane.xlu1 %1983 }
 0x47d   : > { %v2001_v31 = vsub.f32 %v5355_v11, %v1984_v4  ;;  %v456_v11 = vld [vmem:[%s6844_s3 + $0x20] sm:$0xff] }
 0x47f   : > { %v5417_v38 = vpop.eup %4130  ;;  %v2031_v29 = vmul.f32 1.442695, %v2001_v31  ;;  %v5478_v61 = vpop.permute.xlu0 %2157 }
 0x480   : > { %2061 = vadd.xlane.f32.xlu0 %v5417_v38 }
 0x481   : > { %4132 = vpow2.f32 %v2031_v29  ;;  %2149 = vperm.xlu1 %3948, %v4658_v46  }
 0x482   : > { %4134 = vpow2.f32 %v2005_v6 }
 0x484   : > { %v1986_v15 = vpop.xlane.xlu2 %1985 }
 0x485   : > { %v2002_v26 = vsub.f32 %v5361_v55, %v1986_v15  ;;  %v6944_v55 = vld [vmem:[#allocation13_spill] sm:$0xff]  ;;  %v6955_v15 = vld [vmem:[#allocation15_spill] sm:$0xff] }
 0x487   : > { %v5424_v58 = vpop.eup %4132  ;;  %v2033_v0 = vmul.f32 1.442695, %v2002_v26 }
 0x488   : > { %2063 = vadd.xlane.f32.xlu2 %v5424_v58  ;;  %v5431_v59 = vpop.eup %4134 }
 0x489   : > { %4136 = vpow2.f32 %v2033_v0  ;;  %3951 = vset.pattern.permute.xlu1 %v6927_v40  ;;  %6943 = vst [vmem:[#allocation34_spill] sm:$0xff] %v5431_v59 }
 0x48a   : > { %519 = vperm.xlu1 %3951, %v456_v11   ;;  %4138 = vpow2.f32 %v2003_v39  ;;  %v6956_v11 = vld [vmem:[#allocation21_spill] sm:$0xff] }
 0x48f   : > { %v5433_v8 = vpop.eup %4136 }
 0x490   : > { %2037 = vadd.xlane.f32.xlu2 %v5431_v59  ;;  %2065 = vadd.xlane.f32.xlu0 %v5433_v8  ;;  %v5467_v45 = vpop.eup %4138 }
 0x491   : > { %6953 = vst [vmem:[#allocation31_spill] sm:$0xff] %v5467_v45 }
 0x492   : > { %2466 = vrot.lane.b32.xlu1 %v4658_v46, %s4452_s25 }
 0x493   : > { %3953 = vset.pattern.permute.xlu1 %v6885_v33 }
 0x494   : > { %v5463_v56 = vpop.permute.xlu1 %2169 }
 0x49a   : > { %2472 = vrot.lane.b32.xlu1 %v6944_v55, %s4452_s25 }
 0x49b   : > { %v5485_v16 = vpop.xlane.xlu2 %2039 }
 0x4a2   : > { %2476 = vrot.lane.b32.xlu1 %v4688_v62, %s4452_s25 }
 0x4a4   : > { %2161 = vperm.xlu0 %3949, %v6944_v55  }
 0x4a8   : > { %2209 = vperm.xlu2 %3950, %v6945_v23  }
 0x4aa   : > { %2482 = vrot.lane.b32.xlu1 %v6946_v53, %s4452_s25 }
 0x4ab   : > { %v5489_v4 = vpop.xlane.xlu0 %2043 }
 0x4ac   : > { %3955 = vset.pattern.permute.xlu0 %v6885_v33 }
 0x4b0   : > { %2201 = vperm.xlu2 %3950, %v6947_v42  }
 0x4b2   : > { %2488 = vrot.lane.b32.xlu1 %v6948_v41, %s4452_s25 }
 0x4b8   : > { %2181 = vperm.xlu2 %3950, %v6946_v53  }
 0x4ba   : > { %2494 = vrot.lane.b32.xlu1 %v6949_v52, %s4452_s25 }
 0x4bf   : > { %v5473_v18 = vpop.xlane.xlu1 %2041 }
 0x4c0   : > { %2165 = vperm.xlu2 %3950, %v6950_v21  }
 0x4c2   : > { %2364 = vperm.xlu1 %3953, %v6949_v52  }
 0x4c3   : > { %v5495_v31 = vpop.xlane.xlu2 %2049 }
 0x4c7   : > { %v5480_v37 = vpop.xlane.xlu1 %2045 }
 0x4c8   : > { %2153 = vperm.xlu2 %3950, %v6951_v22  }
 0x4ca   : > { %2348 = vperm.xlu1 %3953, %v6952_v63  }
 0x4cb   : > { %v5501_v6 = vpop.xlane.xlu0 %2051 }
 0x4ce   : > { %2035 = vadd.xlane.f32.xlu0 %v5467_v45  ;;  %v2219_v45 = vsub.f32 %v5371_v44, %v5526_v1 }
 0x4cf   : > { %v5497_v29 = vpop.xlane.xlu1 %2047 }
 0x4d0   : > { %3952 = vset.pattern.permute.xlu2 %v6927_v40 }
 0x4d1   : > { %524 = vperm.xlu2 %3952, %v457_v36  }
 0x4d2   : > { %3956 = vset.pattern.permute.xlu1 %v6881_v19 }
 0x4d3   : > { %2852 = vperm.xlu1 %3956, %v6945_v23   ;;  %v5507_v26 = vpop.xlane.xlu2 %2053 }
 0x4d9   : > { %2468 = vrot.lane.b32.xlu2 %v6951_v22, %s4452_s25 }
 0x4da   : > { %3954 = vset.pattern.permute.xlu2 %v6885_v33 }
 0x4db   : > { %3957 = vset.pattern.permute.xlu1 %v6885_v33  ;;  %v2056_v0 = vpop.xlane.xlu1 %2055 }
 0x4dc   : > { %2336 = vperm.xlu1 %3957, %v6954_v27  }
 0x4e1   : > { %2474 = vrot.lane.b32.xlu2 %v6950_v21, %s4452_s25 }
 0x4e2   : > { %2470 = vrot.lane.b32.xlu0 %v4668_v51, %s4452_s25 }
 0x4e3   : > { %v2058_v39 = vpop.xlane.xlu2 %2057 }
 0x4e4   : > { %3958 = vset.pattern.permute.xlu1 %v6883_v60 }
 0x4e5   : > { %3007 = vperm.xlu1 %3958, %v6949_v52  }
 0x4e9   : > { %2478 = vrot.lane.b32.xlu2 %v6955_v15, %s4452_s25 }
 0x4ea   : > { %2480 = vrot.lane.b32.xlu0 %v6954_v27, %s4452_s25 }
 0x4eb   : > { %v2060_v49 = vpop.xlane.xlu0 %2059 }
 0x4ed   : > { %3960 = vset.pattern.permute.xlu1 %v6881_v19 }
 0x4ee   : > { %2840 = vperm.xlu1 %3960, %v6956_v11  }
 0x4f1   : > { %2484 = vrot.lane.b32.xlu2 %v6957_v14, %s4452_s25 }
 0x4f2   : > { %2486 = vrot.lane.b32.xlu0 %v6952_v63, %s4452_s25 }
 0x4f3   : > { %v5515_v36 = vpop.permute.xlu1 %2149  ;;  %v2062_v19 = vpop.xlane.xlu0 %2061 }
 0x4f6   : > { %2832 = vperm.xlu1 %3960, %v6952_v63  }
 0x4f9   : > { %2490 = vrot.lane.b32.xlu2 %v6956_v11, %s4452_s25 }
 0x4fa   : > { %2492 = vrot.lane.b32.xlu0 %v6947_v42, %s4452_s25 }
 0x4fb   : > { %v2064_v60 = vpop.xlane.xlu2 %2063 }
 0x4fc   : > { %v5522_v33 = vpop.permute.xlu1 %519  ;;  %4140 = vrcp.f32 %v2064_v60 }
 0x4fd   : > { %6958 = vst [vmem:[#allocation32_spill] sm:$0xff] %v5522_v33  ;;  %v2227_v33 = vsub.f32 %v5345_v54, %v5526_v1 }
 0x4fe   : > { %2824 = vperm.xlu1 %3960, %v6946_v53  }
 0x501   : > { %2496 = vrot.lane.b32.xlu2 %v6945_v23, %s4452_s25  ;;  %s3439_s25 = sshll.u32 %s6787_s21, 4  ;;  %s3440_s25 = int_to_ptr.vmem [resolvable:$true] %s3439_s25 }
 0x502   : > { %2356 = vperm.xlu0 %3955, %v6956_v11   ;;  %v4141_v60 = vpop.eup %4140 }
 0x503   : > { %v2066_v30 = vpop.xlane.xlu0 %2065  ;;  %v5535_v63 = vpop.xlane.xlu2 %2037 }
 0x504   : > { %4142 = vrcp.f32 %v2066_v30  ;;  %v5539_v59 = vpop.permute.xlu1 %2466  ;;  %v2220_v30 = vsub.f32 %v5376_v9, %v5526_v1 }
 0x505   : > { %6959 = vst [vmem:[#allocation30_spill] sm:$0xff] %v5539_v59  ;;  %4144 = vtanh.f32 %v2225_v10  ;;  %v2097_v10 = vmul.f32 %v4141_v60, %v5063_v34 }
 0x506   : > { %3962 = vset.pattern.permute.xlu1 %v6960_v17  ;;  %4146 = vtanh.f32 %v2223_v2  ;;  %v2224_v2 = vsub.f32 %v5353_v35, %v5526_v1 }
 0x507   : > { %2308 = vperm.xlu1 %3962, %v4658_v46   ;;  %4148 = vtanh.f32 %v2219_v45  ;;  %v2113_v60 = vmul.f32 %v5424_v58, %v2097_v10  ;;  %v3716_v58 = vld [vmem:[%s6847_s6 + $0xf8] sm:$0xff] }
 0x508   : > { %4150 = vtanh.f32 %v2227_v33 }
 0x509   : > { %2368 = vperm.xlu2 %3954, %v6945_v23   ;;  %4152 = vrcp.f32 %v2060_v49 }
 0x50a   : > { %v4143_v43 = vpop.eup %4142  ;;  %2340 = vperm.xlu0 %3955, %v6946_v53   ;;  %4154 = vrcp.f32 %v2058_v39 }
 0x50b   : > { %v2210_v54 = vpop.permute.xlu2 %2209  ;;  %v5550_v44 = vpop.eup %4144  ;;  %4156 = vrcp.f32 %v2062_v19  ;;  %v2098_v17 = vmul.f32 %v4143_v43, %v5063_v34  ;;  %v3715_v19 = vld [vmem:[%s6847_s6 + $0xf0] sm:$0xff] }
 0x50c   : > { %v2228_v33 = vsub.f32 %v2210_v54, %v5526_v1  ;;  %v5555_v45 = vpop.permute.xlu1 %2472  ;;  %v5557_v49 = vpop.eup %4146  ;;  %4158 = vrcp.f32 %v2056_v0 }
 0x50d   : > { %6961 = vst [vmem:[#allocation28_spill] sm:$0xff] %v5555_v45  ;;  %v5560_v9 = vpop.eup %4148  ;;  %v2114_v0 = vmul.f32 %v5433_v8, %v2098_v17 }
 0x50e   : > { %4160 = vtanh.f32 %v2228_v33  ;;  %v4151_v39 = vpop.eup %4150 }
 0x50f   : > { %4162 = vtanh.f32 %v2220_v30  ;;  %2312 = vperm.xlu1 %3962, %v6951_v22   ;;  %v4153_v35 = vpop.eup %4152  ;;  %v2259_v33 = vmul.f32 %v4151_v39, %v5087_v28 }
 0x510   : > { %4164 = vtanh.f32 %v2224_v2  ;;  %v4155_v54 = vpop.eup %4154  ;;  %v2095_v10 = vmul.f32 %v4153_v35, %v5063_v34 }
 0x511   : > { %4166 = vrcp.f32 %v5495_v31  ;;  %2360 = vperm.xlu2 %3954, %v6947_v42   ;;  %v4157_v43 = vpop.eup %4156  ;;  %v5577_v31 = vadd.f32 %v3715_v19, %v2113_v60  ;;  %v5591_v19 = vadd.f32 %v3716_v58, %v2114_v0  ;;  %v3713_v0 = vld [vmem:[%s6847_s6 + $0xe0] sm:$0xff] }
 0x512   : > { %4168 = vrcp.f32 %v5507_v26  ;;  %2344 = vperm.xlu0 %3955, %v6957_v14   ;;  %v4159_v30 = vpop.eup %4158  ;;  %v2222_v26 = vsub.f32 %v5358_v5, %v5526_v1  ;;  %v2096_v35 = vmul.f32 %v4157_v43, %v5063_v34 }
 0x513   : > { %4170 = vrcp.f32 %v5501_v6  ;;  %v2202_v2 = vpop.permute.xlu2 %2201  ;;  %v2094_v6 = vmul.f32 %v4155_v54, %v5063_v34  ;;  %v2093_v5 = vmul.f32 %v4159_v30, %v5063_v34 }
 0x514   : > { %v4161_v8 = vpop.eup %4160  ;;  %4172 = vrcp.f32 %v5497_v29  ;;  %v2226_v17 = vsub.f32 %v2202_v2, %v5526_v1  ;;  %v5584_v45 = vpop.permute.xlu1 %2476  ;;  %v2111_v29 = vmul.f32 %v5413_v20, %v2095_v10  ;;  %v6963_v2 = vmov 5  }
 0x515   : > { %6962 = vst [vmem:[#allocation26_spill] sm:$0xff] %v5584_v45  ;;  %v5586_v22 = vpop.eup %4162  ;;  %v2260_v60 = vmul.f32 %v4161_v8, %v5087_v28  ;;  %v2275_v45 = vadd.f32 %v2259_v33, %v5577_v31  ;;  %v2112_v58 = vmul.f32 %v5417_v38, %v2096_v35  ;;  %v2110_v30 = vmul.f32 %v5409_v13, %v2094_v6 }
 0x516   : > { %v4165_v39 = vpop.eup %4164  ;;  %4174 = vtanh.f32 %v2226_v17  ;;  %v2162_v6 = vpop.permute.xlu0 %2161 }
 0x517   : > { %v4167_v59 = vpop.eup %4166  ;;  %3963 = vset.pattern.permute.xlu1 %v6963_v2  ;;  %v2276_v46 = vadd.f32 %v2260_v60, %v5591_v19  ;;  %4176 = vtanh.f32 %v2222_v26 }
 0x518   : > { %v4169_v54 = vpop.eup %4168  ;;  %2983 = vperm.xlu1 %3963, %v6946_v53   ;;  %4178 = vrcp.f32 %v5485_v16  ;;  %v3714_v53 = vld [vmem:[%s6847_s6 + $0xe8] sm:$0xff]  ;;  %v3712_v16 = vld [vmem:[%s6847_s6 + $0xd8] sm:$0xff] }
 0x519   : > { %v4171_v43 = vpop.eup %4170  ;;  %2352 = vperm.xlu2 %3954, %v6948_v41   ;;  %v2284_v20 = vpack.c.bf16 %v2276_v46, %v2275_v45  ;;  %4180 = vrcp.f32 %v5480_v37  ;;  %v2092_v38 = vmul.f32 %v4169_v54, %v5063_v34  ;;  %v2109_v46 = vmul.f32 %v5405_v47, %v2093_v5  ;;  %v3711_v47 = vld [vmem:[%s6847_s6 + $0xd0] sm:$0xff] }
 0x51a   : > { %v4173_v10 = vpop.eup %4172  ;;  %2324 = vperm.xlu0 %3955, %v6950_v21   ;;  %4182 = vrcp.f32 %v5489_v4  ;;  %v5617_v45 = vadd.f32 %v3713_v0, %v2111_v29  ;;  %v2091_v8 = vmul.f32 %v4171_v43, %v5063_v34  ;;  %v2257_v4 = vmul.f32 %v5550_v44, %v5087_v28 }
 0x51b   : > { %2291 = vmatpush.bf16.msra.mxu2 %v2284_v20  ;;  %v2182_v13 = vpop.permute.xlu2 %2181  ;;  %4184 = vrcp.f32 %v5473_v18  ;;  %v2089_v17 = vmul.f32 %v4173_v10, %v5063_v34  ;;  %v5630_v35 = vadd.f32 %v3714_v53, %v2112_v58  ;;  %v5633_v60 = vadd.f32 %v3712_v16, %v2110_v30 }
 0x51c   : > { %v4175_v37 = vpop.eup %4174  ;;  %v2221_v33 = vsub.f32 %v2182_v13, %v5526_v1  ;;  %v5622_v26 = vpop.permute.xlu1 %2482  ;;  %v2218_v29 = vsub.f32 %v5463_v56, %v5526_v1  ;;  %v2090_v54 = vmul.f32 %v4167_v59, %v5063_v34  ;;  %v2256_v44 = vmul.f32 %v4165_v39, %v5087_v28  ;;  %v3710_v56 = vld [vmem:[%s6847_s6 + $0xc8] sm:$0xff] }
 0x51d   : > { %v2258_v18 = vmul.f32 %v4175_v37, %v5087_v28  ;;  %v4177_v5 = vpop.eup %4176  ;;  %v2273_v43 = vadd.f32 %v2257_v4, %v5617_v45  ;;  %v5641_v58 = vadd.f32 %v3711_v47, %v2109_v46  ;;  %v2108_v10 = vmul.f32 %v5401_v24, %v2092_v38 }
 0x51e   : > { %4186 = vtanh.f32 %v2221_v33  ;;  %v4179_v0 = vpop.eup %4178  ;;  %v2216_v53 = vsub.f32 %v2162_v6, %v5526_v1  ;;  %v2255_v59 = vmul.f32 %v5557_v49, %v5087_v28  ;;  %v2105_v16 = vmul.f32 %v5397_v50, %v2089_v17  ;;  %v3709_v49 = vld [vmem:[%s6847_s6 + $0xc0] sm:$0xff]  ;;  %v3707_v50 = vld [vmem:[%s6847_s6 + $0xb0] sm:$0xff] }
 0x51f   : > { %v2274_v20 = vadd.f32 %v2258_v18, %v5630_v35  ;;  %v4181_v30 = vpop.eup %4180  ;;  %v2272_v24 = vadd.f32 %v2256_v44, %v5633_v60  ;;  %v2107_v38 = vmul.f32 %v5394_v7, %v2091_v8  ;;  %4188 = vtanh.f32 %v2218_v29  ;;  %v3708_v44 = vld [vmem:[%s6847_s6 + $0xb8] sm:$0xff] }
 0x520   : > { %2987 = vperm.xlu1 %3963, %v6957_v14   ;;  %v4183_v39 = vpop.eup %4182  ;;  %v2254_v37 = vmul.f32 %v4177_v5, %v5087_v28  ;;  %v2088_v33 = vmul.f32 %v4181_v30, %v5063_v34  ;;  %v2271_v7 = vadd.f32 %v2255_v59, %v5641_v58  ;;  %v5665_v8 = vadd.f32 %v3710_v56, %v2108_v10 }
 0x521   : > { %2332 = vperm.xlu2 %3954, %v6955_v15   ;;  %v2283_v46 = vpack.c.bf16 %v2274_v20, %v2273_v43  ;;  %v4185_v13 = vpop.eup %4184  ;;  %v2106_v47 = vmul.f32 %v5387_v12, %v2090_v54  ;;  %v2215_v6 = vsub.f32 %v5478_v61, %v5526_v1  ;;  %v2087_v18 = vmul.f32 %v4183_v39, %v5063_v34 }
 0x522   : > { %2328 = vperm.xlu0 %3955, %v4688_v62   ;;  %4190 = vtanh.f32 %v2216_v53  ;;  %v2282_v43 = vpack.c.bf16 %v2272_v24, %v2271_v7  ;;  %v5677_v20 = vadd.f32 %v3709_v49, %v2107_v38  ;;  %v5680_v54 = vadd.f32 %v3707_v50, %v2105_v16 }
 0x523   : > { %2292 = vmatpush.bf16.msra.mxu2 %v2283_v46  ;;  %v2166_v4 = vpop.permute.xlu2 %2165  ;;  %v2085_v61 = vmul.f32 %v4179_v0, %v5063_v34  ;;  %v2086_v10 = vmul.f32 %v4185_v13, %v5063_v34  ;;  %v2251_v30 = vmul.f32 %v5560_v9, %v5087_v28  ;;  %v2104_v53 = vmul.f32 %v5390_v25, %v2088_v33  ;;  %v3706_v9 = vld [vmem:[%s6847_s6 + $0xa8] sm:$0xff] }
 0x524   : > { %v4187_v17 = vpop.eup %4186  ;;  %v2217_v5 = vsub.f32 %v2166_v4, %v5526_v1  ;;  %v5672_v29 = vpop.permute.xlu1 %2488  ;;  %v2270_v56 = vadd.f32 %v2254_v37, %v5665_v8  ;;  %v5689_v39 = vadd.f32 %v3708_v44, %v2106_v47  ;;  %v6964_v16 = vmov 4   ;;  %v3703_v47 = vld [vmem:[%s6847_s6 + $0x90] sm:$0xff]  ;;  %v459_v44 = vld [vmem:[%s6844_s3 + $0x38] sm:$0xff] }
 0x525   : > { %v2253_v12 = vmul.f32 %v4187_v17, %v5087_v28  ;;  %v4189_v46 = vpop.eup %4188  ;;  %v2252_v0 = vmul.f32 %v5586_v22, %v5087_v28  ;;  %v2267_v24 = vadd.f32 %v2251_v30, %v5680_v54  ;;  %v2103_v38 = vmul.f32 %v5378_v32, %v2087_v18  ;;  %v3705_v22 = vld [vmem:[%s6847_s6 + $0xa0] sm:$0xff]  ;;  %v3704_v17 = vld [vmem:[%s6847_s6 + $0x98] sm:$0xff] }
 0x526   : > { %4192 = vtanh.f32 %v2217_v5  ;;  %v5707_v50 = vadd.f32 %v3706_v9, %v2104_v53  ;;  %v2101_v33 = vmul.f32 %v5373_v3, %v2085_v61  ;;  %v2102_v4 = vmul.f32 %v5383_v48, %v2086_v10 }
 0x527   : > { %2293 = vmatpush.bf16.msra.mxu2 %v2282_v43  ;;  %v2269_v59 = vadd.f32 %v2253_v12, %v5677_v20  ;;  %4194 = vtanh.f32 %v2215_v6  ;;  %v2268_v37 = vadd.f32 %v2252_v0, %v5689_v39  ;;  %v5720_v18 = vadd.f32 %v3705_v22, %v2103_v38  ;;  %v924_v38 = vpop.f32.mrf.mxu0 }
 0x528   : > { %3964 = vset.pattern.permute.xlu1 %v6964_v16  ;;  %v4191_v13 = vpop.eup %4190  ;;  %v5729_v61 = vadd.f32 %v3703_v47, %v2101_v33  ;;  %v5731_v10 = vadd.f32 %v3704_v17, %v2102_v4  ;;  %v2213_v4 = vsub.f32 %v5515_v36, %v5526_v1 }
 0x529   : > { %2816 = vperm.xlu1 %3964, %v6955_v15   ;;  %3959 = vset.pattern.permute.xlu2 %v6963_v2  ;;  %v2281_v25 = vpack.c.bf16 %v2270_v56, %v2269_v59  ;;  %v2280_v6 = vpack.c.bf16 %v2268_v37, %v2267_v24  ;;  %v2248_v48 = vmul.f32 %v4191_v13, %v5087_v28  ;;  %v5738_v56 = vperm.slane %v4677_v57, 3 }
 0x52a   : > { %3011 = vperm.xlu2 %3959, %v6945_v23   ;;  %2316 = vperm.xlu0 %3955, %v4668_v51   ;;  %v2250_v23 = vmul.f32 %v4189_v46, %v5087_v28 }
 0x52b   : > { %2294 = vmatpush.bf16.msra.mxu2 %v2281_v25  ;;  %v2154_v49 = vpop.permute.xlu2 %2153  ;;  %v2264_v59 = vadd.f32 %v2248_v48, %v5731_v10 }
 0x52c   : > { %v4193_v32 = vpop.eup %4192  ;;  %v5711_v7 = vpop.permute.xlu1 %2494  ;;  %v2266_v12 = vadd.f32 %v2250_v23, %v5707_v50  ;;  %v2214_v37 = vsub.f32 %v2154_v49, %v5526_v1  ;;  %v6965_v1 = vld [vmem:[#allocation32_spill] sm:$0xff] }
 0x52d   : > { %v2249_v3 = vmul.f32 %v4193_v32, %v5087_v28  ;;  %v4195_v5 = vpop.eup %4194  ;;  %v925_v36 = vadd.f32 %v924_v38, %v6965_v1 }
 0x52e   : > { %v2247_v53 = vmul.f32 %v4195_v5, %v5087_v28 }
 0x52f   : > { %2295 = vmatpush.bf16.msra.mxu2 %v2280_v6  ;;  %v2265_v43 = vadd.f32 %v2249_v3, %v5720_v18  ;;  %v926_v47 = vpop.f32.mrf.mxu0  ;;  %v3833_v3 = vld [vmem:[%s6843_s2 + $0x20] sm:$0xff] }
 0x530   : > { %v2263_v0 = vadd.f32 %v2247_v53, %v5729_v61 }
 0x531   : > { %3968 = vset.pattern.permute.xlu1 %v6927_v40  ;;  %v2279_v30 = vpack.c.bf16 %v2266_v12, %v2265_v43 }
 0x532   : > { %534 = vperm.xlu1 %3968, %v459_v44   ;;  %2999 = vperm.xlu2 %3959, %v6956_v11   ;;  %v2278_v24 = vpack.c.bf16 %v2264_v59, %v2263_v0  ;;  %v1032_v44 = vmax.f32 %v925_v36, 0.0  ;;  %v3702_v0 = vld [vmem:[%s6847_s6 + $0x88] sm:$0xff] }
 0x533   : > { %2320 = vperm.xlu0 %3955, %v6944_v55   ;;  %2296 = vmatpush.bf16.msra.mxu2 %v2279_v30  ;;  %v525_v46 = vpop.permute.xlu2 %524  ;;  %v6966_v30 = vld [vmem:[#allocation34_spill] sm:$0xff] }
 0x534   : > { %v2365_v9 = vpop.permute.xlu1 %2364 }
 0x535   : > { %v2386_v25 = vsub.f32 %v2365_v9, %v5738_v56  ;;  %v6967_v9 = vld [vmem:[#allocation31_spill] sm:$0xff] }
 0x537   : > { %4196 = vtanh.f32 %v2386_v25  ;;  %2297 = vmatpush.bf16.msra.mxu2 %v2278_v24 }
 0x538   : > { %4198 = vrcp.f32 %v5535_v63  ;;  %v5766_v63 = vperm.slane %v4677_v57, 4 }
 0x539   : > { %4200 = vtanh.f32 %v2214_v37 }
 0x53a   : > { %3969 = vset.pattern.permute.xlu1 %v6963_v2  ;;  %2995 = vperm.xlu2 %3959, %v6948_v41  }
 0x53b   : > { %3961 = vset.pattern.permute.xlu0 %v6964_v16  ;;  %2971 = vperm.xlu1 %3969, %v4688_v62   ;;  %v5747_v11 = vpop.permute.xlu2 %2468 }
 0x53c   : > { %2848 = vperm.xlu0 %3961, %v6949_v52   ;;  %v5751_v13 = vpop.permute.xlu1 %2348 }
 0x53d   : > { %v4197_v22 = vpop.eup %4196 }
 0x53e   : > { %v2418_v33 = vmul.f32 %v4197_v22, %v5087_v28  ;;  %v4199_v17 = vpop.eup %4198  ;;  %v1185_v22 = vpack.c.bf16 %v1032_v44, %v1032_v44  ;;  %v5809_v44 = vperm.slane %v4677_v57, 5 }
 0x53f   : > { %v2084_v49 = vmul.f32 %v4199_v17, %v5063_v34  ;;  %v4201_v48 = vpop.eup %4200 }
 0x540   : > { %v5758_v32 = vadd.f32 %v2418_v33, %v5577_v31  ;;  %v927_v31 = vadd.f32 %v926_v47, %v525_v46  ;;  %v3701_v46 = vld [vmem:[%s6847_s6 + $0x80] sm:$0xff]  ;;  %v2246_v38 = vmul.f32 %v4201_v48, %v5087_v28  ;;  %v2287_v36 = vunpack.c.l.b16 %v1185_v22 }
 0x541   : > { %v2036_v23 = vpop.xlane.xlu0 %2035  ;;  %v2100_v53 = vmul.f32 %v6966_v30, %v2084_v49 }
 0x542   : > { %4202 = vrcp.f32 %v2036_v23  ;;  %3965 = vset.pattern.permute.xlu2 %v6964_v16  ;;  %v1033_v43 = vmax.f32 %v927_v31, 0.0 }
 0x543   : > { %3970 = vset.pattern.permute.xlu1 %v6964_v16  ;;  %2820 = vperm.xlu2 %3965, %v6954_v27   ;;  %v5763_v52 = vpop.permute.xlu2 %2474  ;;  %4204 = vtanh.f32 %v2213_v4  ;;  %v5793_v4 = vadd.f32 %v3702_v0, %v2100_v53 }
 0x544   : > { %2844 = vperm.xlu0 %3961, %v6947_v42   ;;  %2804 = vperm.xlu1 %3970, %v6944_v55   ;;  %v1186_v37 = vpack.c.bf16 %v1033_v43, %v1033_v43 }
 0x545   : > { %v5772_v6 = vpop.permute.xlu1 %2852  ;;  %v2262_v1 = vadd.f32 %v2246_v38, %v5793_v4 }
 0x546   : > { %v2288_v31 = vunpack.c.l.b16 %v1186_v37 }
 0x548   : > { %v4203_v5 = vpop.eup %4202  ;;  %v2289_v48 = vpack.c.b16 %v2288_v31, %v2287_v36 }
 0x549   : > { %v2083_v12 = vmul.f32 %v4203_v5, %v5063_v34  ;;  %v4205_v59 = vpop.eup %4204 }
 0x54a   : > { %v2245_v23 = vmul.f32 %v4205_v59, %v5087_v28 }
 0x54b   : > { %v2099_v25 = vmul.f32 %v6967_v9, %v2083_v12  ;;  %3966 = vset.pattern.permute.xlu2 %v6963_v2  ;;  %v5786_v24 = vpop.permute.xlu2 %2478  ;;  %v6970_v9 = vld [vmem:[#allocation30_spill] sm:$0xff] }
 0x54c   : > { %2836 = vperm.xlu0 %3961, %v6948_v41   ;;  %2979 = vperm.xlu2 %3966, %v6954_v27   ;;  %v2498_v27 = vrot.slane %v4677_v57, 4 }
 0x54d   : > { %v5791_v33 = vadd.f32 %v3701_v46, %v2099_v25  ;;  %3977 = vset.pattern.permute.xlu1 %v6927_v40  ;;  %v6969_v46 = vld [vmem:[#allocation9_spill] sm:$0xff] }
 0x54e   : > { %v5797_v47 = vpop.permute.xlu1 %2336 }
 0x54f   : > { %v2261_v17 = vadd.f32 %v2245_v23, %v5791_v33 }
 0x551   : > { %v2277_v49 = vpack.c.bf16 %v2262_v1, %v2261_v17 }
 0x553   : > { %2298 = vmatpush.bf16.msra.mxu2 %v2277_v49  ;;  %v5801_v41 = vpop.permute.xlu2 %2484 }
 0x554   : > { %2828 = vperm.xlu0 %3961, %v6957_v14   ;;  %3967 = vset.pattern.permute.xlu2 %v6964_v16  ;;  %v2471_v5 = vpop.permute.xlu0 %2470 }
 0x555   : > { %2808 = vperm.xlu2 %3967, %v6950_v21  }
 0x556   : > { %2299 = vmatmul.bf16.vlgmr.msra.gmra.mxu2 %v2289_v48 }
 0x557   : > { %3717 = vmatpush.msk.msrb.mxu2 %vm1242_vm1, %v2498_v27  ;;  %v5811_v43 = vpop.permute.xlu1 %3007  ;;  %v6972_v27 = vld [vmem:[#allocation19_spill] sm:$0xff] }
 0x558   : > { %6968 = vst [vmem:[#allocation29_spill] sm:$0xff] %v5811_v43  ;;  %v3842_v43 = vld [vmem:[%s6843_s2 + $0x68] sm:$0xff] }
 0x55b   : > { %v5815_v30 = vpop.permute.xlu2 %2490 }
 0x55c   : > { %2800 = vperm.xlu0 %3961, %v4668_v51   ;;  %v5818_v14 = vpop.permute.xlu0 %2480 }
 0x55d   : > { %2812 = vperm.xlu2 %3967, %v4688_v62  }
 0x560   : > { %v5821_v53 = vpop.permute.xlu1 %2840 }
 0x563   : > { %v5825_v59 = vpop.permute.xlu2 %2496 }
 0x564   : > { %2792 = vperm.xlu0 %3961, %v6969_v46   ;;  %v5828_v0 = vpop.permute.xlu0 %2486 }
 0x565   : > { %3971 = vset.pattern.permute.xlu2 %v6963_v2 }
 0x566   : > { %2959 = vperm.xlu2 %3971, %v4668_v51   ;;  %3718 = vmatmul.msk.f32.vlgmr.msrb.gmra.mxu2 %vm1193_vm2, %v6970_v9  ;;  %v6971_v51 = vld [vmem:[#allocation10_spill] sm:$0xff] }
 0x568   : > { %v5834_v25 = vpop.permute.xlu1 %2832 }
 0x56b   : > { %v2369_v38 = vpop.permute.xlu2 %2368 }
 0x56c   : > { %3972 = vset.pattern.permute.xlu0 %v6963_v2  ;;  %v2387_v22 = vsub.f32 %v2369_v38, %v5738_v56  ;;  %v5840_v37 = vpop.permute.xlu0 %2492 }
 0x56d   : > { %3003 = vperm.xlu0 %3972, %v6947_v42  }
 0x56e   : > { %4206 = vtanh.f32 %v2387_v22  ;;  %3973 = vset.pattern.permute.xlu2 %v6964_v16  ;;  %3719 = vmatmul.msk.f32.gmra.mxu2 %vm1193_vm2, %v5747_v11  ;;  %v2382_v11 = vsub.f32 %v5751_v13, %v5738_v56 }
 0x56f   : > { %2796 = vperm.xlu2 %3973, %v6971_v51  }
 0x570   : > { %v5847_v23 = vpop.permute.xlu1 %2824 }
 0x573   : > { %v2361_v1 = vpop.permute.xlu2 %2360 }
 0x574   : > { %v4207_v36 = vpop.eup %4206  ;;  %v2385_v31 = vsub.f32 %v2361_v1, %v5738_v56  ;;  %v2357_v49 = vpop.permute.xlu0 %2356 }
 0x575   : > { %2991 = vperm.xlu0 %3972, %v6972_v27   ;;  %v2384_v42 = vsub.f32 %v2357_v49, %v5738_v56  ;;  %v2419_v16 = vmul.f32 %v4207_v36, %v5087_v28 }
 0x576   : > { %4208 = vtanh.f32 %v2385_v31  ;;  %3720 = vmatmul.msk.f32.gmra.mxu2 %vm1193_vm2, %v2471_v5 }
 0x577   : > { %4210 = vtanh.f32 %v2384_v42  ;;  %3974 = vset.pattern.permute.xlu2 %v6963_v2  ;;  %v2435_v48 = vadd.f32 %v2419_v16, %v5591_v19 }
 0x578   : > { %2951 = vperm.xlu2 %3974, %v6969_v46   ;;  %4212 = vtanh.f32 %v2382_v11  ;;  %v6973_v46 = vld [vmem:[#allocation28_spill] sm:$0xff] }
 0x579   : > { %v2309_v9 = vpop.permute.xlu1 %2308  ;;  %v2443_v38 = vpack.c.bf16 %v2435_v48, %v5758_v32 }
 0x57a   : > { %v2372_v22 = vsub.f32 %v2309_v9, %v5738_v56 }
 0x57b   : > { %2450 = vmatpush.bf16.msrb.mxu1 %v2443_v38  ;;  %v2353_v1 = vpop.permute.xlu2 %2352 }
 0x57c   : > { %v4209_v36 = vpop.eup %4208  ;;  %4214 = vtanh.f32 %v2372_v22  ;;  %v2383_v13 = vsub.f32 %v2353_v1, %v5738_v56  ;;  %v2341_v5 = vpop.permute.xlu0 %2340 }
 0x57d   : > { %v4211_v31 = vpop.eup %4210  ;;  %2975 = vperm.xlu0 %3972, %v6955_v15   ;;  %v2417_v19 = vmul.f32 %v4209_v36, %v5087_v28  ;;  %v2380_v49 = vsub.f32 %v2341_v5, %v5738_v56  ;;  %v2379_v15 = vsub.f32 %v5797_v47, %v5738_v56 }
 0x57e   : > { %4216 = vtanh.f32 %v2383_v13  ;;  %3721 = vmatmul.msk.f32.gmra.mxu2 %vm1193_vm2, %v6973_v46  ;;  %v2416_v32 = vmul.f32 %v4211_v31, %v5087_v28  ;;  %v4213_v42 = vpop.eup %4212 }
 0x57f   : > { %v2433_v27 = vadd.f32 %v2417_v19, %v5630_v35  ;;  %4218 = vtanh.f32 %v2380_v49  ;;  %v2414_v1 = vmul.f32 %v4213_v42, %v5087_v28 }
 0x580   : > { %v2432_v16 = vadd.f32 %v2416_v32, %v5617_v45  ;;  %3976 = vset.pattern.permute.xlu2 %v6927_v40 }
 0x581   : > { %v2313_v11 = vpop.permute.xlu1 %2312  ;;  %v2430_v19 = vadd.f32 %v2414_v1, %v5641_v58 }
 0x582   : > { %v4215_v48 = vpop.eup %4214  ;;  %v2373_v9 = vsub.f32 %v2313_v11, %v5738_v56  ;;  %v2442_v38 = vpack.c.bf16 %v2433_v27, %v2432_v16 }
 0x583   : > { %v2333_v22 = vpop.permute.xlu2 %2332  ;;  %v2404_v36 = vmul.f32 %v4215_v48, %v5087_v28 }
 0x584   : > { %v4217_v35 = vpop.eup %4216  ;;  %4220 = vtanh.f32 %v2373_v9  ;;  %v2378_v45 = vsub.f32 %v2333_v22, %v5738_v56  ;;  %v2345_v13 = vpop.permute.xlu0 %2344  ;;  %2451 = vmatpush.bf16.msrb.mxu1 %v2442_v38  ;;  %v6975_v38 = vld [vmem:[#allocation26_spill] sm:$0xff] }
 0x585   : > { %4222 = vtanh.f32 %v2379_v15  ;;  %2967 = vperm.xlu0 %3972, %v6950_v21   ;;  %v2381_v47 = vsub.f32 %v2345_v13, %v5738_v56  ;;  %v2415_v5 = vmul.f32 %v4217_v35, %v5087_v28  ;;  %v5883_v31 = vadd.f32 %v2404_v36, %v5791_v33  ;;  %v4219_v32 = vpop.eup %4218 }
 0x586   : > { %4224 = vtanh.f32 %v2378_v45  ;;  %3722 = vmatmul.msk.f32.gmra.mxu2 %vm1193_vm2, %v5763_v52 }
 0x587   : > { %4226 = vtanh.f32 %v2381_v47  ;;  %v2431_v46 = vadd.f32 %v2415_v5, %v5633_v60  ;;  %v2412_v60 = vmul.f32 %v4219_v32, %v5087_v28 }
 0x589   : > { %v2441_v49 = vpack.c.bf16 %v2431_v46, %v2430_v19  ;;  %v2428_v45 = vadd.f32 %v2412_v60, %v5677_v20 }
 0x58a   : > { %v4221_v27 = vpop.eup %4220  ;;  %v5889_v21 = vpop.permute.xlu1 %2983 }
 0x58b   : > { %v4223_v42 = vpop.eup %4222  ;;  %2452 = vmatpush.bf16.msrb.mxu1 %v2441_v49  ;;  %v5893_v33 = vpop.permute.xlu2 %3011  ;;  %v2405_v15 = vmul.f32 %v4221_v27, %v5087_v28 }
 0x58c   : > { %6974 = vst [vmem:[#allocation13_spill] sm:$0xff] %v5893_v33  ;;  %v4225_v52 = vpop.eup %4224  ;;  %v2325_v11 = vpop.permute.xlu0 %2324 }
 0x58d   : > { %v4227_v48 = vpop.eup %4226  ;;  %2963 = vperm.xlu0 %3972, %v6944_v55   ;;  %v5901_v9 = vadd.f32 %v2405_v15, %v5793_v4  ;;  %v2410_v1 = vmul.f32 %v4225_v52, %v5087_v28  ;;  %v2376_v36 = vsub.f32 %v2325_v11, %v5738_v56  ;;  %v2411_v55 = vmul.f32 %v4223_v42, %v5087_v28 }
 0x58e   : > { %3723 = vmatmul.msk.f32.gmra.mxu2 %vm1193_vm2, %v6975_v38  ;;  %v2413_v22 = vmul.f32 %v4227_v48, %v5087_v28 }
 0x58f   : > { %v2436_v35 = vpack.c.bf16 %v5901_v9, %v5883_v31  ;;  %v2426_v5 = vadd.f32 %v2410_v1, %v5680_v54  ;;  %4228 = vtanh.f32 %v2376_v36 }
 0x590   : > { %v2429_v13 = vadd.f32 %v2413_v22, %v5665_v8  ;;  %v2427_v8 = vadd.f32 %v2411_v55, %v5689_v39  ;;  %v3835_v39 = vld [vmem:[%s6843_s2 + $0x30] sm:$0xff] }
 0x592   : > { %v5913_v4 = vpop.permute.xlu1 %2987  ;;  %v2440_v47 = vpack.c.bf16 %v2429_v13, %v2428_v45  ;;  %v2439_v54 = vpack.c.bf16 %v2427_v8, %v2426_v5 }
 0x593   : > { %v5918_v46 = vpop.permute.xlu2 %2999 }
 0x594   : > { %v2329_v49 = vpop.permute.xlu0 %2328  ;;  %2453 = vmatpush.bf16.msrb.mxu1 %v2440_v47 }
 0x595   : > { %2955 = vperm.xlu0 %3972, %v6971_v51   ;;  %v2377_v20 = vsub.f32 %v2329_v49, %v5738_v56  ;;  %v4229_v27 = vpop.eup %4228 }
 0x596   : > { %3724 = vmatmul.msk.f32.gmra.mxu2 %vm1193_vm2, %v5786_v24  ;;  %v2408_v11 = vmul.f32 %v4229_v27, %v5087_v28 }
 0x597   : > { %4230 = vtanh.f32 %v2377_v20 }
 0x598   : > { %2454 = vmatpush.bf16.msrb.mxu1 %v2439_v54  ;;  %v2424_v38 = vadd.f32 %v2408_v11, %v5720_v18 }
 0x59b   : > { %v5927_v42 = vpop.permute.xlu1 %2816  ;;  %v5929_v15 = vpop.permute.xlu2 %2995 }
 0x59c   : > { %v2317_v51 = vpop.permute.xlu0 %2316 }
 0x59d   : > { %v4231_v60 = vpop.eup %4230  ;;  %3975 = vset.pattern.permute.xlu0 %v6927_v40  ;;  %v2374_v48 = vsub.f32 %v2317_v51, %v5738_v56 }
 0x59e   : > { %3725 = vmatmul.msk.f32.gmra.mxu2 %vm1193_vm2, %v5818_v14  ;;  %v2409_v24 = vmul.f32 %v4231_v60, %v5087_v28 }
 0x59f   : > { %4232 = vtanh.f32 %v2374_v48 }
 0x5a0   : > { %v2425_v22 = vadd.f32 %v2409_v24, %v5707_v50 }
 0x5a2   : > { %v2438_v1 = vpack.c.bf16 %v2425_v22, %v2424_v38 }
 0x5a3   : > { %v5943_v36 = vpop.permute.xlu2 %2820 }
 0x5a4   : > { %2455 = vmatpush.bf16.msrb.mxu1 %v2438_v1  ;;  %v5947_v40 = vpop.permute.xlu1 %534 }
 0x5a5   : > { %v2321_v13 = vpop.permute.xlu0 %2320  ;;  %v4233_v18 = vpop.eup %4232 }
 0x5a6   : > { %v2375_v14 = vsub.f32 %v2321_v13, %v5738_v56  ;;  %3726 = vmatmul.msk.f32.gmra.mxu2 %vm1193_vm2, %v5622_v26  ;;  %v2406_v5 = vmul.f32 %v4233_v18, %v5087_v28 }
 0x5a8   : > { %4234 = vtanh.f32 %v2375_v14  ;;  %v2422_v54 = vadd.f32 %v2406_v5, %v5729_v61 }
 0x5ab   : > { %v5952_v55 = vpop.permute.xlu2 %2979 }
 0x5ad   : > { %v5956_v47 = vpop.permute.xlu1 %2971 }
 0x5ae   : > { %v4235_v49 = vpop.eup %4234  ;;  %v5961_v20 = vpop.permute.xlu0 %2848  ;;  %3727 = vmatmul.msk.f32.gmra.mxu2 %vm1193_vm2, %v5801_v41  ;;  %v3840_v41 = vld [vmem:[%s6843_s2 + $0x58] sm:$0xff] }
 0x5af   : > { %6976 = vst [vmem:[#allocation24_spill] sm:$0xff] %v5961_v20  ;;  %v2407_v56 = vmul.f32 %v4235_v49, %v5087_v28 }
 0x5b1   : > { %v2423_v27 = vadd.f32 %v2407_v56, %v5731_v10 }
 0x5b3   : > { %v5970_v51 = vpop.permute.xlu2 %2808  ;;  %v2437_v11 = vpack.c.bf16 %v2423_v27, %v2422_v54 }
 0x5b5   : > { %2456 = vmatpush.bf16.msrb.mxu1 %v2437_v11 }
 0x5b6   : > { %v5974_v24 = vpop.permute.xlu0 %2844  ;;  %3728 = vmatmul.msk.f32.gmra.mxu2 %vm1193_vm2, %v5828_v0 }
 0x5b9   : > { %2457 = vmatpush.bf16.msrb.mxu1 %v2436_v35 }
 0x5bb   : > { %v5983_v61 = vpop.permute.xlu2 %2812 }
 0x5be   : > { %v5987_v48 = vpop.permute.xlu0 %2836  ;;  %3729 = vmatmul.msk.f32.gmra.mxu2 %vm1193_vm2, %v5672_v29  ;;  %v3832_v29 = vld [vmem:[%s6843_s2 + $0x18] sm:$0xff] }
 0x5bf   : > { %3631 = vmatmul.msk.bf16.gmra.mxu0 %vm835_vm0, %v3832_v29 }
 0x5c3   : > { %v5993_v38 = vpop.permute.xlu2 %2959 }
 0x5c6   : > { %v5997_v31 = vpop.permute.xlu0 %2828  ;;  %3730 = vmatmul.msk.f32.gmra.mxu2 %vm1193_vm2, %v5815_v30 }
 0x5cb   : > { %v6006_v35 = vpop.permute.xlu2 %2796 }
 0x5ce   : > { %v6011_v13 = vpop.permute.xlu0 %2800  ;;  %3731 = vmatmul.msk.f32.gmra.mxu2 %vm1193_vm2, %v5840_v37 }
 0x5cf   : > { %3632 = vmatmul.msk.bf16.gmra.mxu0 %vm835_vm0, %v3833_v3 }
 0x5d3   : > { %v6135_v1 = vpop.permute.xlu2 %2951 }
 0x5d6   : > { %v6017_v14 = vpop.permute.xlu0 %2792  ;;  %3732 = vmatmul.msk.f32.gmra.mxu2 %vm1193_vm2, %v5711_v7  ;;  %v3834_v7 = vld [vmem:[%s6843_s2 + $0x28] sm:$0xff] }
 0x5d9   : > { %v6023_v5 = vpop.f32.mrf.mxu2 }
 0x5da   : > { %6977 = vst [vmem:[#allocation17_spill] sm:$0xff] %v6023_v5 }
 0x5de   : > { %3733 = vmatmul.msk.f32.gmra.mxu2 %vm1193_vm2, %v5825_v59 }
 0x5df   : > { %v6027_v49 = vpop.permute.xlu0 %3003  ;;  %3633 = vmatmul.msk.bf16.gmra.mxu0 %vm835_vm0, %v3834_v7  ;;  %v3836_v7 = vld [vmem:[%s6843_s2 + $0x38] sm:$0xff] }
 0x5e1   : > { %v6031_v56 = vpop.f32.mrf.mxu2 }
 0x5e2   : > { %6978 = vst [vmem:[#allocation22_spill] sm:$0xff] %v6031_v56 }
 0x5e7   : > { %v6035_v27 = vpop.permute.xlu0 %2991 }
 0x5e9   : > { %v6039_v11 = vpop.f32.mrf.mxu2 }
 0x5ea   : > { %2598 = vmax.xlane.f32.xlu2 %v6039_v11 }
 0x5ef   : > { %v6042_v59 = vpop.permute.xlu0 %2975  ;;  %3634 = vmatmul.msk.bf16.gmra.mxu0 %vm835_vm0, %v3835_v39  ;;  %v3837_v39 = vld [vmem:[%s6843_s2 + $0x40] sm:$0xff] }
 0x5f1   : > { %v2553_v26 = vpop.f32.mrf.mxu2 }
 0x5f2   : > { %2600 = vmax.xlane.f32.xlu0 %v2553_v26 }
 0x5f7   : > { %v6046_v58 = vpop.permute.xlu0 %2967 }
 0x5f9   : > { %v2556_v12 = vpop.f32.mrf.mxu2 }
 0x5fa   : > { %2602 = vmax.xlane.f32.xlu0 %v2556_v12 }
 0x5ff   : > { %v6054_v37 = vpop.permute.xlu0 %2963  ;;  %3635 = vmatmul.msk.bf16.gmra.mxu0 %vm835_vm0, %v3836_v7  ;;  %v3838_v7 = vld [vmem:[%s6843_s2 + $0x48] sm:$0xff] }
 0x601   : > { %v6058_v32 = vpop.f32.mrf.mxu2 }
 0x602   : > { %2604 = vmax.xlane.f32.xlu1 %v6058_v32 }
 0x607   : > { %v6118_v52 = vpop.permute.xlu0 %2955 }
 0x609   : > { %v6061_v57 = vpop.f32.mrf.mxu2 }
 0x60a   : > { %2606 = vmax.xlane.f32.xlu1 %v6061_v57 }
 0x60f   : > { %3636 = vmatmul.msk.bf16.gmra.mxu0 %vm835_vm0, %v3837_v39  ;;  %v3839_v39 = vld [vmem:[%s6843_s2 + $0x50] sm:$0xff] }
 0x611   : > { %v6068_v3 = vpop.f32.mrf.mxu2 }
 0x612   : > { %2608 = vmax.xlane.f32.xlu2 %v6068_v3 }
 0x619   : > { %v6071_v0 = vpop.f32.mrf.mxu2 }
 0x61a   : > { %2610 = vmax.xlane.f32.xlu2 %v6071_v0 }
 0x61f   : > { %3637 = vmatmul.msk.bf16.gmra.mxu0 %vm835_vm0, %v3838_v7  ;;  %v460_v7 = vld [vmem:[%s6844_s3 + $0x40] sm:$0xff] }
 0x621   : > { %v6078_v62 = vpop.f32.mrf.mxu2 }
 0x622   : > { %2612 = vmax.xlane.f32.xlu0 %v6078_v62 }
 0x629   : > { %v6081_v9 = vpop.f32.mrf.mxu2 }
 0x62a   : > { %2614 = vmax.xlane.f32.xlu0 %v6081_v9 }
 0x62f   : > { %3638 = vmatmul.msk.bf16.gmra.mxu0 %vm835_vm0, %v3839_v39  ;;  %v458_v39 = vld [vmem:[%s6844_s3 + $0x30] sm:$0xff] }
 0x631   : > { %v6088_v19 = vpop.f32.mrf.mxu2 }
 0x632   : > { %2616 = vmax.xlane.f32.xlu1 %v6088_v19 }
 0x639   : > { %v6091_v16 = vpop.f32.mrf.mxu2 }
 0x63a   : > { %2618 = vmax.xlane.f32.xlu1 %v6091_v16 }
 0x63f   : > { %3639 = vmatmul.msk.bf16.gmra.mxu0 %vm835_vm0, %v3840_v41 }
 0x641   : > { %v6098_v17 = vpop.f32.mrf.mxu2 }
 0x642   : > { %2620 = vmax.xlane.f32.xlu2 %v6098_v17 }
 0x649   : > { %v6101_v29 = vpop.f32.mrf.mxu2 }
 0x64a   : > { %2622 = vmax.xlane.f32.xlu2 %v6101_v29 }
 0x651   : > { %v6108_v50 = vpop.f32.mrf.mxu2 }
 0x652   : > { %2624 = vmax.xlane.f32.xlu0 %v6108_v50 }
 0x659   : > { %v6111_v45 = vpop.f32.mrf.mxu2 }
 0x65a   : > { %2626 = vmax.xlane.f32.xlu0 %v6111_v45 }
 0x661   : > { %v6123_v54 = vpop.f32.mrf.mxu2 }
 0x662   : > { %539 = vperm.xlu2 %3976, %v460_v7   ;;  %2628 = vmax.xlane.f32.xlu1 %v6123_v54 }
 0x665   : > { %v2601_v10 = vpop.xlane.xlu0 %2600 }
 0x666   : > { %v2631_v60 = vsub.f32 %v2553_v26, %v2601_v10  ;;  %v6138_v26 = vpop.permute.xlu1 %2804 }
 0x668   : > { %v2648_v8 = vmul.f32 1.442695, %v2631_v60  ;;  %v2599_v60 = vpop.xlane.xlu2 %2598 }
 0x669   : > { %v2630_v41 = vsub.f32 %v6039_v11, %v2599_v60  ;;  %v6159_v60 = vpop.f32.mrf.mxu0 }
 0x66a   : > { %4236 = vpow2.f32 %v2648_v8 }
 0x66d   : > { %v2603_v30 = vpop.xlane.xlu0 %2602 }
 0x66e   : > { %v2632_v22 = vsub.f32 %v2556_v12, %v2603_v30  ;;  %529 = vperm.xlu0 %3975, %v458_v39   ;;  %v3841_v12 = vld [vmem:[%s6843_s2 + $0x60] sm:$0xff] }
 0x66f   : > { %3640 = vmatmul.msk.bf16.gmra.mxu0 %vm835_vm0, %v3841_v12 }
 0x670   : > { %v6133_v7 = vpop.eup %4236  ;;  %v2650_v18 = vmul.f32 1.442695, %v2632_v22  ;;  %v2646_v22 = vmul.f32 1.442695, %v2630_v41 }
 0x671   : > { %2680 = vadd.xlane.f32.xlu1 %v6133_v7 }
 0x672   : > { %4238 = vpow2.f32 %v2650_v18 }
 0x673   : > { %4240 = vpow2.f32 %v2646_v22 }
 0x675   : > { %v2605_v10 = vpop.xlane.xlu1 %2604 }
 0x676   : > { %v2633_v30 = vsub.f32 %v6058_v32, %v2605_v10  ;;  %v3843_v10 = vld [vmem:[%s6843_s2 + $0x70] sm:$0xff] }
 0x678   : > { %v6140_v8 = vpop.eup %4238  ;;  %v2652_v56 = vmul.f32 1.442695, %v2633_v30 }
 0x679   : > { %2682 = vadd.xlane.f32.xlu1 %v6140_v8  ;;  %v6154_v12 = vpop.eup %4240 }
 0x67d   : > { %v2607_v39 = vpop.xlane.xlu1 %2606 }
 0x67e   : > { %v2634_v33 = vsub.f32 %v6061_v57, %v2607_v39 }
 0x67f   : > { %3641 = vmatmul.msk.bf16.gmra.mxu0 %vm835_vm0, %v3842_v43 }
 0x680   : > { %v2654_v32 = vmul.f32 1.442695, %v2634_v33 }
 0x685   : > { %v2609_v18 = vpop.xlane.xlu2 %2608 }
 0x686   : > { %v2635_v5 = vsub.f32 %v6068_v3, %v2609_v18 }
 0x688   : > { %v2656_v20 = vmul.f32 1.442695, %v2635_v5 }
 0x68a   : > { %4242 = vpow2.f32 %v2656_v20 }
 0x68b   : > { %2678 = vadd.xlane.f32.xlu2 %v6154_v12  ;;  %4244 = vpow2.f32 %v2652_v56 }
 0x68c   : > { %4246 = vpow2.f32 %v2654_v32 }
 0x68d   : > { %v2611_v11 = vpop.xlane.xlu2 %2610 }
 0x68e   : > { %v2636_v3 = vsub.f32 %v6071_v0, %v2611_v11  ;;  %v6171_v0 = vpop.f32.mrf.mxu0 }
 0x68f   : > { %3642 = vmatmul.msk.bf16.gmra.mxu0 %vm835_vm0, %v3843_v10 }
 0x690   : > { %v6161_v5 = vpop.eup %4242  ;;  %v2658_v57 = vmul.f32 1.442695, %v2636_v3 }
 0x691   : > { %2688 = vadd.xlane.f32.xlu1 %v6161_v5  ;;  %v6164_v41 = vpop.eup %4244 }
 0x692   : > { %4248 = vpow2.f32 %v2658_v57  ;;  %v6168_v33 = vpop.eup %4246 }
 0x693   : > { %2684 = vadd.xlane.f32.xlu2 %v6164_v41 }
 0x695   : > { %v2613_v20 = vpop.xlane.xlu0 %2612 }
 0x696   : > { %v2637_v43 = vsub.f32 %v6078_v62, %v2613_v20  ;;  %v6183_v32 = vpop.f32.mrf.mxu0 }
 0x697   : > { %6979 = vst [vmem:[#allocation20_spill] sm:$0xff] %v6183_v32 }
 0x698   : > { %v2660_v56 = vmul.f32 1.442695, %v2637_v43  ;;  %2686 = vadd.xlane.f32.xlu0 %v6168_v33  ;;  %v6176_v22 = vpop.eup %4248 }
 0x69a   : > { %4250 = vpow2.f32 %v2660_v56 }
 0x69b   : > { %2690 = vadd.xlane.f32.xlu2 %v6176_v22 }
 0x69d   : > { %v2615_v30 = vpop.xlane.xlu0 %2614 }
 0x69e   : > { %v2638_v62 = vsub.f32 %v6081_v9, %v2615_v30  ;;  %v3844_v9 = vld [vmem:[%s6843_s2 + $0x78] sm:$0xff]  ;;  %v6193_v43 = vpop.f32.mrf.mxu0 }
 0x69f   : > { %6980 = vst [vmem:[#allocation23_spill] sm:$0xff] %v6193_v43  ;;  %3643 = vmatmul.msk.bf16.gmra.mxu0 %vm835_vm0, %v3844_v9 }
 0x6a0   : > { %v6181_v18 = vpop.eup %4250  ;;  %v2662_v39 = vmul.f32 1.442695, %v2638_v62 }
 0x6a1   : > { %2692 = vadd.xlane.f32.xlu0 %v6181_v18 }
 0x6a2   : > { %4252 = vpow2.f32 %v2662_v39 }
 0x6a5   : > { %v2617_v11 = vpop.xlane.xlu1 %2616 }
 0x6a6   : > { %v2639_v3 = vsub.f32 %v6088_v19, %v2617_v11  ;;  %v6200_v62 = vpop.f32.mrf.mxu0 }
 0x6a8   : > { %v6187_v57 = vpop.eup %4252  ;;  %v2664_v20 = vmul.f32 1.442695, %v2639_v3 }
 0x6a9   : > { %2694 = vadd.xlane.f32.xlu2 %v6187_v57 }
 0x6aa   : > { %4254 = vpow2.f32 %v2664_v20 }
 0x6ad   : > { %v2619_v56 = vpop.xlane.xlu1 %2618 }
 0x6ae   : > { %v2640_v10 = vsub.f32 %v6091_v16, %v2619_v56  ;;  %v3845_v16 = vld [vmem:[%s6843_s2 + $0x80] sm:$0xff] }
 0x6af   : > { %3644 = vmatmul.msk.bf16.gmra.mxu0 %vm835_vm0, %v3845_v16 }
 0x6b0   : > { %v6197_v30 = vpop.eup %4254  ;;  %v2666_v19 = vmul.f32 1.442695, %v2640_v10  ;;  %v6211_v10 = vpop.f32.mrf.mxu0 }
 0x6b1   : > { %2696 = vadd.xlane.f32.xlu1 %v6197_v30  ;;  %6981 = vst [vmem:[#allocation14_spill] sm:$0xff] %v6211_v10 }
 0x6b2   : > { %4256 = vpow2.f32 %v2666_v19 }
 0x6b5   : > { %v2621_v39 = vpop.xlane.xlu2 %2620 }
 0x6b6   : > { %v2641_v11 = vsub.f32 %v6098_v17, %v2621_v39 }
 0x6b8   : > { %v6203_v3 = vpop.eup %4256  ;;  %v2668_v20 = vmul.f32 1.442695, %v2641_v11 }
 0x6b9   : > { %2698 = vadd.xlane.f32.xlu2 %v6203_v3 }
 0x6ba   : > { %4258 = vpow2.f32 %v2668_v20  ;;  %v6219_v20 = vpop.f32.mrf.mxu0 }
 0x6bb   : > { %6982 = vst [vmem:[#allocation16_spill] sm:$0xff] %v6219_v20 }
 0x6bd   : > { %v2623_v9 = vpop.xlane.xlu2 %2622 }
 0x6be   : > { %v2642_v56 = vsub.f32 %v6101_v29, %v2623_v9  ;;  %v3846_v29 = vld [vmem:[%s6843_s2 + $0x88] sm:$0xff] }
 0x6bf   : > { %3645 = vmatmul.msk.bf16.gmra.mxu0 %vm835_vm0, %v3846_v29  ;;  %v932_v29 = vadd.f32 %v6171_v0, %v5947_v40  ;;  %v3016_v40 = vsub.f32 %v6118_v52, %v5809_v44  ;;  %v3848_v52 = vld [vmem:[%s6843_s2 + $0x98] sm:$0xff] }
 0x6c0   : > { %v6213_v19 = vpop.eup %4258  ;;  %v2670_v17 = vmul.f32 1.442695, %v2642_v56 }
 0x6c1   : > { %2700 = vadd.xlane.f32.xlu1 %v6213_v19 }
 0x6c2   : > { %4260 = vpow2.f32 %v2670_v17  ;;  %v6230_v17 = vpop.f32.mrf.mxu0 }
 0x6c3   : > { %6983 = vst [vmem:[#allocation15_spill] sm:$0xff] %v6230_v17 }
 0x6c5   : > { %v2625_v39 = vpop.xlane.xlu0 %2624 }
 0x6c6   : > { %v2643_v11 = vsub.f32 %v6108_v50, %v2625_v39 }
 0x6c8   : > { %v6217_v32 = vpop.eup %4260  ;;  %v2672_v43 = vmul.f32 1.442695, %v2643_v11 }
 0x6c9   : > { %2702 = vadd.xlane.f32.xlu0 %v6217_v32 }
 0x6ca   : > { %4262 = vpow2.f32 %v2672_v43  ;;  %v463_v43 = vld [vmem:[%s6844_s3 + $0x58] sm:$0xff] }
 0x6cd   : > { %v2627_v16 = vpop.xlane.xlu0 %2626 }
 0x6ce   : > { %v2644_v9 = vsub.f32 %v6111_v45, %v2627_v16  ;;  %v3847_v45 = vld [vmem:[%s6843_s2 + $0x90] sm:$0xff]  ;;  %v1035_v16 = vmax.f32 %v932_v29, 0.0 }
 0x6cf   : > { %3646 = vmatmul.msk.bf16.gmra.mxu0 %vm835_vm0, %v3847_v45 }
 0x6d0   : > { %v6227_v56 = vpop.eup %4262  ;;  %v2674_v50 = vmul.f32 1.442695, %v2644_v9  ;;  %v1188_v0 = vpack.c.bf16 %v1035_v16, %v1035_v16  ;;  %v475_v16 = vld [vmem:[%s6844_s3 + $0xb8] sm:$0xff] }
 0x6d1   : > { %2704 = vadd.xlane.f32.xlu2 %v6227_v56 }
 0x6d2   : > { %4264 = vpow2.f32 %v2674_v50 }
 0x6d5   : > { %v2629_v39 = vpop.xlane.xlu1 %2628 }
 0x6d6   : > { %v2645_v11 = vsub.f32 %v6123_v54, %v2629_v39  ;;  %v6245_v54 = vpop.f32.mrf.mxu0 }
 0x6d7   : > { %6984 = vst [vmem:[#allocation21_spill] sm:$0xff] %v6245_v54 }
 0x6d8   : > { %v6233_v20 = vpop.eup %4264  ;;  %v2676_v10 = vmul.f32 1.442695, %v2645_v11 }
 0x6d9   : > { %2706 = vadd.xlane.f32.xlu1 %v6233_v20 }
 0x6da   : > { %4266 = vpow2.f32 %v2676_v10  ;;  %v476_v10 = vld [vmem:[%s6844_s3 + $0xc0] sm:$0xff] }
 0x6dd   : > { %554 = vperm.xlu0 %3975, %v463_v43   ;;  %v6985_v43 = vsub.f32 %v6006_v35, %v5766_v63 }
 0x6de   : > { %v6259_v29 = vpop.f32.mrf.mxu0 }
 0x6df   : > { %3647 = vmatmul.msk.bf16.gmra.mxu0 %vm835_vm0, %v3848_v52 }
 0x6e0   : > { %v6247_v9 = vpop.eup %4266  ;;  %v530_v50 = vpop.permute.xlu0 %529 }
 0x6e1   : > { %v930_v39 = vadd.f32 %v6159_v60, %v530_v50  ;;  %2708 = vadd.xlane.f32.xlu2 %v6247_v9  ;;  %v2447_v60 = vunpack.c.l.b16 %v1188_v0 }
 0x6e3   : > { %v1034_v11 = vmax.f32 %v930_v39, 0.0 }
 0x6e4   : > { %v2681_v45 = vpop.xlane.xlu1 %2680 }
 0x6e5   : > { %v1187_v54 = vpack.c.bf16 %v1034_v11, %v1034_v11  ;;  %4268 = vrcp.f32 %v2681_v45  ;;  %619 = vperm.xlu0 %3975, %v476_v10   ;;  %v461_v11 = vld [vmem:[%s6844_s3 + $0x48] sm:$0xff] }
 0x6e6   : > { %4270 = vtanh.f32 %v6985_v43 }
 0x6e7   : > { %4272 = vtanh.f32 %v3016_v40  ;;  %v2446_v50 = vunpack.c.l.b16 %v1187_v54  ;;  %v3735_v54 = vld [vmem:[%s6847_s6 + $0x108] sm:$0xff] }
 0x6e9   : > { %v2448_v17 = vpack.c.b16 %v2447_v60, %v2446_v50  ;;  %v6278_v60 = vpop.f32.mrf.mxu0  ;;  %v470_v50 = vld [vmem:[%s6844_s3 + $0x90] sm:$0xff] }
 0x6eb   : > { %v4269_v39 = vpop.eup %4268  ;;  %2458 = vmatmul.bf16.vlgmr.msrb.gmra.mxu1 %v2448_v17 }
 0x6ec   : > { %v4271_v35 = vpop.eup %4270  ;;  %v2727_v10 = vmul.f32 %v4269_v39, %v5063_v34  ;;  %v462_v39 = vld [vmem:[%s6844_s3 + $0x50] sm:$0xff] }
 0x6ed   : > { %v4273_v40 = vpop.eup %4272  ;;  %614 = vperm.xlu0 %3975, %v475_v16   ;;  %v2889_v17 = vmul.f32 %v4271_v35, %v5087_v28  ;;  %v477_v35 = vld [vmem:[%s6844_s3 + $0xc8] sm:$0xff] }
 0x6ee   : > { %v2743_v0 = vmul.f32 %v6133_v7, %v2727_v10  ;;  %v3048_v43 = vmul.f32 %v4273_v40, %v5087_v28  ;;  %v6287_v7 = vpop.permute.xlu2 %539  ;;  %v3849_v10 = vld [vmem:[%s6843_s2 + $0xa0] sm:$0xff]  ;;  %v469_v40 = vld [vmem:[%s6844_s3 + $0x88] sm:$0xff] }
 0x6f0   : > { %v2776_v45 = vadd.f32 %v3735_v54, %v2743_v0  ;;  %v2683_v0 = vpop.xlane.xlu1 %2682 }
 0x6f1   : > { %v6301_v54 = vpop.f32.mrf.mxu0  ;;  %3648 = vmatmul.msk.bf16.gmra.mxu0 %vm835_vm0, %v3849_v10  ;;  %4274 = vrcp.f32 %v2683_v0 }
 0x6f2   : > { %544 = vperm.xlu1 %3977, %v461_v11   ;;  %v6283_v52 = vadd.f32 %v2889_v17, %v2776_v45  ;;  %v6285_v16 = vadd.f32 %v3048_v43, %v2776_v45  ;;  %6986 = vst [vmem:[#allocation18_spill] sm:$0xff] %v6301_v54  ;;  %v3015_v11 = vsub.f32 %v6135_v1, %v5809_v44  ;;  %v478_v17 = vld [vmem:[%s6844_s3 + $0xd0] sm:$0xff]  ;;  %v472_v43 = vld [vmem:[%s6844_s3 + $0xa0] sm:$0xff] }
 0x6f3   : > { %v464_v1 = vld [vmem:[%s6844_s3 + $0x60] sm:$0xff] }
 0x6f5   : > { %589 = vperm.xlu0 %3975, %v470_v50   ;;  %v2859_v50 = vsub.f32 %v6138_v26, %v5766_v63  ;;  %v6988_v26 = vsub.f32 %v5993_v38, %v5809_v44  ;;  %v6989_v38 = vsub.f32 %v6011_v13, %v5766_v63  ;;  %v481_v13 = vld [vmem:[%s6844_s3 + $0xe8] sm:$0xff] }
 0x6f9   : > { %549 = vperm.xlu2 %3976, %v462_v39   ;;  %v6987_v39 = vsub.f32 %v6017_v14, %v5766_v63 }
 0x6fa   : > { %624 = vperm.xlu1 %3977, %v477_v35   ;;  %v4275_v35 = vpop.eup %4274 }
 0x6fd   : > { %584 = vperm.xlu0 %3975, %v469_v40  }
 0x6fe   : > { %v2679_v45 = vpop.xlane.xlu2 %2678 }
 0x6ff   : > { %4276 = vrcp.f32 %v2679_v45  ;;  %v479_v45 = vld [vmem:[%s6844_s3 + $0xd8] sm:$0xff] }
 0x700   : > { %4278 = vtanh.f32 %v3015_v11 }
 0x701   : > { %4280 = vtanh.f32 %v6987_v39  ;;  %629 = vperm.xlu2 %3976, %v478_v17   ;;  %v2728_v39 = vmul.f32 %v4275_v35, %v5063_v34 }
 0x702   : > { %599 = vperm.xlu1 %3977, %v472_v43   ;;  %4282 = vtanh.f32 %v2859_v50  ;;  %v471_v43 = vld [vmem:[%s6844_s3 + $0x98] sm:$0xff]  ;;  %v3734_v50 = vld [vmem:[%s6847_s6 + $0x100] sm:$0xff] }
 0x704   : > { %v2689_v10 = vpop.xlane.xlu1 %2688 }
 0x705   : > { %v4277_v40 = vpop.eup %4276  ;;  %4284 = vrcp.f32 %v2689_v10  ;;  %559 = vperm.xlu0 %3975, %v464_v1   ;;  %v6990_v10 = vsub.f32 %v6054_v37, %v5809_v44  ;;  %v6992_v37 = vsub.f32 %v5970_v51, %v5766_v63  ;;  %v3736_v51 = vld [vmem:[%s6847_s6 + $0x110] sm:$0xff] }
 0x706   : > { %v4279_v0 = vpop.eup %4278  ;;  %4286 = vtanh.f32 %v6988_v26  ;;  %v2726_v14 = vmul.f32 %v4277_v40, %v5063_v34  ;;  %v2685_v11 = vpop.xlane.xlu2 %2684  ;;  %v6991_v26 = vsub.f32 %v5956_v47, %v5809_v44  ;;  %v2744_v47 = vmul.f32 %v6140_v8, %v2728_v39 }
 0x707   : > { %v4281_v17 = vpop.eup %4280  ;;  %4288 = vrcp.f32 %v2685_v11  ;;  %v6994_v8 = vsub.f32 %v6046_v58, %v5809_v44  ;;  %v466_v58 = vld [vmem:[%s6844_s3 + $0x70] sm:$0xff] }
 0x708   : > { %4290 = vtanh.f32 %v6989_v38  ;;  %v2742_v1 = vmul.f32 %v6154_v12, %v2726_v14  ;;  %v4283_v40 = vpop.eup %4282  ;;  %v2888_v35 = vmul.f32 %v4281_v17, %v5087_v28  ;;  %v3047_v12 = vmul.f32 %v4279_v0, %v5087_v28 }
 0x709   : > { %4292 = vtanh.f32 %v6990_v10  ;;  %634 = vperm.xlu2 %3976, %v479_v45   ;;  %v6993_v17 = vsub.f32 %v5983_v61, %v5766_v63  ;;  %v474_v61 = vld [vmem:[%s6844_s3 + $0xb0] sm:$0xff] }
 0x70a   : > { %4294 = vtanh.f32 %v6991_v26  ;;  %594 = vperm.xlu1 %3977, %v471_v43   ;;  %v2775_v11 = vadd.f32 %v3734_v50, %v2742_v1 }
 0x70b   : > { %v4285_v14 = vpop.eup %4284  ;;  %4296 = vtanh.f32 %v6992_v37  ;;  %v2687_v45 = vpop.xlane.xlu0 %2686  ;;  %v6995_v37 = vsub.f32 %v5927_v42, %v5766_v63  ;;  %v484_v42 = vld [vmem:[%s6844_s3 + $0x100] sm:$0xff] }
 0x70c   : > { %v4287_v38 = vpop.eup %4286  ;;  %4298 = vrcp.f32 %v2687_v45  ;;  %v6353_v43 = vadd.f32 %v2888_v35, %v2775_v11  ;;  %v6355_v10 = vadd.f32 %v3047_v12, %v2775_v11  ;;  %v2731_v0 = vmul.f32 %v4285_v14, %v5063_v34  ;;  %v3737_v12 = vld [vmem:[%s6847_s6 + $0x118] sm:$0xff] }
 0x70d   : > { %v4289_v26 = vpop.eup %4288  ;;  %4300 = vtanh.f32 %v6993_v17  ;;  %644 = vperm.xlu0 %3975, %v481_v13   ;;  %v2891_v13 = vmul.f32 %v4283_v40, %v5087_v28  ;;  %v6997_v40 = vsub.f32 %v5952_v55, %v5809_v44 }
 0x70e   : > { %v4291_v50 = vpop.eup %4290  ;;  %4302 = vtanh.f32 %v6994_v8  ;;  %v2729_v39 = vmul.f32 %v4289_v26, %v5063_v34  ;;  %v2691_v1 = vpop.xlane.xlu2 %2690  ;;  %v2777_v26 = vadd.f32 %v3736_v51, %v2744_v47  ;;  %v6996_v8 = vsub.f32 %v5943_v36, %v5766_v63 }
 0x70f   : > { %v4293_v35 = vpop.eup %4292  ;;  %4304 = vrcp.f32 %v2691_v1  ;;  %v2747_v1 = vmul.f32 %v6161_v5, %v2731_v0  ;;  %v2890_v51 = vmul.f32 %v4291_v50, %v5087_v28  ;;  %v3049_v36 = vmul.f32 %v4287_v38, %v5087_v28 }
 0x710   : > { %v4295_v14 = vpop.eup %4294  ;;  %4306 = vtanh.f32 %v6995_v37  ;;  %v2745_v45 = vmul.f32 %v6164_v41, %v2729_v39  ;;  %v3739_v41 = vld [vmem:[%s6847_s6 + $0x128] sm:$0xff]  ;;  %v3050_v5 = vmul.f32 %v4293_v35, %v5087_v28  ;;  %v3738_v37 = vld [vmem:[%s6847_s6 + $0x120] sm:$0xff] }
 0x711   : > { %v4297_v17 = vpop.eup %4296  ;;  %4308 = vtanh.f32 %v6996_v8  ;;  %609 = vperm.xlu2 %3976, %v474_v61   ;;  %v6410_v38 = vadd.f32 %v3049_v36, %v2777_v26  ;;  %v3052_v8 = vmul.f32 %v4295_v14, %v5087_v28  ;;  %v465_v14 = vld [vmem:[%s6844_s3 + $0x68] sm:$0xff] }
 0x712   : > { %v4299_v11 = vpop.eup %4298  ;;  %569 = vperm.xlu1 %3977, %v466_v58   ;;  %v2778_v47 = vadd.f32 %v3737_v12, %v2745_v45  ;;  %4310 = vtanh.f32 %v6997_v40  ;;  %v6406_v12 = vadd.f32 %v2890_v51, %v2777_v26  ;;  %v2892_v26 = vmul.f32 %v4297_v17, %v5087_v28 }
 0x713   : > { %v4301_v0 = vpop.eup %4300  ;;  %v2730_v39 = vmul.f32 %v4299_v11, %v5063_v34  ;;  %v2780_v11 = vadd.f32 %v3739_v41, %v2747_v1  ;;  %v6998_v1 = vsub.f32 %v6042_v59, %v5809_v44 }
 0x714   : > { %v4303_v61 = vpop.eup %4302  ;;  %v2693_v58 = vpop.xlane.xlu0 %2692  ;;  %v6408_v50 = vadd.f32 %v2891_v13, %v2778_v47  ;;  %v6412_v35 = vadd.f32 %v3050_v5, %v2778_v47  ;;  %v473_v13 = vld [vmem:[%s6844_s3 + $0xa8] sm:$0xff]  ;;  %v2893_v41 = vmul.f32 %v4301_v0, %v5087_v28 }
 0x715   : > { %v4305_v45 = vpop.eup %4304  ;;  %v2746_v55 = vmul.f32 %v6168_v33, %v2730_v39  ;;  %4312 = vrcp.f32 %v2693_v58  ;;  %659 = vperm.xlu0 %3975, %v484_v42   ;;  %v3051_v17 = vmul.f32 %v4303_v61, %v5087_v28  ;;  %v3740_v61 = vld [vmem:[%s6847_s6 + $0x130] sm:$0xff] }
 0x716   : > { %v4307_v40 = vpop.eup %4306  ;;  %v2732_v54 = vmul.f32 %v4305_v45, %v5063_v34  ;;  %4314 = vtanh.f32 %v6998_v1  ;;  %v6435_v39 = vadd.f32 %v2893_v41, %v2780_v11  ;;  %v6439_v45 = vadd.f32 %v3052_v8, %v2780_v11  ;;  %v468_v1 = vld [vmem:[%s6844_s3 + $0x80] sm:$0xff] }
 0x717   : > { %v4309_v51 = vpop.eup %4308  ;;  %v2779_v42 = vadd.f32 %v3738_v37, %v2746_v55  ;;  %v487_v37 = vld [vmem:[%s6844_s3 + $0x118] sm:$0xff]  ;;  %v2894_v41 = vmul.f32 %v4307_v40, %v5087_v28 }
 0x718   : > { %v4311_v36 = vpop.eup %4310  ;;  %v2748_v59 = vmul.f32 %v6176_v22, %v2732_v54  ;;  %v3741_v54 = vld [vmem:[%s6847_s6 + $0x138] sm:$0xff] }
 0x719   : > { %604 = vperm.xlu2 %3976, %v473_v13   ;;  %v6433_v5 = vadd.f32 %v2892_v26, %v2779_v42  ;;  %v6437_v58 = vadd.f32 %v3051_v17, %v2779_v42  ;;  %v482_v42 = vld [vmem:[%s6844_s3 + $0xf0] sm:$0xff] }
 0x71a   : > { %564 = vperm.xlu1 %3977, %v465_v14   ;;  %v2781_v14 = vadd.f32 %v3740_v61, %v2748_v59 }
 0x71b   : > { %v4313_v0 = vpop.eup %4312  ;;  %v2922_v55 = vpack.c.bf16 %v6435_v39, %v6433_v5  ;;  %v3081_v13 = vpack.c.bf16 %v6439_v45, %v6437_v58  ;;  %v7023_v58 = vpack.c.bf16 %v6283_v52, %v6353_v43  ;;  %v7024_v45 = vpack.c.bf16 %v6285_v16, %v6355_v10  ;;  %v7025_v43 = vld [vmem:[#allocation22_spill] sm:$0xff]  ;;  %v7028_v10 = vld [vmem:[#allocation33_spill] sm:$0xff] }
 0x71c   : > { %v2733_v11 = vmul.f32 %v4313_v0, %v5063_v34  ;;  %v2695_v8 = vpop.xlane.xlu2 %2694  ;;  %v4315_v22 = vpop.eup %4314  ;;  %v6470_v59 = vadd.f32 %v2894_v41, %v2781_v14  ;;  %v485_v41 = vld [vmem:[%s6844_s3 + $0x108] sm:$0xff] }
 0x71d   : > { %4316 = vrcp.f32 %v2695_v8  ;;  %674 = vperm.xlu0 %3975, %v487_v37   ;;  %v2895_v37 = vmul.f32 %v4309_v51, %v5087_v28  ;;  %v3053_v0 = vmul.f32 %v4315_v22, %v5087_v28  ;;  %v3054_v8 = vmul.f32 %v4311_v36, %v5087_v28 }
 0x71e   : > { %v2749_v26 = vmul.f32 %v6181_v18, %v2733_v11  ;;  %v490_v18 = vld [vmem:[%s6844_s3 + $0x130] sm:$0xff]  ;;  %v6999_v51 = vsub.f32 %v5847_v23, %v5766_v63  ;;  %v7000_v36 = vsub.f32 %v5889_v21, %v5809_v44  ;;  %v467_v21 = vld [vmem:[%s6844_s3 + $0x78] sm:$0xff] }
 0x71f   : > { %v6474_v11 = vadd.f32 %v3053_v0, %v2781_v14  ;;  %v7001_v14 = vsub.f32 %v5913_v4, %v5809_v44  ;;  %v493_v0 = vld [vmem:[%s6844_s3 + $0x148] sm:$0xff] }
 0x720   : > { %v2782_v17 = vadd.f32 %v3741_v54, %v2749_v26  ;;  %4318 = vtanh.f32 %v6999_v51 }
 0x721   : > { %579 = vperm.xlu2 %3976, %v468_v1   ;;  %4320 = vtanh.f32 %v7000_v36 }
 0x722   : > { %649 = vperm.xlu1 %3977, %v482_v42   ;;  %v6472_v61 = vadd.f32 %v2895_v37, %v2782_v17  ;;  %v6476_v40 = vadd.f32 %v3054_v8, %v2782_v17  ;;  %v7002_v42 = vsub.f32 %v5997_v31, %v5766_v63  ;;  %v3742_v31 = vld [vmem:[%s6847_s6 + $0x140] sm:$0xff] }
 0x723   : > { %v4317_v54 = vpop.eup %4316 }
 0x724   : > { %v2697_v22 = vpop.xlane.xlu1 %2696  ;;  %v2923_v26 = vpack.c.bf16 %v6472_v61, %v6470_v59  ;;  %v3082_v1 = vpack.c.bf16 %v6476_v40, %v6474_v11  ;;  %v2734_v23 = vmul.f32 %v4317_v54, %v5063_v34  ;;  %v7021_v11 = vpack.c.bf16 %v6408_v50, %v6406_v12 }
 0x725   : > { %4322 = vrcp.f32 %v2697_v22  ;;  %689 = vperm.xlu0 %3975, %v490_v18   ;;  %v7022_v40 = vpack.c.bf16 %v6412_v35, %v6410_v38 }
 0x726   : > { %4324 = vtanh.f32 %v7001_v14  ;;  %v4319_v17 = vpop.eup %4318  ;;  %v2750_v4 = vmul.f32 %v6187_v57, %v2734_v23  ;;  %v3743_v57 = vld [vmem:[%s6847_s6 + $0x148] sm:$0xff]  ;;  %v480_v14 = vld [vmem:[%s6844_s3 + $0xe0] sm:$0xff] }
 0x727   : > { %4326 = vtanh.f32 %v7002_v42  ;;  %v4321_v37 = vpop.eup %4320  ;;  %v2896_v42 = vmul.f32 %v4319_v17, %v5087_v28  ;;  %v7003_v17 = vsub.f32 %v5834_v25, %v5766_v63 }
 0x728   : > { %v2783_v23 = vadd.f32 %v3742_v31, %v2750_v4 }
 0x729   : > { %574 = vperm.xlu2 %3976, %v467_v21   ;;  %v488_v21 = vld [vmem:[%s6844_s3 + $0x120] sm:$0xff] }
 0x72a   : > { %664 = vperm.xlu1 %3977, %v485_v41  }
 0x72b   : > { %v4323_v8 = vpop.eup %4322 }
 0x72c   : > { %v4325_v18 = vpop.eup %4324  ;;  %v2735_v54 = vmul.f32 %v4323_v8, %v5063_v34  ;;  %v2699_v51 = vpop.xlane.xlu2 %2698  ;;  %v3055_v8 = vmul.f32 %v4321_v37, %v5087_v28  ;;  %v7004_v37 = vsub.f32 %v5929_v15, %v5809_v44  ;;  %v483_v15 = vld [vmem:[%s6844_s3 + $0xf8] sm:$0xff] }
 0x72d   : > { %v4327_v36 = vpop.eup %4326  ;;  %4328 = vrcp.f32 %v2699_v51  ;;  %704 = vperm.xlu0 %3975, %v493_v0   ;;  %v3056_v51 = vmul.f32 %v4325_v18, %v5087_v28 }
 0x72e   : > { %v2751_v22 = vmul.f32 %v6197_v30, %v2735_v54  ;;  %v2897_v0 = vmul.f32 %v4327_v36, %v5087_v28  ;;  %v6523_v30 = vadd.f32 %v2896_v42, %v2783_v23  ;;  %v6527_v4 = vadd.f32 %v3055_v8, %v2783_v23  ;;  %v491_v23 = vld [vmem:[%s6844_s3 + $0x138] sm:$0xff] }
 0x72f   : > { %4330 = vtanh.f32 %v7003_v17 }
 0x730   : > { %v2784_v41 = vadd.f32 %v3743_v57, %v2751_v22  ;;  %4332 = vtanh.f32 %v7004_v37  ;;  %v7005_v22 = vsub.f32 %v5987_v48, %v5766_v63 }
 0x731   : > { %639 = vperm.xlu2 %3976, %v480_v14   ;;  %v7006_v14 = vsub.f32 %v6035_v27, %v5809_v44 }
 0x732   : > { %679 = vperm.xlu1 %3977, %v488_v21   ;;  %v6525_v54 = vadd.f32 %v2897_v0, %v2784_v41  ;;  %v6529_v31 = vadd.f32 %v3056_v51, %v2784_v41  ;;  %v3745_v51 = vld [vmem:[%s6847_s6 + $0x158] sm:$0xff] }
 0x733   : > { %v4329_v33 = vpop.eup %4328 }
 0x734   : > { %v2701_v18 = vpop.xlane.xlu1 %2700  ;;  %v2924_v36 = vpack.c.bf16 %v6525_v54, %v6523_v30  ;;  %v3083_v57 = vpack.c.bf16 %v6529_v31, %v6527_v4  ;;  %v2736_v25 = vmul.f32 %v4329_v33, %v5063_v34  ;;  %v3744_v33 = vld [vmem:[%s6847_s6 + $0x150] sm:$0xff] }
 0x735   : > { %4334 = vrcp.f32 %v2701_v18  ;;  %3978 = vset.pattern.permute.xlu0 %v6963_v2  ;;  %v4331_v21 = vpop.eup %4330  ;;  %v494_v18 = vld [vmem:[%s6844_s3 + $0x150] sm:$0xff] }
 0x736   : > { %4336 = vtanh.f32 %v7005_v22  ;;  %v4333_v2 = vpop.eup %4332  ;;  %v2752_v48 = vmul.f32 %v6203_v3, %v2736_v25  ;;  %v486_v3 = vld [vmem:[%s6844_s3 + $0x110] sm:$0xff]  ;;  %v2898_v22 = vmul.f32 %v4331_v21, %v5087_v28  ;;  %v7007_v21 = vsub.f32 %v5821_v53, %v5766_v63  ;;  %v489_v53 = vld [vmem:[%s6844_s3 + $0x128] sm:$0xff] }
 0x737   : > { %4338 = vtanh.f32 %v7006_v14 }
 0x738   : > { %v2785_v37 = vadd.f32 %v3744_v33, %v2752_v48 }
 0x739   : > { %654 = vperm.xlu2 %3976, %v483_v15  }
 0x73a   : > { %694 = vperm.xlu1 %3977, %v491_v23   ;;  %v3058_v23 = vmul.f32 %v4333_v2, %v5087_v28 }
 0x73b   : > { %v4335_v42 = vpop.eup %4334 }
 0x73c   : > { %v4337_v41 = vpop.eup %4336  ;;  %v2737_v0 = vmul.f32 %v4335_v42, %v5063_v34  ;;  %v2703_v27 = vpop.xlane.xlu0 %2702 }
 0x73d   : > { %v4339_v8 = vpop.eup %4338  ;;  %4340 = vrcp.f32 %v2703_v27  ;;  %v2899_v15 = vmul.f32 %v4337_v41, %v5087_v28  ;;  %v7008_v41 = vsub.f32 %v5918_v46, %v5809_v44  ;;  %v7010_v46 = vsub.f32 %v6027_v49, %v5809_v44  ;;  %v3747_v49 = vld [vmem:[%s6847_s6 + $0x168] sm:$0xff] }
 0x73e   : > { %v2753_v17 = vmul.f32 %v6213_v19, %v2737_v0  ;;  %v3057_v14 = vmul.f32 %v4339_v8, %v5087_v28  ;;  %v6574_v19 = vadd.f32 %v2898_v22, %v2785_v37  ;;  %4342 = vtanh.f32 %v7007_v21 }
 0x73f   : > { %4344 = vtanh.f32 %v7008_v41 }
 0x740   : > { %v2786_v25 = vadd.f32 %v3745_v51, %v2753_v17  ;;  %v6578_v48 = vadd.f32 %v3057_v14, %v2785_v37  ;;  %v7009_v51 = vsub.f32 %v5974_v24, %v5766_v63  ;;  %v3746_v24 = vld [vmem:[%s6847_s6 + $0x160] sm:$0xff] }
 0x741   : > { %669 = vperm.xlu2 %3976, %v486_v3  }
 0x742   : > { %709 = vperm.xlu1 %3977, %v494_v18   ;;  %v6576_v42 = vadd.f32 %v2899_v15, %v2786_v25  ;;  %v6580_v33 = vadd.f32 %v3058_v23, %v2786_v25 }
 0x743   : > { %v4341_v0 = vpop.eup %4340 }
 0x744   : > { %v2705_v2 = vpop.xlane.xlu2 %2704  ;;  %v2925_v27 = vpack.c.bf16 %v6576_v42, %v6574_v19  ;;  %v3084_v8 = vpack.c.bf16 %v6580_v33, %v6578_v48  ;;  %v2738_v17 = vmul.f32 %v4341_v0, %v5063_v34  ;;  %v4343_v3 = vpop.eup %4342  ;;  %v7019_v42 = vld [vmem:[#allocation20_spill] sm:$0xff]  ;;  %v7020_v48 = vld [vmem:[#allocation14_spill] sm:$0xff] }
 0x745   : > { %4346 = vrcp.f32 %v2705_v2  ;;  %v4345_v37 = vpop.eup %4344  ;;  %v2900_v41 = vmul.f32 %v4343_v3, %v5087_v28 }
 0x746   : > { %4348 = vtanh.f32 %v7009_v51  ;;  %v2754_v18 = vmul.f32 %v6217_v32, %v2738_v17  ;;  %v492_v32 = vld [vmem:[%s6844_s3 + $0x140] sm:$0xff]  ;;  %v3059_v17 = vmul.f32 %v4345_v37, %v5087_v28 }
 0x747   : > { %4350 = vtanh.f32 %v7010_v46  ;;  %v7014_v37 = vld [vmem:[#allocation13_spill] sm:$0xff] }
 0x748   : > { %v2787_v21 = vadd.f32 %v3746_v24, %v2754_v18  ;;  %v7012_v18 = vld [vmem:[#allocation29_spill] sm:$0xff] }
 0x749   : > { %684 = vperm.xlu2 %3976, %v489_v53   ;;  %v7013_v3 = vsub.f32 %v7012_v18, %v5809_v44 }
 0x74a   : > { %v2916_v46 = vadd.f32 %v2900_v41, %v2787_v21 }
 0x74b   : > { %v4347_v22 = vpop.eup %4346 }
 0x74c   : > { %v4349_v25 = vpop.eup %4348  ;;  %v2739_v15 = vmul.f32 %v4347_v22, %v5063_v34  ;;  %v2707_v14 = vpop.xlane.xlu1 %2706 }
 0x74d   : > { %v4351_v23 = vpop.eup %4350  ;;  %4352 = vrcp.f32 %v2707_v14  ;;  %v2901_v51 = vmul.f32 %v4349_v25, %v5087_v28  ;;  %v3075_v14 = vadd.f32 %v3059_v17, %v2787_v21 }
 0x74e   : > { %v2755_v0 = vmul.f32 %v6227_v56, %v2739_v15  ;;  %v3060_v53 = vmul.f32 %v4351_v23, %v5087_v28  ;;  %v7011_v15 = vsub.f32 %v5772_v6, %v5766_v63  ;;  %v7015_v23 = vsub.f32 %v7014_v37, %v5809_v44  ;;  %v7016_v6 = vld [vmem:[#allocation24_spill] sm:$0xff]  ;;  %v3748_v44 = vld [vmem:[%s6847_s6 + $0x170] sm:$0xff] }
 0x74f   : > { %v7017_v21 = vsub.f32 %v7016_v6, %v5766_v63  ;;  %v555_v6 = vpop.permute.xlu0 %554 }
 0x750   : > { %v2788_v2 = vadd.f32 %v3747_v49, %v2755_v0  ;;  %4354 = vtanh.f32 %v7011_v15  ;;  %v942_v33 = vadd.f32 %v7020_v48, %v555_v6 }
 0x751   : > { %699 = vperm.xlu2 %3976, %v492_v32   ;;  %4356 = vtanh.f32 %v7013_v3  ;;  %v495_v32 = vld [vmem:[%s6844_s3 + $0x158] sm:$0xff] }
 0x752   : > { %v2917_v22 = vadd.f32 %v2901_v51, %v2788_v2  ;;  %v3076_v47 = vadd.f32 %v3060_v53, %v2788_v2  ;;  %v1039_v31 = vmax.f32 %v942_v33, 0.0  ;;  %v7033_v33 = vld [vmem:[#allocation15_spill] sm:$0xff] }
 0x753   : > { %v4353_v56 = vpop.eup %4352 }
 0x754   : > { %v2709_v24 = vpop.xlane.xlu2 %2708  ;;  %v2926_v25 = vpack.c.bf16 %v2917_v22, %v2916_v46  ;;  %v3085_v49 = vpack.c.bf16 %v3076_v47, %v3075_v14  ;;  %v2740_v0 = vmul.f32 %v4353_v56, %v5063_v34  ;;  %v3749_v22 = vld [vmem:[%s6847_s6 + $0x178] sm:$0xff]  ;;  %v1192_v61 = vpack.c.bf16 %v1039_v31, %v1039_v31 }
 0x755   : > { %4358 = vrcp.f32 %v2709_v24 }
 0x756   : > { %4360 = vtanh.f32 %v7015_v23  ;;  %v4355_v41 = vpop.eup %4354  ;;  %v2756_v47 = vmul.f32 %v6233_v20, %v2740_v0  ;;  %v3090_v39 = vunpack.c.l.b16 %v1192_v61 }
 0x757   : > { %4362 = vtanh.f32 %v7017_v21  ;;  %v4357_v2 = vpop.eup %4356  ;;  %v2903_v56 = vmul.f32 %v4355_v41, %v5087_v28  ;;  %v7026_v41 = vld [vmem:[#allocation17_spill] sm:$0xff] }
 0x758   : > { %v2789_v14 = vadd.f32 %v3748_v44, %v2756_v47  ;;  %v3061_v20 = vmul.f32 %v4357_v2, %v5087_v28  ;;  %v7027_v16 = vpack.c.bf16 %v7025_v43, %v7026_v41  ;;  %v7029_v2 = vld [vmem:[#allocation27_spill] sm:$0xff] }
 0x759   : > { %714 = vperm.xlu2 %3976, %v495_v32   ;;  %v3138_v47 = vpack.c.bf16 %v7029_v2, %v7028_v10  ;;  %v7031_v44 = vld [vmem:[#allocation35_spill] sm:$0xff] }
 0x75b   : > { %v4359_v51 = vpop.eup %4358 }
 0x75c   : > { %v4361_v17 = vpop.eup %4360  ;;  %v2741_v53 = vmul.f32 %v4359_v51, %v5063_v34  ;;  %v3077_v34 = vadd.f32 %v3061_v20, %v2789_v14  ;;  %v7030_v51 = vld [vmem:[#allocation25_spill] sm:$0xff]  ;;  %v3857_v20 = vld [vmem:[%s6849_s8 + $0x30] sm:$0xff] }
 0x75d   : > { %v4363_v46 = vpop.eup %4362  ;;  %v3062_v15 = vmul.f32 %v4361_v17, %v5087_v28  ;;  %v3137_v17 = vpack.c.bf16 %v7031_v44, %v7030_v51 }
 0x75e   : > { %v2757_v63 = vmul.f32 %v6247_v9, %v2741_v53  ;;  %v2902_v18 = vmul.f32 %v4363_v46, %v5087_v28  ;;  %v550_v28 = vpop.permute.xlu2 %549  ;;  %v3851_v53 = vld [vmem:[%s6849_s8] sm:$0xff]  ;;  %v3852_v46 = vld [vmem:[%s6849_s8 + $0x8] sm:$0xff] }
 0x760   : > { %v2790_v3 = vadd.f32 %v3749_v22, %v2757_v63  ;;  %v2918_v24 = vadd.f32 %v2902_v18, %v2789_v14  ;;  %v3853_v22 = vld [vmem:[%s6849_s8 + $0x10] sm:$0xff]  ;;  %v3854_v63 = vld [vmem:[%s6849_s8 + $0x18] sm:$0xff]  ;;  %v3855_v14 = vld [vmem:[%s6849_s8 + $0x20] sm:$0xff] }
 0x762   : > { %v2919_v37 = vadd.f32 %v2903_v56, %v2790_v3  ;;  %v3078_v23 = vadd.f32 %v3062_v15, %v2790_v3  ;;  %v3856_v56 = vld [vmem:[%s6849_s8 + $0x28] sm:$0xff]  ;;  %v6722_v15 = vpop.permute.xlu0 %619 }
 0x764   : > { %v2927_v0 = vpack.c.bf16 %v2919_v37, %v2918_v24  ;;  %v3086_v32 = vpack.c.bf16 %v3078_v23, %v3077_v34  ;;  %v545_v9 = vpop.permute.xlu1 %544  ;;  %v3858_v34 = vld [vmem:[%s6849_s8 + $0x38] sm:$0xff] }
 0x766   : > { %2934 = vmatpush.bf16.msra.mxu2 %v2927_v0  ;;  %3093 = vmatpush.bf16.msra.mxu1 %v3086_v32  ;;  %v6727_v3 = vpop.permute.xlu2 %629 }
 0x768   : > { %v2459_v12 = vpop.f32.mrf.mxu1 }
 0x76a   : > { %2935 = vmatpush.bf16.msra.mxu2 %v2926_v25  ;;  %3094 = vmatpush.bf16.msra.mxu1 %v3085_v49  ;;  %v940_v25 = vadd.f32 %v6200_v62, %v550_v28  ;;  %v7018_v49 = vld [vmem:[#allocation23_spill] sm:$0xff]  ;;  %v6729_v24 = vpop.permute.xlu0 %614 }
 0x76b   : > { %v937_v19 = vadd.f32 %v7018_v49, %v545_v9 }
 0x76c   : > { %v1038_v30 = vmax.f32 %v940_v25, 0.0  ;;  %v6724_v18 = vpop.permute.xlu1 %624 }
 0x76d   : > { %v1037_v54 = vmax.f32 %v937_v19, 0.0 }
 0x76e   : > { %2936 = vmatpush.bf16.msra.mxu2 %v2925_v27  ;;  %3095 = vmatpush.bf16.msra.mxu1 %v3084_v8  ;;  %v935_v27 = vadd.f32 %v7019_v42, %v6287_v7  ;;  %v1191_v62 = vpack.c.bf16 %v1038_v30, %v1038_v30  ;;  %v6734_v23 = vpop.permute.xlu2 %634 }
 0x76f   : > { %v1190_v7 = vpack.c.bf16 %v1037_v54, %v1037_v54 }
 0x770   : > { %v1036_v4 = vmax.f32 %v935_v27, 0.0  ;;  %v2461_v50 = vpop.f32.mrf.mxu1  ;;  %v7032_v27 = vld [vmem:[#allocation16_spill] sm:$0xff] }
 0x771   : > { %v3140_v52 = vpack.c.bf16 %v2461_v50, %v2459_v12  ;;  %v959_v12 = vpop.f32.mrf.mxu0 }
 0x772   : > { %2937 = vmatpush.bf16.msra.mxu2 %v2924_v36  ;;  %3096 = vmatpush.bf16.msra.mxu1 %v3083_v57  ;;  %v1189_v59 = vpack.c.bf16 %v1036_v4, %v1036_v4  ;;  %v590_v0 = vpop.permute.xlu0 %589 }
 0x774   : > { %v2930_v5 = vunpack.c.l.b16 %v1189_v59  ;;  %v600_v37 = vpop.permute.xlu1 %599 }
 0x776   : > { %2938 = vmatpush.bf16.msra.mxu2 %v2923_v26  ;;  %3097 = vmatpush.bf16.msra.mxu1 %v3082_v1  ;;  %v3089_v26 = vunpack.c.l.b16 %v1191_v62  ;;  %v2931_v1 = vunpack.c.l.b16 %v1190_v7  ;;  %v6737_v28 = vpop.permute.xlu2 %609 }
 0x77a   : > { %2939 = vmatpush.bf16.msra.mxu2 %v2922_v55  ;;  %3098 = vmatpush.bf16.msra.mxu1 %v3081_v13  ;;  %v3091_v55 = vpack.c.b16 %v3090_v39, %v3089_v26  ;;  %v2932_v13 = vpack.c.b16 %v2931_v1, %v2930_v5  ;;  %v585_v9 = vpop.permute.xlu0 %584  ;;  %v7034_v26 = vld [vmem:[#allocation21_spill] sm:$0xff] }
 0x77c   : > { %v595_v32 = vpop.permute.xlu1 %594 }
 0x77e   : > { %2940 = vmatpush.bf16.msra.mxu2 %v7021_v11  ;;  %3099 = vmatpush.bf16.msra.mxu1 %v7022_v40  ;;  %v6739_v25 = vpop.permute.xlu2 %604 }
 0x782   : > { %2941 = vmatpush.bf16.msra.mxu2 %v7023_v58  ;;  %3100 = vmatpush.bf16.msra.mxu1 %v7024_v45  ;;  %v560_v19 = vpop.permute.xlu0 %559 }
 0x783   : > { %v945_v48 = vadd.f32 %v7032_v27, %v560_v19 }
 0x784   : > { %v570_v6 = vpop.permute.xlu1 %569 }
 0x785   : > { %2942 = vmatmul.bf16.vlgmr.msra.gmra.mxu2 %v2932_v13  ;;  %3101 = vmatmul.bf16.vlgmr.msra.gmra.mxu1 %v3091_v55  ;;  %v950_v1 = vadd.f32 %v7034_v26, %v570_v6 }
 0x786   : > { %v580_v62 = vpop.permute.xlu2 %579 }
 0x78c   : > { %v565_v42 = vpop.permute.xlu1 %564 }
 0x78d   : > { %v947_v30 = vadd.f32 %v7033_v33, %v565_v42 }
 0x78e   : > { %v575_v40 = vpop.permute.xlu2 %574 }
 0x78f   : > { %v952_v5 = vadd.f32 %v6259_v29, %v575_v40 }
 0x802   : > { %v3102_v38 = vpop.f32.mrf.mxu1 }
 0x808   : > { %v2943_v35 = vpop.f32.mrf.mxu2 }
 0x80a   : > { %v3104_v36 = vpop.f32.mrf.mxu1 }
 0x80b   : > { %v3142_v57 = vpack.c.bf16 %v3104_v36, %v3102_v38  ;;  %v961_v36 = vpop.f32.mrf.mxu0 }
 0x80c   : > { %v962_v51 = vadd.f32 %v961_v36, %v595_v32 }
 0x80d   : > { %3210 = vmatpush.bf16.msrb.mxu3 %v3142_v57  ;;  %v7035_v57 = vld [vmem:[#allocation18_spill] sm:$0xff] }
 0x810   : > { %v2945_v8 = vpop.f32.mrf.mxu2 }
 0x811   : > { %v3141_v21 = vpack.c.bf16 %v2945_v8, %v2943_v35  ;;  %v955_v35 = vadd.f32 %v6278_v60, %v580_v62  ;;  %v957_v8 = vadd.f32 %v7035_v57, %v585_v9 }
 0x813   : > { %3211 = vmatpush.bf16.msrb.mxu3 %v3141_v21  ;;  %v964_v10 = vpop.f32.mrf.mxu0 }
 0x817   : > { %3212 = vmatpush.bf16.msrb.mxu3 %v3140_v52 }
 0x81b   : > { %3213 = vmatpush.bf16.msrb.mxu3 %v7027_v16 }
 0x81f   : > { %3214 = vmatpush.bf16.msrb.mxu3 %v3138_v47  ;;  %v960_v47 = vadd.f32 %v959_v12, %v590_v0 }
 0x823   : > { %3215 = vmatpush.bf16.msrb.mxu3 %v3137_v17 }
 0x826   : > { %3782 = vmatmul.msk.bf16.vlgmr.msrb.gmra.mxu3 %vm3183_vm3, %v3851_v53 }
 0x836   : > { %3783 = vmatmul.msk.bf16.gmra.mxu3 %vm3183_vm3, %v3852_v46  ;;  %v966_v46 = vpop.f32.mrf.mxu0 }
 0x846   : > { %3784 = vmatmul.msk.bf16.gmra.mxu3 %vm3183_vm3, %v3853_v22 }
 0x856   : > { %3785 = vmatmul.msk.bf16.gmra.mxu3 %vm3183_vm3, %v3854_v63 }
 0x866   : > { %3786 = vmatmul.msk.bf16.gmra.mxu3 %vm3183_vm3, %v3855_v14  ;;  %v965_v14 = vadd.f32 %v964_v10, %v600_v37  ;;  %v640_v10 = vpop.permute.xlu2 %639 }
 0x876   : > { %3787 = vmatmul.msk.bf16.gmra.mxu3 %vm3183_vm3, %v3856_v56 }
 0x886   : > { %3788 = vmatmul.msk.bf16.gmra.mxu3 %vm3183_vm3, %v3857_v20 }
 0x896   : > { %3789 = vmatmul.msk.bf16.gmra.mxu3 %vm3183_vm3, %v3858_v34  ;;  %v969_v34 = vpop.f32.mrf.mxu0 }
 0x89e   : > { %v971_v6 = vpop.f32.mrf.mxu0 }
 0x89f   : > { %v972_v40 = vadd.f32 %v971_v6, %v6729_v24 }
 0x8a6   : > { %v974_v19 = vpop.f32.mrf.mxu0 }
 0x8a9   : > { %v3217_v49 = vpop.f32.mrf.mxu3 }
 0x8aa   : > { %v3218_v54 = vadd.f32 %v3217_v49, %v945_v48 }
 0x8ac   : > { %v3257_v7 = vmax.f32 %v3218_v54, 0.0 }
 0x8ae   : > { %v976_v48 = vpop.f32.mrf.mxu0 }
 0x8b1   : > { %v3219_v4 = vpop.f32.mrf.mxu3 }
 0x8b2   : > { %v3220_v31 = vadd.f32 %v3219_v4, %v947_v30  ;;  %v977_v4 = vadd.f32 %v976_v48, %v6724_v18  ;;  %v967_v18 = vadd.f32 %v966_v46, %v6739_v25  ;;  %v3860_v25 = vld [vmem:[%s6850_s9 + $0x8] sm:$0xff] }
 0x8b4   : > { %v3258_v59 = vmax.f32 %v3220_v31, 0.0 }
 0x8b6   : > { %v6743_v61 = vpack.c.bf16 %v3258_v59, %v3257_v7  ;;  %v979_v32 = vpop.f32.mrf.mxu0  ;;  %v975_v7 = vadd.f32 %v974_v19, %v6722_v15  ;;  %v655_v19 = vpop.permute.xlu2 %654 }
 0x8b7   : > { %v980_v30 = vadd.f32 %v979_v32, %v6727_v3 }
 0x8b9   : > { %v3222_v11 = vpop.f32.mrf.mxu3 }
 0x8ba   : > { %v3223_v39 = vadd.f32 %v3222_v11, %v950_v1 }
 0x8bc   : > { %v3259_v55 = vmax.f32 %v3223_v39, 0.0  ;;  %v970_v39 = vadd.f32 %v969_v34, %v6737_v28  ;;  %v3859_v28 = vld [vmem:[%s6850_s9] sm:$0xff] }
 0x8be   : > { %v981_v54 = vpop.f32.mrf.mxu0 }
 0x8bf   : > { %v982_v37 = vadd.f32 %v981_v54, %v6734_v23 }
 0x8c1   : > { %v3224_v58 = vpop.f32.mrf.mxu3 }
 0x8c2   : > { %v3225_v45 = vadd.f32 %v3224_v58, %v952_v5 }
 0x8c4   : > { %v3260_v13 = vmax.f32 %v3225_v45, 0.0 }
 0x8c6   : > { %v6747_v50 = vpack.c.bf16 %v3260_v13, %v3259_v55 }
 0x8c9   : > { %v3227_v38 = vpop.f32.mrf.mxu3 }
 0x8ca   : > { %v3228_v21 = vadd.f32 %v3227_v38, %v955_v35 }
 0x8cc   : > { %v3261_v41 = vmax.f32 %v3228_v21, 0.0  ;;  %v3864_v21 = vld [vmem:[%s6850_s9 + $0x28] sm:$0xff] }
 0x8d1   : > { %v3229_v52 = vpop.f32.mrf.mxu3 }
 0x8d2   : > { %v3230_v43 = vadd.f32 %v3229_v52, %v957_v8  ;;  %v3861_v8 = vld [vmem:[%s6850_s9 + $0x10] sm:$0xff] }
 0x8d3   : > { %v3865_v52 = vld [vmem:[%s6850_s9 + $0x30] sm:$0xff] }
 0x8d4   : > { %v3262_v16 = vmax.f32 %v3230_v43, 0.0  ;;  %v984_v43 = vpop.f32.mrf.mxu0 }
 0x8d6   : > { %v3291_v29 = vpack.c.bf16 %v3262_v16, %v3261_v41  ;;  %v3866_v16 = vld [vmem:[%s6850_s9 + $0x38] sm:$0xff] }
 0x8d9   : > { %v3232_v2 = vpop.f32.mrf.mxu3 }
 0x8da   : > { %v3233_v44 = vadd.f32 %v3232_v2, %v960_v47  ;;  %v985_v2 = vadd.f32 %v984_v43, %v640_v10 }
 0x8dc   : > { %v3263_v22 = vmax.f32 %v3233_v44, 0.0  ;;  %v986_v41 = vpop.f32.mrf.mxu0 }
 0x8e1   : > { %v3234_v17 = vpop.f32.mrf.mxu3 }
 0x8e2   : > { %v3235_v53 = vadd.f32 %v3234_v17, %v962_v51 }
 0x8e4   : > { %v3264_v63 = vmax.f32 %v3235_v53, 0.0  ;;  %v645_v53 = vpop.permute.xlu0 %644 }
 0x8e5   : > { %v987_v46 = vadd.f32 %v986_v41, %v645_v53 }
 0x8e6   : > { %v3292_v60 = vpack.c.bf16 %v3264_v63, %v3263_v22 }
 0x8e9   : > { %v3237_v56 = vpop.f32.mrf.mxu3 }
 0x8ea   : > { %v3238_v20 = vadd.f32 %v3237_v56, %v965_v14  ;;  %v650_v56 = vpop.permute.xlu1 %649 }
 0x8ec   : > { %v3265_v36 = vmax.f32 %v3238_v20, 0.0  ;;  %v660_v32 = vpop.permute.xlu0 %659 }
 0x8f1   : > { %v3239_v9 = vpop.f32.mrf.mxu3 }
 0x8f2   : > { %v3240_v13 = vadd.f32 %v3239_v9, %v967_v18 }
 0x8f4   : > { %v3266_v35 = vmax.f32 %v3240_v13, 0.0 }
 0x8f6   : > { %v3293_v57 = vpack.c.bf16 %v3266_v35, %v3265_v36 }
 0x8f9   : > { %v3242_v49 = vpop.f32.mrf.mxu3 }
 0x8fa   : > { %v3243_v55 = vadd.f32 %v3242_v49, %v970_v39 }
 0x8fc   : > { %v3267_v38 = vmax.f32 %v3243_v55, 0.0 }
 0x901   : > { %v3244_v42 = vpop.f32.mrf.mxu3 }
 0x902   : > { %v3245_v58 = vadd.f32 %v3244_v42, %v972_v40 }
 0x904   : > { %v3268_v12 = vmax.f32 %v3245_v58, 0.0 }
 0x906   : > { %v3294_v24 = vpack.c.bf16 %v3268_v12, %v3267_v38 }
 0x909   : > { %v3247_v27 = vpop.f32.mrf.mxu3 }
 0x90a   : > { %v3248_v26 = vadd.f32 %v3247_v27, %v975_v7 }
 0x90c   : > { %v3269_v23 = vmax.f32 %v3248_v26, 0.0  ;;  %v670_v26 = vpop.permute.xlu2 %669 }
 0x911   : > { %v3249_v0 = vpop.f32.mrf.mxu3 }
 0x912   : > { %v3250_v59 = vadd.f32 %v3249_v0, %v977_v4 }
 0x914   : > { %v3270_v3 = vmax.f32 %v3250_v59, 0.0 }
 0x916   : > { %v3295_v15 = vpack.c.bf16 %v3270_v3, %v3269_v23 }
 0x919   : > { %v3252_v33 = vpop.f32.mrf.mxu3 }
 0x91a   : > { %v3253_v31 = vadd.f32 %v3252_v33, %v980_v30 }
 0x91c   : > { %v3271_v1 = vmax.f32 %v3253_v31, 0.0  ;;  %v665_v31 = vpop.permute.xlu1 %664 }
 0x921   : > { %v3254_v62 = vpop.f32.mrf.mxu3 }
 0x922   : > { %v3255_v11 = vadd.f32 %v3254_v62, %v982_v37 }
 0x924   : > { %v3272_v5 = vmax.f32 %v3255_v11, 0.0 }
 0x926   : > { %v3296_v45 = vpack.c.bf16 %v3272_v5, %v3271_v1 }
 0x928   : > { %3345 = vmatpush.bf16.msrb.mxu1 %v3296_v45  ;;  %v675_v45 = vpop.permute.xlu0 %674 }
 0x92c   : > { %3346 = vmatpush.bf16.msrb.mxu1 %v3295_v15  ;;  %v680_v15 = vpop.permute.xlu1 %679 }
 0x930   : > { %3347 = vmatpush.bf16.msrb.mxu1 %v3294_v24 }
 0x934   : > { %3348 = vmatpush.bf16.msrb.mxu1 %v3293_v57  ;;  %v685_v57 = vpop.permute.xlu2 %684  ;;  %v695_v10 = vpop.permute.xlu1 %694 }
 0x938   : > { %3349 = vmatpush.bf16.msrb.mxu1 %v3292_v60 }
 0x93c   : > { %3350 = vmatpush.bf16.msrb.mxu1 %v3291_v29  ;;  %v989_v29 = vpop.f32.mrf.mxu0  ;;  %v700_v53 = vpop.permute.xlu2 %699 }
 0x93d   : > { %v990_v20 = vadd.f32 %v989_v29, %v650_v56 }
 0x940   : > { %3351 = vmatpush.bf16.msrb.mxu1 %v6747_v50  ;;  %v3862_v50 = vld [vmem:[%s6850_s9 + $0x18] sm:$0xff] }
 0x944   : > { %3352 = vmatpush.bf16.msrb.mxu1 %v6743_v61  ;;  %v3863_v61 = vld [vmem:[%s6850_s9 + $0x20] sm:$0xff]  ;;  %v991_v47 = vpop.f32.mrf.mxu0 }
 0x945   : > { %v992_v42 = vadd.f32 %v991_v47, %v655_v19  ;;  %v7036_v19 = vld [vmem:[#allocation11_spill] sm:$0xff] }
 0x947   : > { %3353 = vmatmul.bf16.vlgmr.msrb.gmra.mxu1 %v3859_v28 }
 0x94c   : > { %v994_v60 = vpop.f32.mrf.mxu0 }
 0x94d   : > { %v995_v30 = vadd.f32 %v994_v60, %v660_v32  ;;  %v715_v32 = vpop.permute.xlu2 %714 }
 0x954   : > { %v996_v49 = vpop.f32.mrf.mxu0 }
 0x955   : > { %v997_v62 = vadd.f32 %v996_v49, %v665_v31  ;;  %v710_v49 = vpop.permute.xlu1 %709 }
 0x957   : > { %3358 = vmatmul.bf16.gmra.mxu1 %v3860_v25 }
 0x95c   : > { %v999_v33 = vpop.f32.mrf.mxu0 }
 0x95d   : > { %v1000_v1 = vadd.f32 %v999_v33, %v670_v26  ;;  %v7037_v33 = vld [vmem:[#allocation12_spill] sm:$0xff] }
 0x964   : > { %v1001_v7 = vpop.f32.mrf.mxu0 }
 0x965   : > { %v1002_v18 = vadd.f32 %v1001_v7, %v675_v45 }
 0x967   : > { %3363 = vmatmul.bf16.gmra.mxu1 %v3861_v8 }
 0x96c   : > { %v1004_v58 = vpop.f32.mrf.mxu0 }
 0x96d   : > { %v1005_v38 = vadd.f32 %v1004_v58, %v680_v15 }
 0x974   : > { %v1006_v12 = vpop.f32.mrf.mxu0 }
 0x975   : > { %v1007_v25 = vadd.f32 %v1006_v12, %v685_v57 }
 0x977   : > { %3368 = vmatmul.bf16.gmra.mxu1 %v3862_v50 }
 0x97c   : > { %v1009_v28 = vpop.f32.mrf.mxu0 }
 0x984   : > { %v1011_v43 = vpop.f32.mrf.mxu0 }
 0x987   : > { %3373 = vmatmul.bf16.gmra.mxu1 %v3863_v61 }
 0x997   : > { %3378 = vmatmul.bf16.gmra.mxu1 %v3864_v21  ;;  %v690_v21 = vpop.permute.xlu0 %689 }
 0x99f   : > { %v705_v56 = vpop.permute.xlu0 %704 }
 0x9a7   : > { %3383 = vmatmul.bf16.gmra.mxu1 %v3865_v52  ;;  %v1010_v52 = vadd.f32 %v1009_v28, %v690_v21 }
 0x9b7   : > { %3388 = vmatmul.bf16.gmra.mxu1 %v3866_v16 }
 0x9c4   : > { %v3354_v51 = vpop.f32.mrf.mxu1 }
 0x9c5   : > { %v3355_v44 = vadd.f32 %v3354_v51, %v985_v2  ;;  %v1012_v2 = vadd.f32 %v1011_v43, %v695_v10 }
 0x9c7   : > { %v3394_v17 = vmax.f32 %v3355_v44, 0.0  ;;  %v1014_v44 = vpop.f32.mrf.mxu0 }
 0x9c9   : > { %3410 = vst [vmem:[%s6787_s21] sm:$0xff] %v3394_v17 }
 0x9cc   : > { %v3356_v22 = vpop.f32.mrf.mxu1 }
 0x9cd   : > { %v3357_v63 = vadd.f32 %v3356_v22, %v987_v46  ;;  %v1015_v46 = vadd.f32 %v1014_v44, %v700_v53 }
 0x9cf   : > { %v3395_v14 = vmax.f32 %v3357_v63, 0.0 }
 0x9d1   : > { %3411 = vst [vmem:[%s6787_s21 + $0x8] sm:$0xff] %v3395_v14  ;;  %v1016_v14 = vpop.f32.mrf.mxu0 }
 0x9d4   : > { %v3359_v34 = vpop.f32.mrf.mxu1 }
 0x9d5   : > { %v3360_v9 = vadd.f32 %v3359_v34, %v990_v20  ;;  %v1017_v20 = vadd.f32 %v1016_v14, %v705_v56 }
 0x9d7   : > { %v3396_v6 = vmax.f32 %v3360_v9, 0.0 }
 0x9d9   : > { %3412 = vst [vmem:[%s6787_s21 + $0x10] sm:$0xff] %v3396_v6 }
 0x9dc   : > { %v3361_v27 = vpop.f32.mrf.mxu1 }
 0x9dd   : > { %v3362_v48 = vadd.f32 %v3361_v27, %v992_v42  ;;  %v1020_v42 = vadd.f32 %v7036_v19, %v710_v49 }
 0x9df   : > { %v3397_v0 = vmax.f32 %v3362_v48, 0.0 }
 0x9e1   : > { %3413 = vst [vmem:[%s6787_s21 + $0x18] sm:$0xff] %v3397_v0 }
 0x9e4   : > { %v3364_v54 = vpop.f32.mrf.mxu1 }
 0x9e5   : > { %v3365_v4 = vadd.f32 %v3364_v54, %v995_v30  ;;  %v1022_v30 = vadd.f32 %v7037_v33, %v715_v32 }
 0x9e7   : > { %v3398_v37 = vmax.f32 %v3365_v4, 0.0 }
 0x9e9   : > { %3414 = vst [vmem:[%s6787_s21 + $0x20] sm:$0xff] %v3398_v37 }
 0x9ec   : > { %v3366_v59 = vpop.f32.mrf.mxu1 }
 0x9ed   : > { %v3367_v11 = vadd.f32 %v3366_v59, %v997_v62 }
 0x9ef   : > { %v3399_v40 = vmax.f32 %v3367_v11, 0.0 }
 0x9f1   : > { %3415 = vst [vmem:[%s6787_s21 + $0x28] sm:$0xff] %v3399_v40 }
 0x9f4   : > { %v3369_v5 = vpop.f32.mrf.mxu1 }
 0x9f5   : > { %v3370_v39 = vadd.f32 %v3369_v5, %v1000_v1 }
 0x9f7   : > { %v3400_v3 = vmax.f32 %v3370_v39, 0.0 }
 0x9f9   : > { %3416 = vst [vmem:[%s6787_s21 + $0x30] sm:$0xff] %v3400_v3 }
 0x9fc   : > { %v3371_v55 = vpop.f32.mrf.mxu1 }
 0x9fd   : > { %v3372_v23 = vadd.f32 %v3371_v55, %v1002_v18 }
 0x9ff   : > { %v3401_v13 = vmax.f32 %v3372_v23, 0.0 }
 0xa01   : > { %3417 = vst [vmem:[%s6787_s21 + $0x38] sm:$0xff] %v3401_v13 }
 0xa04   : > { %v3374_v35 = vpop.f32.mrf.mxu1 }
 0xa05   : > { %v3375_v24 = vadd.f32 %v3374_v35, %v1005_v38 }
 0xa07   : > { %v3402_v36 = vmax.f32 %v3375_v24, 0.0 }
 0xa09   : > { %3418 = vst [vmem:[%s6787_s21 + $0x40] sm:$0xff] %v3402_v36 }
 0xa0c   : > { %v3376_v8 = vpop.f32.mrf.mxu1 }
 0xa0d   : > { %v3377_v50 = vadd.f32 %v3376_v8, %v1007_v25 }
 0xa0f   : > { %v3403_v61 = vmax.f32 %v3377_v50, 0.0 }
 0xa11   : > { %3419 = vst [vmem:[%s6787_s21 + $0x48] sm:$0xff] %v3403_v61 }
 0xa14   : > { %v3379_v41 = vpop.f32.mrf.mxu1 }
 0xa15   : > { %v3380_v16 = vadd.f32 %v3379_v41, %v1010_v52 }
 0xa17   : > { %v3404_v29 = vmax.f32 %v3380_v16, 0.0 }
 0xa19   : > { %3420 = vst [vmem:[%s6787_s21 + $0x50] sm:$0xff] %v3404_v29 }
 0xa1c   : > { %v3381_v47 = vpop.f32.mrf.mxu1 }
 0xa1d   : > { %v3382_v51 = vadd.f32 %v3381_v47, %v1012_v2 }
 0xa1f   : > { %v3405_v17 = vmax.f32 %v3382_v51, 0.0 }
 0xa21   : > { %3421 = vst [vmem:[%s6787_s21 + $0x58] sm:$0xff] %v3405_v17 }
 0xa24   : > { %v3384_v22 = vpop.f32.mrf.mxu1 }
 0xa25   : > { %v3385_v63 = vadd.f32 %v3384_v22, %v1015_v46 }
 0xa27   : > { %v3406_v60 = vmax.f32 %v3385_v63, 0.0 }
 0xa29   : > { %3422 = vst [vmem:[%s6787_s21 + $0x60] sm:$0xff] %v3406_v60 }
 0xa2c   : > { %v3386_v34 = vpop.f32.mrf.mxu1 }
 0xa2d   : > { %v3387_v9 = vadd.f32 %v3386_v34, %v1017_v20 }
 0xa2f   : > { %v3407_v6 = vmax.f32 %v3387_v9, 0.0 }
 0xa31   : > { %3423 = vst [vmem:[%s6787_s21 + $0x68] sm:$0xff] %v3407_v6 }
 0xa34   : > { %v3389_v27 = vpop.f32.mrf.mxu1 }
 0xa35   : > { %v3390_v48 = vadd.f32 %v3389_v27, %v1020_v42 }
 0xa37   : > { %v3408_v0 = vmax.f32 %v3390_v48, 0.0 }
 0xa39   : > { %3424 = vst [vmem:[%s6787_s21 + $0x70] sm:$0xff] %v3408_v0 }
 0xa3c   : > { %v3391_v54 = vpop.f32.mrf.mxu1 }
 0xa3d   : > { %v3392_v4 = vadd.f32 %v3391_v54, %v1022_v30 }
 0xa3f   : > { %v3409_v37 = vmax.f32 %v3392_v4, 0.0 }
 0xa41   : > { %3425 = vst [vmem:[%s6787_s21 + $0x78] sm:$0xff] %v3409_v37 }
 0xa42   : > { %4406 = shalt.err (!%p4403_p8)
}
 0xa43   : > { %s4456_s29 = smov 128   ;;  %s4457_s21 = smov 8  }
 0xa44   : > { %3876 = dma.vmem_to_hbm [thread:$0]  (%p4551_p5), %s3440_s25, 2048, %s3442_s26, %s3427_s17, %s4456_s29, %s4456_s29, %s4457_s21  }
 0xa45 PF: > { %p3888_p9 = scmp.ge.s32.totalorder %s4445_s16, 2  ;;  %s3456_s11 = sand.u32 1, %s4433_s13  }
 0xa46   : > { %s3457_s12 = scalar_lea.sflag [#allocation4], %s3456_s11 }
 0xa47   : > { %p3883_p10 = pnand %p3888_p9, %p4555_p6 }
 0xa49   : > { %p3884_p11 = pneg %p3883_p10 }
 0xa4b   : > { %4428 = dma.done.wait (%p3884_p11), %s3457_s12, 2048  }
 0xa4c   : > { %4430 = vsyncadd (%p3884_p11), %s3457_s12, 4294965248  ;;  %p21_p12 = scmp.ge.s32.totalorder %s4538_s19, 4   ;;  %s7038_s13 = smov %s4437_s14 }
 0xa4d   : > { %s7039_s14 = smov %s4441_s15  ;;  %s7040_s15 = smov %s4549_s22 }
 0xa4e   : > { %s7041_s16 = smov %s4538_s19  ;;  %23 = sbr.rel (!%p21_p12) target bundleno = 4 (0x4), region = 105 }
 0xa53   :  { %3463 = vsyncpa [#allocation4], 1 }
 0xa54   :  { %3465 = vsyncpa [#allocation4 + $0x1], 1 }
 0xa55   :  { %3466 = vsyncpa [#allocation5], 1 }
 0xa56   :  { %3468 = vsyncpa [#allocation5 + $0x1], 1 }

</bundles_post_ra>
